<compile_context>
chip_gen: v6e
topology: v6e:2x2x1
jax: 0.10.0
libtpu: 0.0.40
codegen_flags: <defaults>
</compile_context>

<pallas_src>
import jax
import jax.numpy as jnp
from jax.experimental import pallas as pl
from jax.experimental.pallas import tpu as pltpu

# ----------------------- small, ViT-consistent sizes -----------------------
B = 2            # batch
C = 3            # input channels (RGB, as the ViT backbone expects)
IMG = 16         # image size
P = 4            # patch size
GRID = IMG // P  # 4
N = GRID * GRID  # 16 patches
T = N + 1        # 17 tokens (cls + patches)
T_PAD = 24       # per-batch token stride, padded to a multiple of 8 (sublane group)
D = 32           # embed dim   (768 in ViT-B, shrunk for the synthetic kernel)
H = 4            # attention heads
HD = D // H      # head dim
MLP = 4 * D      # MLP hidden (=128)
DEPTH = 2        # transformer blocks
NCLS = 24        # classifier classes (600/393 in the original, shrunk)
K = C * P * P    # flattened patch length (=48)
LW = 128         # packed lane width for lane-dense matmuls / output
EPS = 1e-6       # timm ViT LayerNorm eps
LOG_SCALE = 2.659  # cfg.model.log_scale (CLIP-style ln(1/0.07))
NEG = -1e30      # additive key mask for padding tokens

assert T_PAD % 8 == 0 and T <= T_PAD
assert 3 * D <= LW and MLP == LW and NCLS <= LW


# ------------------------------ kernel helpers ------------------------------
def _ln_plain(x):
    """LayerNorm without affine (gamma/beta folded into the following weights)."""
    mu = jnp.mean(x, axis=-1, keepdims=True)
    xc = x - mu
    var = jnp.mean(xc * xc, axis=-1, keepdims=True)
    return xc * jax.lax.rsqrt(var + EPS)


def _dot(a, b):
    return jnp.dot(a, b, preferred_element_type=jnp.float32)


def _dot_nt(a, b):  # a[M,K] @ b[N,K]^T without materializing a transpose
    return jax.lax.dot_general(a, b, (((1,), (1,)), ((), ())),
                               preferred_element_type=jnp.float32)


# ------------------------------ fused Pallas kernel ------------------------------
def vit_fused_kernel(xp_ref, pw_ref, add_ref, w_in_ref, b_in_ref,
                     w_out_ref, b_out_ref, lnf_ref, clsw_ref,
                     o_ref, attn_ref):
    # ---- patch embed (stride==kernel Conv2d as a matmul) + cls token + pos embed ----
    # xp rows: [cls(=0), 16 patches, 7 zero-pad] per batch; add_ref supplies cls+pos+bias.
    x = _dot(xp_ref[...], pw_ref[...]) + add_ref[...]             # [B*T_PAD, D]

    # additive key mask: padding token columns (>= T) get -1e30 before the softmax
    lane_ids = jax.lax.broadcasted_iota(jnp.int32, (1, T_PAD), 1)
    key_mask = jnp.where(lane_ids < T, 0.0, NEG).astype(jnp.float32)

    # ---- transformer blocks (static depth loop, all weights VMEM-resident) ----
    for d in range(DEPTH):
        # attention: LN1 affine + q-scale are folded into w_in / b_in.
        x1 = _ln_plain(x)
        qkv = _dot(x1, w_in_ref[d, 0:D, :]) + b_in_ref[d, 0:1, :]   # [B*T_PAD, 128]
        for b in range(B):                                          # static
            r0 = b * T_PAD                                          # sublane-aligned
            qb = qkv[r0:r0 + T_PAD, :]                              # [T_PAD, 128] view
            for h in range(H):                                      # static
                q_h = qb[:, h * HD:(h + 1) * HD]
                k_h = qb[:, D + h * HD:D + (h + 1) * HD]
                v_h = qb[:, 2 * D + h * HD:2 * D + (h + 1) * HD]
                s = _dot_nt(q_h, k_h) + key_mask                    # [T_PAD, T_PAD]
                s = s - jnp.max(s, axis=-1, keepdims=True)
                e = jnp.exp(s)
                p = e * pl.reciprocal(jnp.sum(e, axis=-1, keepdims=True), approx=True)
                # no head/batch concat: store into VMEM scratch at static offsets
                attn_ref[r0:r0 + T_PAD, h * HD:(h + 1) * HD] = _dot(p, v_h)
        attn = _dot(attn_ref[...], w_out_ref[d, 0:D, :]) + b_out_ref[d, 0:1, :]
        x = x + attn

        # MLP: LN2 affine folded into fc1 weight/bias.
        x2 = _ln_plain(x)
        h1 = _dot(x2, w_in_ref[d, D:2 * D, :]) + b_in_ref[d, 1:2, :]  # [B*T_PAD, MLP]
        # TODO(synk): timm's nn.GELU is exact (erf); tanh-approximate GELU used for Mosaic lowering.
        h1 = jax.nn.gelu(h1, approximate=True)
        x = x + _dot(h1, w_out_ref[d, D:D + MLP, :]) + b_out_ref[d, 1:2, :]

    # ---- head: final LN -> L2 normalize -> cosine classifier (pre-normalized/scaled) ----
    # Applied to the whole (tiny) slab to avoid any in-kernel row gather; the wrapper
    # slices out the B cls rows (at aligned offsets 0, T_PAD, ...).
    xf = _ln_plain(x) * lnf_ref[0:1, :] + lnf_ref[1:2, :]           # [B*T_PAD, D]
    ss = jnp.sum(xf * xf, axis=-1, keepdims=True)
    feat = xf * jax.lax.rsqrt(jnp.maximum(ss, 1e-24))               # ~F.normalize eps
    o_ref[...] = _dot(feat, clsw_ref[...])                          # [B*T_PAD, 128]


# ------------------------------ host-side weight folding ------------------------------
def prepare_params(params):
    """Fold constants / pack the 21 module parameters into 8 kernel inputs."""
    s = HD ** -0.5
    f32 = jnp.float32

    # token additive slab: row 0 = cls + pos[0]; rows 1..16 = pos[1:] + patch bias; rest 0.
    pos = params["pos_embed"].reshape(T, D)
    cls = params["cls_token"].reshape(1, D)
    pbias = params["patch_b"].reshape(1, D)
    block = jnp.concatenate(
        [cls + pos[0:1], pos[1:] + pbias, jnp.zeros((T_PAD - T, D), f32)], axis=0)
    tok_add = jnp.tile(block, (B, 1))                               # [B*T_PAD, D]

    w_in, b_in, w_out, b_out = [], [], [], []
    for d in range(DEPTH):
        g1 = params["ln1_g"][d].reshape(D)
        be1 = params["ln1_b"][d].reshape(D)
        Wq = params["qkv_w"][d]                                     # [D, 3D]
        cq = params["qkv_b"][d].reshape(3 * D)
        Wq_f = g1[:, None] * Wq                                     # fold LN1 gamma
        cq_f = be1 @ Wq + cq                                        # fold LN1 beta
        Wq_f = Wq_f.at[:, :D].multiply(s)                           # fold q-scale
        cq_f = cq_f.at[:D].multiply(s)
        Wq_pad = jnp.zeros((D, LW), f32).at[:, :3 * D].set(Wq_f)
        cq_pad = jnp.zeros((LW,), f32).at[:3 * D].set(cq_f)

        g2 = params["ln2_g"][d].reshape(D)
        be2 = params["ln2_b"][d].reshape(D)
        W1 = params["fc1_w"][d]                                     # [D, MLP]
        c1 = params["fc1_b"][d].reshape(MLP)
        W1_f = g2[:, None] * W1                                     # fold LN2 gamma
        c1_f = be2 @ W1 + c1                                        # fold LN2 beta

        w_in.append(jnp.concatenate([Wq_pad, W1_f], axis=0))        # [2D, 128]
        b_in.append(jnp.stack([cq_pad, c1_f], axis=0))              # [2, 128]
        w_out.append(jnp.concatenate([params["proj_w"][d],
                                      params["fc2_w"][d]], axis=0))  # [D+MLP, D]
        b_out.append(jnp.concatenate([params["proj_b"][d],
                                      params["fc2_b"][d]], axis=0))  # [2, D]

    # classifier: pre-L2-normalize, pre-scale by exp(logit_scale), transpose, lane-pad.
    w = params["classifier"]                                        # [NCLS, D]
    wn = w * jax.lax.rsqrt(jnp.maximum(jnp.sum(w * w, axis=-1, keepdims=True), 1e-24))
    wn = wn * jnp.exp(params["logit_scale"].reshape(()))
    cls_w = jnp.zeros((D, LW), f32).at[:, :NCLS].set(wn.T)

    lnf = jnp.concatenate([params["ln_f_g"], params["ln_f_b"]], axis=0)  # [2, D]

    return {
        "patch_w": params["patch_w"],         # [K, D]
        "tok_add": tok_add,                   # [B*T_PAD, D]
        "w_in": jnp.stack(w_in),              # [DEPTH, 2D, 128]
        "b_in": jnp.stack(b_in),              # [DEPTH, 2, 128]
        "w_out": jnp.stack(w_out),            # [DEPTH, D+MLP, D]
        "b_out": jnp.stack(b_out),            # [DEPTH, 2, D]
        "lnf": lnf,                           # [2, D]
        "cls_w": cls_w,                       # [D, 128]
    }


# ------------------------------ wrapper (glue) ------------------------------
def vision_transformer_forward(x_nchw, pp):
    # NCHW -> [B, N, C*P*P] with (C, P, P) flattening (matches Conv2d weight layout),
    # then pad per-batch rows to T_PAD (row 0 reserved for cls, rows >= T are padding).
    xp = x_nchw.reshape(B, C, GRID, P, GRID, P)
    xp = xp.transpose(0, 2, 4, 1, 3, 5).reshape(B, N, K)
    xp_pad = jnp.zeros((B, T_PAD, K), jnp.float32).at[:, 1:T, :].set(xp)
    xp_pad = xp_pad.reshape(B * T_PAD, K)

    vspec = pl.BlockSpec(memory_space=pltpu.MemorySpace.VMEM)
    inputs = (xp_pad, pp["patch_w"], pp["tok_add"], pp["w_in"], pp["b_in"],
              pp["w_out"], pp["b_out"], pp["lnf"], pp["cls_w"])

    out = pl.pallas_call(
        vit_fused_kernel,
        out_shape=jax.ShapeDtypeStruct((B * T_PAD, LW), jnp.float32),
        in_specs=[vspec] * len(inputs),
        out_specs=vspec,
        scratch_shapes=[pltpu.VMEM((B * T_PAD, D), jnp.float32)],
    )(*inputs)
    # cls rows live at aligned offsets 0, T_PAD, ...; logits occupy the first NCLS lanes.
    # dataset == 'hico' -> no exp-normalization tail; 'mpii' softmax branch not exercised.
    return out[0::T_PAD, :NCLS]


def init_params(key):
    ks = iter(jax.random.split(key, 64))
    std = 0.02

    def rnd(shape):
        return std * jax.random.normal(next(ks), shape, jnp.float32)

    params = {
        "patch_w": rnd((K, D)),
        "patch_b": jnp.zeros((1, D), jnp.float32),
        "cls_token": rnd((1, 1, D)),
        "pos_embed": rnd((1, T, D)),
        # per-block params stacked along a leading DEPTH axis
        "ln1_g": jnp.ones((DEPTH, 1, D), jnp.float32),
        "ln1_b": jnp.zeros((DEPTH, 1, D), jnp.float32),
        "qkv_w": rnd((DEPTH, D, 3 * D)),
        "qkv_b": jnp.zeros((DEPTH, 1, 3 * D), jnp.float32),
        "proj_w": rnd((DEPTH, D, D)),
        "proj_b": jnp.zeros((DEPTH, 1, D), jnp.float32),
        "ln2_g": jnp.ones((DEPTH, 1, D), jnp.float32),
        "ln2_b": jnp.zeros((DEPTH, 1, D), jnp.float32),
        "fc1_w": rnd((DEPTH, D, MLP)),
        "fc1_b": jnp.zeros((DEPTH, 1, MLP), jnp.float32),
        "fc2_w": rnd((DEPTH, MLP, D)),
        "fc2_b": jnp.zeros((DEPTH, 1, D), jnp.float32),
        "ln_f_g": jnp.ones((1, D), jnp.float32),
        "ln_f_b": jnp.zeros((1, D), jnp.float32),
        # classifier == 'rand': Parameter(D**-0.5 * randn([ncls, D]))
        "classifier": (D ** -0.5) * jax.random.normal(next(ks), (NCLS, D), jnp.float32),
        # logit_scale fixed (requires_grad=False path -> no clamp needed in forward)
        "logit_scale": jnp.full((1, 1), LOG_SCALE, jnp.float32),
    }
    return params


if __name__ == "__main__":
    key = jax.random.PRNGKey(0)
    kx, kp = jax.random.split(key)
    x = jax.random.normal(kx, (B, C, IMG, IMG), jnp.float32)   # NCHW, like PyTorch
    params = init_params(kp)
    prepped = prepare_params(params)                            # one-time host-side folding

    fwd = jax.jit(vision_transformer_forward)
    logits = fwd(x, prepped)
    jax.block_until_ready(logits)

    assert logits.shape == (B, NCLS)
    assert bool(jnp.all(jnp.isfinite(logits)))
    print("KERNEL_OK")
</pallas_src>

<mosaic_0001>
module attributes {stable_mosaic.version = 11 : i64} {
  func.func @vit_fused_kernel(%arg0: memref<48x48xf32, #tpu.memory_space<vmem>>, %arg1: memref<48x32xf32, #tpu.memory_space<vmem>>, %arg2: memref<48x32xf32, #tpu.memory_space<vmem>>, %arg3: memref<2x64x128xf32, #tpu.memory_space<vmem>>, %arg4: memref<2x2x128xf32, #tpu.memory_space<vmem>>, %arg5: memref<2x160x32xf32, #tpu.memory_space<vmem>>, %arg6: memref<2x2x32xf32, #tpu.memory_space<vmem>>, %arg7: memref<2x32xf32, #tpu.memory_space<vmem>>, %arg8: memref<32x128xf32, #tpu.memory_space<vmem>>, %arg9: memref<48x128xf32, #tpu.memory_space<vmem>>, %arg10: memref<48x32xf32, #tpu.memory_space<vmem>>) attributes {dimension_semantics = [], scalar_prefetch = 0 : i64, scratch_operands = 1 : i64, tpu.core_type = #tpu.core_type<tc>} {
    %c0 = arith.constant 0 : index
    %c0_0 = arith.constant 0 : index
    %0 = vector.load %arg0[%c0, %c0_0] : memref<48x48xf32, #tpu.memory_space<vmem>>, vector<48x48xf32>
    %c0_1 = arith.constant 0 : index
    %c0_2 = arith.constant 0 : index
    %1 = vector.load %arg1[%c0_1, %c0_2] : memref<48x32xf32, #tpu.memory_space<vmem>>, vector<48x32xf32>
    %cst = arith.constant dense<0.000000e+00> : vector<48x32xf32>
    %2 = tpu.matmul %0, %1, %cst {dimension_numbers = #tpu.dot_dimension_numbers<[1], [0], [0], [1], [0, 0, 1, 1], [], []>} : vector<48x48xf32>, vector<48x32xf32>, vector<48x32xf32> -> vector<48x32xf32>
    %c0_3 = arith.constant 0 : index
    %c0_4 = arith.constant 0 : index
    %3 = vector.load %arg2[%c0_3, %c0_4] : memref<48x32xf32, #tpu.memory_space<vmem>>, vector<48x32xf32>
    %4 = arith.addf %2, %3 : vector<48x32xf32>
    %5 = tpu.iota {dimensions = array<i32: 1>} : vector<1x24xi32>
    %c17_i32 = arith.constant 17 : i32
    %6 = vector.broadcast %c17_i32 : i32 to vector<1x24xi32>
    %7 = arith.cmpi slt, %5, %6 : vector<1x24xi32>
    %cst_5 = arith.constant 0.000000e+00 : f32
    %cst_6 = arith.constant -1.000000e+30 : f32
    %8 = vector.broadcast %cst_5 : f32 to vector<1x24xf32>
    %9 = vector.broadcast %cst_6 : f32 to vector<1x24xf32>
    %10 = arith.select %7, %8, %9 : vector<1x24xi1>, vector<1x24xf32>
    %cst_7 = arith.constant dense<0.000000e+00> : vector<48xf32>
    %11 = vector.multi_reduction <add>, %4, %cst_7 [1] : vector<48x32xf32> to vector<48xf32>
    %12 = vector.shape_cast %11 : vector<48xf32> to vector<48x1xf32>
    %cst_8 = arith.constant 3.200000e+01 : f32
    %13 = vector.broadcast %cst_8 : f32 to vector<48x1xf32>
    %14 = arith.divf %12, %13 : vector<48x1xf32>
    %15 = vector.broadcast %14 : vector<48x1xf32> to vector<48x32xf32>
    %16 = arith.subf %4, %15 : vector<48x32xf32>
    %17 = arith.mulf %16, %16 : vector<48x32xf32>
    %cst_9 = arith.constant dense<0.000000e+00> : vector<48xf32>
    %18 = vector.multi_reduction <add>, %17, %cst_9 [1] : vector<48x32xf32> to vector<48xf32>
    %19 = vector.shape_cast %18 : vector<48xf32> to vector<48x1xf32>
    %cst_10 = arith.constant 3.200000e+01 : f32
    %20 = vector.broadcast %cst_10 : f32 to vector<48x1xf32>
    %21 = arith.divf %19, %20 : vector<48x1xf32>
    %cst_11 = arith.constant 9.99999997E-7 : f32
    %22 = vector.broadcast %cst_11 : f32 to vector<48x1xf32>
    %23 = arith.addf %21, %22 : vector<48x1xf32>
    %24 = math.rsqrt %23 : vector<48x1xf32>
    %25 = vector.broadcast %24 : vector<48x1xf32> to vector<48x32xf32>
    %26 = arith.mulf %16, %25 : vector<48x32xf32>
    %c0_12 = arith.constant 0 : index
    %c0_13 = arith.constant 0 : index
    %c0_14 = arith.constant 0 : index
    %27 = vector.load %arg3[%c0_12, %c0_13, %c0_14] : memref<2x64x128xf32, #tpu.memory_space<vmem>>, vector<1x32x128xf32>
    %28 = vector.shape_cast %27 : vector<1x32x128xf32> to vector<32x128xf32>
    %cst_15 = arith.constant dense<0.000000e+00> : vector<48x128xf32>
    %29 = tpu.matmul %26, %28, %cst_15 {dimension_numbers = #tpu.dot_dimension_numbers<[1], [0], [0], [1], [0, 0, 1, 1], [], []>} : vector<48x32xf32>, vector<32x128xf32>, vector<48x128xf32> -> vector<48x128xf32>
    %c0_16 = arith.constant 0 : index
    %c0_17 = arith.constant 0 : index
    %c0_18 = arith.constant 0 : index
    %30 = vector.load %arg4[%c0_16, %c0_17, %c0_18] : memref<2x2x128xf32, #tpu.memory_space<vmem>>, vector<1x1x128xf32>
    %31 = vector.shape_cast %30 : vector<1x1x128xf32> to vector<1x128xf32>
    %32 = vector.broadcast %31 : vector<1x128xf32> to vector<48x128xf32>
    %33 = arith.addf %29, %32 : vector<48x128xf32>
    %34 = vector.extract_strided_slice %33 {offsets = [0, 0], sizes = [24, 128], strides = [1, 1]} : vector<48x128xf32> to vector<24x128xf32>
    %35 = vector.extract_strided_slice %34 {offsets = [0, 0], sizes = [24, 8], strides = [1, 1]} : vector<24x128xf32> to vector<24x8xf32>
    %36 = vector.extract_strided_slice %34 {offsets = [0, 32], sizes = [24, 8], strides = [1, 1]} : vector<24x128xf32> to vector<24x8xf32>
    %37 = vector.extract_strided_slice %34 {offsets = [0, 64], sizes = [24, 8], strides = [1, 1]} : vector<24x128xf32> to vector<24x8xf32>
    %cst_19 = arith.constant dense<0.000000e+00> : vector<24x24xf32>
    %38 = tpu.matmul %35, %36, %cst_19 {dimension_numbers = #tpu.dot_dimension_numbers<[1], [1], [0], [0], [0, 0, 1, 0], [], []>} : vector<24x8xf32>, vector<24x8xf32>, vector<24x24xf32> -> vector<24x24xf32>
    %39 = vector.broadcast %10 : vector<1x24xf32> to vector<24x24xf32>
    %40 = arith.addf %38, %39 : vector<24x24xf32>
    %cst_20 = arith.constant dense<0xFF800000> : vector<24xf32>
    %41 = vector.multi_reduction <maximumf>, %40, %cst_20 [1] : vector<24x24xf32> to vector<24xf32>
    %42 = vector.shape_cast %41 : vector<24xf32> to vector<24x1xf32>
    %43 = vector.broadcast %42 : vector<24x1xf32> to vector<24x24xf32>
    %44 = arith.subf %40, %43 : vector<24x24xf32>
    %45 = math.exp %44 : vector<24x24xf32>
    %cst_21 = arith.constant dense<0.000000e+00> : vector<24xf32>
    %46 = vector.multi_reduction <add>, %45, %cst_21 [1] : vector<24x24xf32> to vector<24xf32>
    %47 = vector.shape_cast %46 : vector<24xf32> to vector<24x1xf32>
    %48 = tpu.reciprocal %47 {approx = true} : vector<24x1xf32> -> vector<24x1xf32>
    %49 = vector.broadcast %48 : vector<24x1xf32> to vector<24x24xf32>
    %50 = arith.mulf %45, %49 : vector<24x24xf32>
    %cst_22 = arith.constant dense<0.000000e+00> : vector<24x8xf32>
    %51 = tpu.matmul %50, %37, %cst_22 {dimension_numbers = #tpu.dot_dimension_numbers<[1], [0], [0], [1], [0, 0, 1, 1], [], []>} : vector<24x24xf32>, vector<24x8xf32>, vector<24x8xf32> -> vector<24x8xf32>
    %c0_23 = arith.constant 0 : index
    %c0_24 = arith.constant 0 : index
    %52 = vector.load %arg10[%c0_23, %c0_24] : memref<48x32xf32, #tpu.memory_space<vmem>>, vector<24x8xf32>
    tpu.vector_store %arg10[%c0_23, %c0_24], %51 {strides = array<i32>} : memref<48x32xf32, #tpu.memory_space<vmem>>, vector<24x8xf32>,
    %53 = vector.extract_strided_slice %34 {offsets = [0, 8], sizes = [24, 8], strides = [1, 1]} : vector<24x128xf32> to vector<24x8xf32>
    %54 = vector.extract_strided_slice %34 {offsets = [0, 40], sizes = [24, 8], strides = [1, 1]} : vector<24x128xf32> to vector<24x8xf32>
    %55 = vector.extract_strided_slice %34 {offsets = [0, 72], sizes = [24, 8], strides = [1, 1]} : vector<24x128xf32> to vector<24x8xf32>
    %cst_25 = arith.constant dense<0.000000e+00> : vector<24x24xf32>
    %56 = tpu.matmul %53, %54, %cst_25 {dimension_numbers = #tpu.dot_dimension_numbers<[1], [1], [0], [0], [0, 0, 1, 0], [], []>} : vector<24x8xf32>, vector<24x8xf32>, vector<24x24xf32> -> vector<24x24xf32>
    %57 = vector.broadcast %10 : vector<1x24xf32> to vector<24x24xf32>
    %58 = arith.addf %56, %57 : vector<24x24xf32>
    %cst_26 = arith.constant dense<0xFF800000> : vector<24xf32>
    %59 = vector.multi_reduction <maximumf>, %58, %cst_26 [1] : vector<24x24xf32> to vector<24xf32>
    %60 = vector.shape_cast %59 : vector<24xf32> to vector<24x1xf32>
    %61 = vector.broadcast %60 : vector<24x1xf32> to vector<24x24xf32>
    %62 = arith.subf %58, %61 : vector<24x24xf32>
    %63 = math.exp %62 : vector<24x24xf32>
    %cst_27 = arith.constant dense<0.000000e+00> : vector<24xf32>
    %64 = vector.multi_reduction <add>, %63, %cst_27 [1] : vector<24x24xf32> to vector<24xf32>
    %65 = vector.shape_cast %64 : vector<24xf32> to vector<24x1xf32>
    %66 = tpu.reciprocal %65 {approx = true} : vector<24x1xf32> -> vector<24x1xf32>
    %67 = vector.broadcast %66 : vector<24x1xf32> to vector<24x24xf32>
    %68 = arith.mulf %63, %67 : vector<24x24xf32>
    %cst_28 = arith.constant dense<0.000000e+00> : vector<24x8xf32>
    %69 = tpu.matmul %68, %55, %cst_28 {dimension_numbers = #tpu.dot_dimension_numbers<[1], [0], [0], [1], [0, 0, 1, 1], [], []>} : vector<24x24xf32>, vector<24x8xf32>, vector<24x8xf32> -> vector<24x8xf32>
    %c0_29 = arith.constant 0 : index
    %c8 = arith.constant 8 : index
    %70 = vector.load %arg10[%c0_29, %c8] : memref<48x32xf32, #tpu.memory_space<vmem>>, vector<24x8xf32>
    tpu.vector_store %arg10[%c0_29, %c8], %69 {strides = array<i32>} : memref<48x32xf32, #tpu.memory_space<vmem>>, vector<24x8xf32>,
    %71 = vector.extract_strided_slice %34 {offsets = [0, 16], sizes = [24, 8], strides = [1, 1]} : vector<24x128xf32> to vector<24x8xf32>
    %72 = vector.extract_strided_slice %34 {offsets = [0, 48], sizes = [24, 8], strides = [1, 1]} : vector<24x128xf32> to vector<24x8xf32>
    %73 = vector.extract_strided_slice %34 {offsets = [0, 80], sizes = [24, 8], strides = [1, 1]} : vector<24x128xf32> to vector<24x8xf32>
    %cst_30 = arith.constant dense<0.000000e+00> : vector<24x24xf32>
    %74 = tpu.matmul %71, %72, %cst_30 {dimension_numbers = #tpu.dot_dimension_numbers<[1], [1], [0], [0], [0, 0, 1, 0], [], []>} : vector<24x8xf32>, vector<24x8xf32>, vector<24x24xf32> -> vector<24x24xf32>
    %75 = vector.broadcast %10 : vector<1x24xf32> to vector<24x24xf32>
    %76 = arith.addf %74, %75 : vector<24x24xf32>
    %cst_31 = arith.constant dense<0xFF800000> : vector<24xf32>
    %77 = vector.multi_reduction <maximumf>, %76, %cst_31 [1] : vector<24x24xf32> to vector<24xf32>
    %78 = vector.shape_cast %77 : vector<24xf32> to vector<24x1xf32>
    %79 = vector.broadcast %78 : vector<24x1xf32> to vector<24x24xf32>
    %80 = arith.subf %76, %79 : vector<24x24xf32>
    %81 = math.exp %80 : vector<24x24xf32>
    %cst_32 = arith.constant dense<0.000000e+00> : vector<24xf32>
    %82 = vector.multi_reduction <add>, %81, %cst_32 [1] : vector<24x24xf32> to vector<24xf32>
    %83 = vector.shape_cast %82 : vector<24xf32> to vector<24x1xf32>
    %84 = tpu.reciprocal %83 {approx = true} : vector<24x1xf32> -> vector<24x1xf32>
    %85 = vector.broadcast %84 : vector<24x1xf32> to vector<24x24xf32>
    %86 = arith.mulf %81, %85 : vector<24x24xf32>
    %cst_33 = arith.constant dense<0.000000e+00> : vector<24x8xf32>
    %87 = tpu.matmul %86, %73, %cst_33 {dimension_numbers = #tpu.dot_dimension_numbers<[1], [0], [0], [1], [0, 0, 1, 1], [], []>} : vector<24x24xf32>, vector<24x8xf32>, vector<24x8xf32> -> vector<24x8xf32>
    %c0_34 = arith.constant 0 : index
    %c16 = arith.constant 16 : index
    %88 = vector.load %arg10[%c0_34, %c16] : memref<48x32xf32, #tpu.memory_space<vmem>>, vector<24x8xf32>
    tpu.vector_store %arg10[%c0_34, %c16], %87 {strides = array<i32>} : memref<48x32xf32, #tpu.memory_space<vmem>>, vector<24x8xf32>,
    %89 = vector.extract_strided_slice %34 {offsets = [0, 24], sizes = [24, 8], strides = [1, 1]} : vector<24x128xf32> to vector<24x8xf32>
    %90 = vector.extract_strided_slice %34 {offsets = [0, 56], sizes = [24, 8], strides = [1, 1]} : vector<24x128xf32> to vector<24x8xf32>
    %91 = vector.extract_strided_slice %34 {offsets = [0, 88], sizes = [24, 8], strides = [1, 1]} : vector<24x128xf32> to vector<24x8xf32>
    %cst_35 = arith.constant dense<0.000000e+00> : vector<24x24xf32>
    %92 = tpu.matmul %89, %90, %cst_35 {dimension_numbers = #tpu.dot_dimension_numbers<[1], [1], [0], [0], [0, 0, 1, 0], [], []>} : vector<24x8xf32>, vector<24x8xf32>, vector<24x24xf32> -> vector<24x24xf32>
    %93 = vector.broadcast %10 : vector<1x24xf32> to vector<24x24xf32>
    %94 = arith.addf %92, %93 : vector<24x24xf32>
    %cst_36 = arith.constant dense<0xFF800000> : vector<24xf32>
    %95 = vector.multi_reduction <maximumf>, %94, %cst_36 [1] : vector<24x24xf32> to vector<24xf32>
    %96 = vector.shape_cast %95 : vector<24xf32> to vector<24x1xf32>
    %97 = vector.broadcast %96 : vector<24x1xf32> to vector<24x24xf32>
    %98 = arith.subf %94, %97 : vector<24x24xf32>
    %99 = math.exp %98 : vector<24x24xf32>
    %cst_37 = arith.constant dense<0.000000e+00> : vector<24xf32>
    %100 = vector.multi_reduction <add>, %99, %cst_37 [1] : vector<24x24xf32> to vector<24xf32>
    %101 = vector.shape_cast %100 : vector<24xf32> to vector<24x1xf32>
    %102 = tpu.reciprocal %101 {approx = true} : vector<24x1xf32> -> vector<24x1xf32>
    %103 = vector.broadcast %102 : vector<24x1xf32> to vector<24x24xf32>
    %104 = arith.mulf %99, %103 : vector<24x24xf32>
    %cst_38 = arith.constant dense<0.000000e+00> : vector<24x8xf32>
    %105 = tpu.matmul %104, %91, %cst_38 {dimension_numbers = #tpu.dot_dimension_numbers<[1], [0], [0], [1], [0, 0, 1, 1], [], []>} : vector<24x24xf32>, vector<24x8xf32>, vector<24x8xf32> -> vector<24x8xf32>
    %c0_39 = arith.constant 0 : index
    %c24 = arith.constant 24 : index
    %106 = vector.load %arg10[%c0_39, %c24] : memref<48x32xf32, #tpu.memory_space<vmem>>, vector<24x8xf32>
    tpu.vector_store %arg10[%c0_39, %c24], %105 {strides = array<i32>} : memref<48x32xf32, #tpu.memory_space<vmem>>, vector<24x8xf32>,
    %107 = vector.extract_strided_slice %33 {offsets = [24, 0], sizes = [24, 128], strides = [1, 1]} : vector<48x128xf32> to vector<24x128xf32>
    %108 = vector.extract_strided_slice %107 {offsets = [0, 0], sizes = [24, 8], strides = [1, 1]} : vector<24x128xf32> to vector<24x8xf32>
    %109 = vector.extract_strided_slice %107 {offsets = [0, 32], sizes = [24, 8], strides = [1, 1]} : vector<24x128xf32> to vector<24x8xf32>
    %110 = vector.extract_strided_slice %107 {offsets = [0, 64], sizes = [24, 8], strides = [1, 1]} : vector<24x128xf32> to vector<24x8xf32>
    %cst_40 = arith.constant dense<0.000000e+00> : vector<24x24xf32>
    %111 = tpu.matmul %108, %109, %cst_40 {dimension_numbers = #tpu.dot_dimension_numbers<[1], [1], [0], [0], [0, 0, 1, 0], [], []>} : vector<24x8xf32>, vector<24x8xf32>, vector<24x24xf32> -> vector<24x24xf32>
    %112 = vector.broadcast %10 : vector<1x24xf32> to vector<24x24xf32>
    %113 = arith.addf %111, %112 : vector<24x24xf32>
    %cst_41 = arith.constant dense<0xFF800000> : vector<24xf32>
    %114 = vector.multi_reduction <maximumf>, %113, %cst_41 [1] : vector<24x24xf32> to vector<24xf32>
    %115 = vector.shape_cast %114 : vector<24xf32> to vector<24x1xf32>
    %116 = vector.broadcast %115 : vector<24x1xf32> to vector<24x24xf32>
    %117 = arith.subf %113, %116 : vector<24x24xf32>
    %118 = math.exp %117 : vector<24x24xf32>
    %cst_42 = arith.constant dense<0.000000e+00> : vector<24xf32>
    %119 = vector.multi_reduction <add>, %118, %cst_42 [1] : vector<24x24xf32> to vector<24xf32>
    %120 = vector.shape_cast %119 : vector<24xf32> to vector<24x1xf32>
    %121 = tpu.reciprocal %120 {approx = true} : vector<24x1xf32> -> vector<24x1xf32>
    %122 = vector.broadcast %121 : vector<24x1xf32> to vector<24x24xf32>
    %123 = arith.mulf %118, %122 : vector<24x24xf32>
    %cst_43 = arith.constant dense<0.000000e+00> : vector<24x8xf32>
    %124 = tpu.matmul %123, %110, %cst_43 {dimension_numbers = #tpu.dot_dimension_numbers<[1], [0], [0], [1], [0, 0, 1, 1], [], []>} : vector<24x24xf32>, vector<24x8xf32>, vector<24x8xf32> -> vector<24x8xf32>
    %c24_44 = arith.constant 24 : index
    %c0_45 = arith.constant 0 : index
    %125 = vector.load %arg10[%c24_44, %c0_45] : memref<48x32xf32, #tpu.memory_space<vmem>>, vector<24x8xf32>
    tpu.vector_store %arg10[%c24_44, %c0_45], %124 {strides = array<i32>} : memref<48x32xf32, #tpu.memory_space<vmem>>, vector<24x8xf32>,
    %126 = vector.extract_strided_slice %107 {offsets = [0, 8], sizes = [24, 8], strides = [1, 1]} : vector<24x128xf32> to vector<24x8xf32>
    %127 = vector.extract_strided_slice %107 {offsets = [0, 40], sizes = [24, 8], strides = [1, 1]} : vector<24x128xf32> to vector<24x8xf32>
    %128 = vector.extract_strided_slice %107 {offsets = [0, 72], sizes = [24, 8], strides = [1, 1]} : vector<24x128xf32> to vector<24x8xf32>
    %cst_46 = arith.constant dense<0.000000e+00> : vector<24x24xf32>
    %129 = tpu.matmul %126, %127, %cst_46 {dimension_numbers = #tpu.dot_dimension_numbers<[1], [1], [0], [0], [0, 0, 1, 0], [], []>} : vector<24x8xf32>, vector<24x8xf32>, vector<24x24xf32> -> vector<24x24xf32>
    %130 = vector.broadcast %10 : vector<1x24xf32> to vector<24x24xf32>
    %131 = arith.addf %129, %130 : vector<24x24xf32>
    %cst_47 = arith.constant dense<0xFF800000> : vector<24xf32>
    %132 = vector.multi_reduction <maximumf>, %131, %cst_47 [1] : vector<24x24xf32> to vector<24xf32>
    %133 = vector.shape_cast %132 : vector<24xf32> to vector<24x1xf32>
    %134 = vector.broadcast %133 : vector<24x1xf32> to vector<24x24xf32>
    %135 = arith.subf %131, %134 : vector<24x24xf32>
    %136 = math.exp %135 : vector<24x24xf32>
    %cst_48 = arith.constant dense<0.000000e+00> : vector<24xf32>
    %137 = vector.multi_reduction <add>, %136, %cst_48 [1] : vector<24x24xf32> to vector<24xf32>
    %138 = vector.shape_cast %137 : vector<24xf32> to vector<24x1xf32>
    %139 = tpu.reciprocal %138 {approx = true} : vector<24x1xf32> -> vector<24x1xf32>
    %140 = vector.broadcast %139 : vector<24x1xf32> to vector<24x24xf32>
    %141 = arith.mulf %136, %140 : vector<24x24xf32>
    %cst_49 = arith.constant dense<0.000000e+00> : vector<24x8xf32>
    %142 = tpu.matmul %141, %128, %cst_49 {dimension_numbers = #tpu.dot_dimension_numbers<[1], [0], [0], [1], [0, 0, 1, 1], [], []>} : vector<24x24xf32>, vector<24x8xf32>, vector<24x8xf32> -> vector<24x8xf32>
    %c24_50 = arith.constant 24 : index
    %c8_51 = arith.constant 8 : index
    %143 = vector.load %arg10[%c24_50, %c8_51] : memref<48x32xf32, #tpu.memory_space<vmem>>, vector<24x8xf32>
    tpu.vector_store %arg10[%c24_50, %c8_51], %142 {strides = array<i32>} : memref<48x32xf32, #tpu.memory_space<vmem>>, vector<24x8xf32>,
    %144 = vector.extract_strided_slice %107 {offsets = [0, 16], sizes = [24, 8], strides = [1, 1]} : vector<24x128xf32> to vector<24x8xf32>
    %145 = vector.extract_strided_slice %107 {offsets = [0, 48], sizes = [24, 8], strides = [1, 1]} : vector<24x128xf32> to vector<24x8xf32>
    %146 = vector.extract_strided_slice %107 {offsets = [0, 80], sizes = [24, 8], strides = [1, 1]} : vector<24x128xf32> to vector<24x8xf32>
    %cst_52 = arith.constant dense<0.000000e+00> : vector<24x24xf32>
    %147 = tpu.matmul %144, %145, %cst_52 {dimension_numbers = #tpu.dot_dimension_numbers<[1], [1], [0], [0], [0, 0, 1, 0], [], []>} : vector<24x8xf32>, vector<24x8xf32>, vector<24x24xf32> -> vector<24x24xf32>
    %148 = vector.broadcast %10 : vector<1x24xf32> to vector<24x24xf32>
    %149 = arith.addf %147, %148 : vector<24x24xf32>
    %cst_53 = arith.constant dense<0xFF800000> : vector<24xf32>
    %150 = vector.multi_reduction <maximumf>, %149, %cst_53 [1] : vector<24x24xf32> to vector<24xf32>
    %151 = vector.shape_cast %150 : vector<24xf32> to vector<24x1xf32>
    %152 = vector.broadcast %151 : vector<24x1xf32> to vector<24x24xf32>
    %153 = arith.subf %149, %152 : vector<24x24xf32>
    %154 = math.exp %153 : vector<24x24xf32>
    %cst_54 = arith.constant dense<0.000000e+00> : vector<24xf32>
    %155 = vector.multi_reduction <add>, %154, %cst_54 [1] : vector<24x24xf32> to vector<24xf32>
    %156 = vector.shape_cast %155 : vector<24xf32> to vector<24x1xf32>
    %157 = tpu.reciprocal %156 {approx = true} : vector<24x1xf32> -> vector<24x1xf32>
    %158 = vector.broadcast %157 : vector<24x1xf32> to vector<24x24xf32>
    %159 = arith.mulf %154, %158 : vector<24x24xf32>
    %cst_55 = arith.constant dense<0.000000e+00> : vector<24x8xf32>
    %160 = tpu.matmul %159, %146, %cst_55 {dimension_numbers = #tpu.dot_dimension_numbers<[1], [0], [0], [1], [0, 0, 1, 1], [], []>} : vector<24x24xf32>, vector<24x8xf32>, vector<24x8xf32> -> vector<24x8xf32>
    %c24_56 = arith.constant 24 : index
    %c16_57 = arith.constant 16 : index
    %161 = vector.load %arg10[%c24_56, %c16_57] : memref<48x32xf32, #tpu.memory_space<vmem>>, vector<24x8xf32>
    tpu.vector_store %arg10[%c24_56, %c16_57], %160 {strides = array<i32>} : memref<48x32xf32, #tpu.memory_space<vmem>>, vector<24x8xf32>,
    %162 = vector.extract_strided_slice %107 {offsets = [0, 24], sizes = [24, 8], strides = [1, 1]} : vector<24x128xf32> to vector<24x8xf32>
    %163 = vector.extract_strided_slice %107 {offsets = [0, 56], sizes = [24, 8], strides = [1, 1]} : vector<24x128xf32> to vector<24x8xf32>
    %164 = vector.extract_strided_slice %107 {offsets = [0, 88], sizes = [24, 8], strides = [1, 1]} : vector<24x128xf32> to vector<24x8xf32>
    %cst_58 = arith.constant dense<0.000000e+00> : vector<24x24xf32>
    %165 = tpu.matmul %162, %163, %cst_58 {dimension_numbers = #tpu.dot_dimension_numbers<[1], [1], [0], [0], [0, 0, 1, 0], [], []>} : vector<24x8xf32>, vector<24x8xf32>, vector<24x24xf32> -> vector<24x24xf32>
    %166 = vector.broadcast %10 : vector<1x24xf32> to vector<24x24xf32>
    %167 = arith.addf %165, %166 : vector<24x24xf32>
    %cst_59 = arith.constant dense<0xFF800000> : vector<24xf32>
    %168 = vector.multi_reduction <maximumf>, %167, %cst_59 [1] : vector<24x24xf32> to vector<24xf32>
    %169 = vector.shape_cast %168 : vector<24xf32> to vector<24x1xf32>
    %170 = vector.broadcast %169 : vector<24x1xf32> to vector<24x24xf32>
    %171 = arith.subf %167, %170 : vector<24x24xf32>
    %172 = math.exp %171 : vector<24x24xf32>
    %cst_60 = arith.constant dense<0.000000e+00> : vector<24xf32>
    %173 = vector.multi_reduction <add>, %172, %cst_60 [1] : vector<24x24xf32> to vector<24xf32>
    %174 = vector.shape_cast %173 : vector<24xf32> to vector<24x1xf32>
    %175 = tpu.reciprocal %174 {approx = true} : vector<24x1xf32> -> vector<24x1xf32>
    %176 = vector.broadcast %175 : vector<24x1xf32> to vector<24x24xf32>
    %177 = arith.mulf %172, %176 : vector<24x24xf32>
    %cst_61 = arith.constant dense<0.000000e+00> : vector<24x8xf32>
    %178 = tpu.matmul %177, %164, %cst_61 {dimension_numbers = #tpu.dot_dimension_numbers<[1], [0], [0], [1], [0, 0, 1, 1], [], []>} : vector<24x24xf32>, vector<24x8xf32>, vector<24x8xf32> -> vector<24x8xf32>
    %c24_62 = arith.constant 24 : index
    %c24_63 = arith.constant 24 : index
    %179 = vector.load %arg10[%c24_62, %c24_63] : memref<48x32xf32, #tpu.memory_space<vmem>>, vector<24x8xf32>
    tpu.vector_store %arg10[%c24_62, %c24_63], %178 {strides = array<i32>} : memref<48x32xf32, #tpu.memory_space<vmem>>, vector<24x8xf32>,
    %c0_64 = arith.constant 0 : index
    %c0_65 = arith.constant 0 : index
    %180 = vector.load %arg10[%c0_64, %c0_65] : memref<48x32xf32, #tpu.memory_space<vmem>>, vector<48x32xf32>
    %c0_66 = arith.constant 0 : index
    %c0_67 = arith.constant 0 : index
    %c0_68 = arith.constant 0 : index
    %181 = vector.load %arg5[%c0_66, %c0_67, %c0_68] : memref<2x160x32xf32, #tpu.memory_space<vmem>>, vector<1x32x32xf32>
    %182 = vector.shape_cast %181 : vector<1x32x32xf32> to vector<32x32xf32>
    %cst_69 = arith.constant dense<0.000000e+00> : vector<48x32xf32>
    %183 = tpu.matmul %180, %182, %cst_69 {dimension_numbers = #tpu.dot_dimension_numbers<[1], [0], [0], [1], [0, 0, 1, 1], [], []>} : vector<48x32xf32>, vector<32x32xf32>, vector<48x32xf32> -> vector<48x32xf32>
    %c0_70 = arith.constant 0 : index
    %c0_71 = arith.constant 0 : index
    %c0_72 = arith.constant 0 : index
    %184 = vector.load %arg6[%c0_70, %c0_71, %c0_72] : memref<2x2x32xf32, #tpu.memory_space<vmem>>, vector<1x1x32xf32>
    %185 = vector.shape_cast %184 : vector<1x1x32xf32> to vector<1x32xf32>
    %186 = vector.broadcast %185 : vector<1x32xf32> to vector<48x32xf32>
    %187 = arith.addf %183, %186 : vector<48x32xf32>
    %188 = arith.addf %4, %187 : vector<48x32xf32>
    %cst_73 = arith.constant dense<0.000000e+00> : vector<48xf32>
    %189 = vector.multi_reduction <add>, %188, %cst_73 [1] : vector<48x32xf32> to vector<48xf32>
    %190 = vector.shape_cast %189 : vector<48xf32> to vector<48x1xf32>
    %cst_74 = arith.constant 3.200000e+01 : f32
    %191 = vector.broadcast %cst_74 : f32 to vector<48x1xf32>
    %192 = arith.divf %190, %191 : vector<48x1xf32>
    %193 = vector.broadcast %192 : vector<48x1xf32> to vector<48x32xf32>
    %194 = arith.subf %188, %193 : vector<48x32xf32>
    %195 = arith.mulf %194, %194 : vector<48x32xf32>
    %cst_75 = arith.constant dense<0.000000e+00> : vector<48xf32>
    %196 = vector.multi_reduction <add>, %195, %cst_75 [1] : vector<48x32xf32> to vector<48xf32>
    %197 = vector.shape_cast %196 : vector<48xf32> to vector<48x1xf32>
    %cst_76 = arith.constant 3.200000e+01 : f32
    %198 = vector.broadcast %cst_76 : f32 to vector<48x1xf32>
    %199 = arith.divf %197, %198 : vector<48x1xf32>
    %cst_77 = arith.constant 9.99999997E-7 : f32
    %200 = vector.broadcast %cst_77 : f32 to vector<48x1xf32>
    %201 = arith.addf %199, %200 : vector<48x1xf32>
    %202 = math.rsqrt %201 : vector<48x1xf32>
    %203 = vector.broadcast %202 : vector<48x1xf32> to vector<48x32xf32>
    %204 = arith.mulf %194, %203 : vector<48x32xf32>
    %c0_78 = arith.constant 0 : index
    %c32 = arith.constant 32 : index
    %c0_79 = arith.constant 0 : index
    %205 = vector.load %arg3[%c0_78, %c32, %c0_79] : memref<2x64x128xf32, #tpu.memory_space<vmem>>, vector<1x32x128xf32>
    %206 = vector.shape_cast %205 : vector<1x32x128xf32> to vector<32x128xf32>
    %cst_80 = arith.constant dense<0.000000e+00> : vector<48x128xf32>
    %207 = tpu.matmul %204, %206, %cst_80 {dimension_numbers = #tpu.dot_dimension_numbers<[1], [0], [0], [1], [0, 0, 1, 1], [], []>} : vector<48x32xf32>, vector<32x128xf32>, vector<48x128xf32> -> vector<48x128xf32>
    %c0_81 = arith.constant 0 : index
    %c1 = arith.constant 1 : index
    %c0_82 = arith.constant 0 : index
    %208 = vector.load %arg4[%c0_81, %c1, %c0_82] : memref<2x2x128xf32, #tpu.memory_space<vmem>>, vector<1x1x128xf32>
    %209 = vector.shape_cast %208 : vector<1x1x128xf32> to vector<1x128xf32>
    %210 = vector.broadcast %209 : vector<1x128xf32> to vector<48x128xf32>
    %211 = arith.addf %207, %210 : vector<48x128xf32>
    %212 = arith.mulf %211, %211 : vector<48x128xf32>
    %213 = arith.mulf %211, %212 : vector<48x128xf32>
    %cst_83 = arith.constant 4.471500e-02 : f32
    %214 = vector.broadcast %cst_83 : f32 to vector<48x128xf32>
    %215 = arith.mulf %214, %213 : vector<48x128xf32>
    %216 = arith.addf %211, %215 : vector<48x128xf32>
    %cst_84 = arith.constant 0.797884583 : f32
    %217 = vector.broadcast %cst_84 : f32 to vector<48x128xf32>
    %218 = arith.mulf %217, %216 : vector<48x128xf32>
    %219 = math.tanh %218 : vector<48x128xf32>
    %cst_85 = arith.constant 1.000000e+00 : f32
    %220 = vector.broadcast %cst_85 : f32 to vector<48x128xf32>
    %221 = arith.addf %220, %219 : vector<48x128xf32>
    %cst_86 = arith.constant 5.000000e-01 : f32
    %222 = vector.broadcast %cst_86 : f32 to vector<48x128xf32>
    %223 = arith.mulf %222, %221 : vector<48x128xf32>
    %224 = arith.mulf %211, %223 : vector<48x128xf32>
    %c0_87 = arith.constant 0 : index
    %c32_88 = arith.constant 32 : index
    %c0_89 = arith.constant 0 : index
    %225 = vector.load %arg5[%c0_87, %c32_88, %c0_89] : memref<2x160x32xf32, #tpu.memory_space<vmem>>, vector<1x128x32xf32>
    %226 = vector.shape_cast %225 : vector<1x128x32xf32> to vector<128x32xf32>
    %cst_90 = arith.constant dense<0.000000e+00> : vector<48x32xf32>
    %227 = tpu.matmul %224, %226, %cst_90 {dimension_numbers = #tpu.dot_dimension_numbers<[1], [0], [0], [1], [0, 0, 1, 1], [], []>} : vector<48x128xf32>, vector<128x32xf32>, vector<48x32xf32> -> vector<48x32xf32>
    %228 = arith.addf %188, %227 : vector<48x32xf32>
    %c0_91 = arith.constant 0 : index
    %c1_92 = arith.constant 1 : index
    %c0_93 = arith.constant 0 : index
    %229 = vector.load %arg6[%c0_91, %c1_92, %c0_93] : memref<2x2x32xf32, #tpu.memory_space<vmem>>, vector<1x1x32xf32>
    %230 = vector.shape_cast %229 : vector<1x1x32xf32> to vector<1x32xf32>
    %231 = vector.broadcast %230 : vector<1x32xf32> to vector<48x32xf32>
    %232 = arith.addf %228, %231 : vector<48x32xf32>
    %cst_94 = arith.constant dense<0.000000e+00> : vector<48xf32>
    %233 = vector.multi_reduction <add>, %232, %cst_94 [1] : vector<48x32xf32> to vector<48xf32>
    %234 = vector.shape_cast %233 : vector<48xf32> to vector<48x1xf32>
    %cst_95 = arith.constant 3.200000e+01 : f32
    %235 = vector.broadcast %cst_95 : f32 to vector<48x1xf32>
    %236 = arith.divf %234, %235 : vector<48x1xf32>
    %237 = vector.broadcast %236 : vector<48x1xf32> to vector<48x32xf32>
    %238 = arith.subf %232, %237 : vector<48x32xf32>
    %239 = arith.mulf %238, %238 : vector<48x32xf32>
    %cst_96 = arith.constant dense<0.000000e+00> : vector<48xf32>
    %240 = vector.multi_reduction <add>, %239, %cst_96 [1] : vector<48x32xf32> to vector<48xf32>
    %241 = vector.shape_cast %240 : vector<48xf32> to vector<48x1xf32>
    %cst_97 = arith.constant 3.200000e+01 : f32
    %242 = vector.broadcast %cst_97 : f32 to vector<48x1xf32>
    %243 = arith.divf %241, %242 : vector<48x1xf32>
    %cst_98 = arith.constant 9.99999997E-7 : f32
    %244 = vector.broadcast %cst_98 : f32 to vector<48x1xf32>
    %245 = arith.addf %243, %244 : vector<48x1xf32>
    %246 = math.rsqrt %245 : vector<48x1xf32>
    %247 = vector.broadcast %246 : vector<48x1xf32> to vector<48x32xf32>
    %248 = arith.mulf %238, %247 : vector<48x32xf32>
    %c1_99 = arith.constant 1 : index
    %c0_100 = arith.constant 0 : index
    %c0_101 = arith.constant 0 : index
    %249 = vector.load %arg3[%c1_99, %c0_100, %c0_101] : memref<2x64x128xf32, #tpu.memory_space<vmem>>, vector<1x32x128xf32>
    %250 = vector.shape_cast %249 : vector<1x32x128xf32> to vector<32x128xf32>
    %cst_102 = arith.constant dense<0.000000e+00> : vector<48x128xf32>
    %251 = tpu.matmul %248, %250, %cst_102 {dimension_numbers = #tpu.dot_dimension_numbers<[1], [0], [0], [1], [0, 0, 1, 1], [], []>} : vector<48x32xf32>, vector<32x128xf32>, vector<48x128xf32> -> vector<48x128xf32>
    %c1_103 = arith.constant 1 : index
    %c0_104 = arith.constant 0 : index
    %c0_105 = arith.constant 0 : index
    %252 = vector.load %arg4[%c1_103, %c0_104, %c0_105] : memref<2x2x128xf32, #tpu.memory_space<vmem>>, vector<1x1x128xf32>
    %253 = vector.shape_cast %252 : vector<1x1x128xf32> to vector<1x128xf32>
    %254 = vector.broadcast %253 : vector<1x128xf32> to vector<48x128xf32>
    %255 = arith.addf %251, %254 : vector<48x128xf32>
    %256 = vector.extract_strided_slice %255 {offsets = [0, 0], sizes = [24, 128], strides = [1, 1]} : vector<48x128xf32> to vector<24x128xf32>
    %257 = vector.extract_strided_slice %256 {offsets = [0, 0], sizes = [24, 8], strides = [1, 1]} : vector<24x128xf32> to vector<24x8xf32>
    %258 = vector.extract_strided_slice %256 {offsets = [0, 32], sizes = [24, 8], strides = [1, 1]} : vector<24x128xf32> to vector<24x8xf32>
    %259 = vector.extract_strided_slice %256 {offsets = [0, 64], sizes = [24, 8], strides = [1, 1]} : vector<24x128xf32> to vector<24x8xf32>
    %cst_106 = arith.constant dense<0.000000e+00> : vector<24x24xf32>
    %260 = tpu.matmul %257, %258, %cst_106 {dimension_numbers = #tpu.dot_dimension_numbers<[1], [1], [0], [0], [0, 0, 1, 0], [], []>} : vector<24x8xf32>, vector<24x8xf32>, vector<24x24xf32> -> vector<24x24xf32>
    %261 = vector.broadcast %10 : vector<1x24xf32> to vector<24x24xf32>
    %262 = arith.addf %260, %261 : vector<24x24xf32>
    %cst_107 = arith.constant dense<0xFF800000> : vector<24xf32>
    %263 = vector.multi_reduction <maximumf>, %262, %cst_107 [1] : vector<24x24xf32> to vector<24xf32>
    %264 = vector.shape_cast %263 : vector<24xf32> to vector<24x1xf32>
    %265 = vector.broadcast %264 : vector<24x1xf32> to vector<24x24xf32>
    %266 = arith.subf %262, %265 : vector<24x24xf32>
    %267 = math.exp %266 : vector<24x24xf32>
    %cst_108 = arith.constant dense<0.000000e+00> : vector<24xf32>
    %268 = vector.multi_reduction <add>, %267, %cst_108 [1] : vector<24x24xf32> to vector<24xf32>
    %269 = vector.shape_cast %268 : vector<24xf32> to vector<24x1xf32>
    %270 = tpu.reciprocal %269 {approx = true} : vector<24x1xf32> -> vector<24x1xf32>
    %271 = vector.broadcast %270 : vector<24x1xf32> to vector<24x24xf32>
    %272 = arith.mulf %267, %271 : vector<24x24xf32>
    %cst_109 = arith.constant dense<0.000000e+00> : vector<24x8xf32>
    %273 = tpu.matmul %272, %259, %cst_109 {dimension_numbers = #tpu.dot_dimension_numbers<[1], [0], [0], [1], [0, 0, 1, 1], [], []>} : vector<24x24xf32>, vector<24x8xf32>, vector<24x8xf32> -> vector<24x8xf32>
    %c0_110 = arith.constant 0 : index
    %c0_111 = arith.constant 0 : index
    %274 = vector.load %arg10[%c0_110, %c0_111] : memref<48x32xf32, #tpu.memory_space<vmem>>, vector<24x8xf32>
    tpu.vector_store %arg10[%c0_110, %c0_111], %273 {strides = array<i32>} : memref<48x32xf32, #tpu.memory_space<vmem>>, vector<24x8xf32>,
    %275 = vector.extract_strided_slice %256 {offsets = [0, 8], sizes = [24, 8], strides = [1, 1]} : vector<24x128xf32> to vector<24x8xf32>
    %276 = vector.extract_strided_slice %256 {offsets = [0, 40], sizes = [24, 8], strides = [1, 1]} : vector<24x128xf32> to vector<24x8xf32>
    %277 = vector.extract_strided_slice %256 {offsets = [0, 72], sizes = [24, 8], strides = [1, 1]} : vector<24x128xf32> to vector<24x8xf32>
    %cst_112 = arith.constant dense<0.000000e+00> : vector<24x24xf32>
    %278 = tpu.matmul %275, %276, %cst_112 {dimension_numbers = #tpu.dot_dimension_numbers<[1], [1], [0], [0], [0, 0, 1, 0], [], []>} : vector<24x8xf32>, vector<24x8xf32>, vector<24x24xf32> -> vector<24x24xf32>
    %279 = vector.broadcast %10 : vector<1x24xf32> to vector<24x24xf32>
    %280 = arith.addf %278, %279 : vector<24x24xf32>
    %cst_113 = arith.constant dense<0xFF800000> : vector<24xf32>
    %281 = vector.multi_reduction <maximumf>, %280, %cst_113 [1] : vector<24x24xf32> to vector<24xf32>
    %282 = vector.shape_cast %281 : vector<24xf32> to vector<24x1xf32>
    %283 = vector.broadcast %282 : vector<24x1xf32> to vector<24x24xf32>
    %284 = arith.subf %280, %283 : vector<24x24xf32>
    %285 = math.exp %284 : vector<24x24xf32>
    %cst_114 = arith.constant dense<0.000000e+00> : vector<24xf32>
    %286 = vector.multi_reduction <add>, %285, %cst_114 [1] : vector<24x24xf32> to vector<24xf32>
    %287 = vector.shape_cast %286 : vector<24xf32> to vector<24x1xf32>
    %288 = tpu.reciprocal %287 {approx = true} : vector<24x1xf32> -> vector<24x1xf32>
    %289 = vector.broadcast %288 : vector<24x1xf32> to vector<24x24xf32>
    %290 = arith.mulf %285, %289 : vector<24x24xf32>
    %cst_115 = arith.constant dense<0.000000e+00> : vector<24x8xf32>
    %291 = tpu.matmul %290, %277, %cst_115 {dimension_numbers = #tpu.dot_dimension_numbers<[1], [0], [0], [1], [0, 0, 1, 1], [], []>} : vector<24x24xf32>, vector<24x8xf32>, vector<24x8xf32> -> vector<24x8xf32>
    %c0_116 = arith.constant 0 : index
    %c8_117 = arith.constant 8 : index
    %292 = vector.load %arg10[%c0_116, %c8_117] : memref<48x32xf32, #tpu.memory_space<vmem>>, vector<24x8xf32>
    tpu.vector_store %arg10[%c0_116, %c8_117], %291 {strides = array<i32>} : memref<48x32xf32, #tpu.memory_space<vmem>>, vector<24x8xf32>,
    %293 = vector.extract_strided_slice %256 {offsets = [0, 16], sizes = [24, 8], strides = [1, 1]} : vector<24x128xf32> to vector<24x8xf32>
    %294 = vector.extract_strided_slice %256 {offsets = [0, 48], sizes = [24, 8], strides = [1, 1]} : vector<24x128xf32> to vector<24x8xf32>
    %295 = vector.extract_strided_slice %256 {offsets = [0, 80], sizes = [24, 8], strides = [1, 1]} : vector<24x128xf32> to vector<24x8xf32>
    %cst_118 = arith.constant dense<0.000000e+00> : vector<24x24xf32>
    %296 = tpu.matmul %293, %294, %cst_118 {dimension_numbers = #tpu.dot_dimension_numbers<[1], [1], [0], [0], [0, 0, 1, 0], [], []>} : vector<24x8xf32>, vector<24x8xf32>, vector<24x24xf32> -> vector<24x24xf32>
    %297 = vector.broadcast %10 : vector<1x24xf32> to vector<24x24xf32>
    %298 = arith.addf %296, %297 : vector<24x24xf32>
    %cst_119 = arith.constant dense<0xFF800000> : vector<24xf32>
    %299 = vector.multi_reduction <maximumf>, %298, %cst_119 [1] : vector<24x24xf32> to vector<24xf32>
    %300 = vector.shape_cast %299 : vector<24xf32> to vector<24x1xf32>
    %301 = vector.broadcast %300 : vector<24x1xf32> to vector<24x24xf32>
    %302 = arith.subf %298, %301 : vector<24x24xf32>
    %303 = math.exp %302 : vector<24x24xf32>
    %cst_120 = arith.constant dense<0.000000e+00> : vector<24xf32>
    %304 = vector.multi_reduction <add>, %303, %cst_120 [1] : vector<24x24xf32> to vector<24xf32>
    %305 = vector.shape_cast %304 : vector<24xf32> to vector<24x1xf32>
    %306 = tpu.reciprocal %305 {approx = true} : vector<24x1xf32> -> vector<24x1xf32>
    %307 = vector.broadcast %306 : vector<24x1xf32> to vector<24x24xf32>
    %308 = arith.mulf %303, %307 : vector<24x24xf32>
    %cst_121 = arith.constant dense<0.000000e+00> : vector<24x8xf32>
    %309 = tpu.matmul %308, %295, %cst_121 {dimension_numbers = #tpu.dot_dimension_numbers<[1], [0], [0], [1], [0, 0, 1, 1], [], []>} : vector<24x24xf32>, vector<24x8xf32>, vector<24x8xf32> -> vector<24x8xf32>
    %c0_122 = arith.constant 0 : index
    %c16_123 = arith.constant 16 : index
    %310 = vector.load %arg10[%c0_122, %c16_123] : memref<48x32xf32, #tpu.memory_space<vmem>>, vector<24x8xf32>
    tpu.vector_store %arg10[%c0_122, %c16_123], %309 {strides = array<i32>} : memref<48x32xf32, #tpu.memory_space<vmem>>, vector<24x8xf32>,
    %311 = vector.extract_strided_slice %256 {offsets = [0, 24], sizes = [24, 8], strides = [1, 1]} : vector<24x128xf32> to vector<24x8xf32>
    %312 = vector.extract_strided_slice %256 {offsets = [0, 56], sizes = [24, 8], strides = [1, 1]} : vector<24x128xf32> to vector<24x8xf32>
    %313 = vector.extract_strided_slice %256 {offsets = [0, 88], sizes = [24, 8], strides = [1, 1]} : vector<24x128xf32> to vector<24x8xf32>
    %cst_124 = arith.constant dense<0.000000e+00> : vector<24x24xf32>
    %314 = tpu.matmul %311, %312, %cst_124 {dimension_numbers = #tpu.dot_dimension_numbers<[1], [1], [0], [0], [0, 0, 1, 0], [], []>} : vector<24x8xf32>, vector<24x8xf32>, vector<24x24xf32> -> vector<24x24xf32>
    %315 = vector.broadcast %10 : vector<1x24xf32> to vector<24x24xf32>
    %316 = arith.addf %314, %315 : vector<24x24xf32>
    %cst_125 = arith.constant dense<0xFF800000> : vector<24xf32>
    %317 = vector.multi_reduction <maximumf>, %316, %cst_125 [1] : vector<24x24xf32> to vector<24xf32>
    %318 = vector.shape_cast %317 : vector<24xf32> to vector<24x1xf32>
    %319 = vector.broadcast %318 : vector<24x1xf32> to vector<24x24xf32>
    %320 = arith.subf %316, %319 : vector<24x24xf32>
    %321 = math.exp %320 : vector<24x24xf32>
    %cst_126 = arith.constant dense<0.000000e+00> : vector<24xf32>
    %322 = vector.multi_reduction <add>, %321, %cst_126 [1] : vector<24x24xf32> to vector<24xf32>
    %323 = vector.shape_cast %322 : vector<24xf32> to vector<24x1xf32>
    %324 = tpu.reciprocal %323 {approx = true} : vector<24x1xf32> -> vector<24x1xf32>
    %325 = vector.broadcast %324 : vector<24x1xf32> to vector<24x24xf32>
    %326 = arith.mulf %321, %325 : vector<24x24xf32>
    %cst_127 = arith.constant dense<0.000000e+00> : vector<24x8xf32>
    %327 = tpu.matmul %326, %313, %cst_127 {dimension_numbers = #tpu.dot_dimension_numbers<[1], [0], [0], [1], [0, 0, 1, 1], [], []>} : vector<24x24xf32>, vector<24x8xf32>, vector<24x8xf32> -> vector<24x8xf32>
    %c0_128 = arith.constant 0 : index
    %c24_129 = arith.constant 24 : index
    %328 = vector.load %arg10[%c0_128, %c24_129] : memref<48x32xf32, #tpu.memory_space<vmem>>, vector<24x8xf32>
    tpu.vector_store %arg10[%c0_128, %c24_129], %327 {strides = array<i32>} : memref<48x32xf32, #tpu.memory_space<vmem>>, vector<24x8xf32>,
    %329 = vector.extract_strided_slice %255 {offsets = [24, 0], sizes = [24, 128], strides = [1, 1]} : vector<48x128xf32> to vector<24x128xf32>
    %330 = vector.extract_strided_slice %329 {offsets = [0, 0], sizes = [24, 8], strides = [1, 1]} : vector<24x128xf32> to vector<24x8xf32>
    %331 = vector.extract_strided_slice %329 {offsets = [0, 32], sizes = [24, 8], strides = [1, 1]} : vector<24x128xf32> to vector<24x8xf32>
    %332 = vector.extract_strided_slice %329 {offsets = [0, 64], sizes = [24, 8], strides = [1, 1]} : vector<24x128xf32> to vector<24x8xf32>
    %cst_130 = arith.constant dense<0.000000e+00> : vector<24x24xf32>
    %333 = tpu.matmul %330, %331, %cst_130 {dimension_numbers = #tpu.dot_dimension_numbers<[1], [1], [0], [0], [0, 0, 1, 0], [], []>} : vector<24x8xf32>, vector<24x8xf32>, vector<24x24xf32> -> vector<24x24xf32>
    %334 = vector.broadcast %10 : vector<1x24xf32> to vector<24x24xf32>
    %335 = arith.addf %333, %334 : vector<24x24xf32>
    %cst_131 = arith.constant dense<0xFF800000> : vector<24xf32>
    %336 = vector.multi_reduction <maximumf>, %335, %cst_131 [1] : vector<24x24xf32> to vector<24xf32>
    %337 = vector.shape_cast %336 : vector<24xf32> to vector<24x1xf32>
    %338 = vector.broadcast %337 : vector<24x1xf32> to vector<24x24xf32>
    %339 = arith.subf %335, %338 : vector<24x24xf32>
    %340 = math.exp %339 : vector<24x24xf32>
    %cst_132 = arith.constant dense<0.000000e+00> : vector<24xf32>
    %341 = vector.multi_reduction <add>, %340, %cst_132 [1] : vector<24x24xf32> to vector<24xf32>
    %342 = vector.shape_cast %341 : vector<24xf32> to vector<24x1xf32>
    %343 = tpu.reciprocal %342 {approx = true} : vector<24x1xf32> -> vector<24x1xf32>
    %344 = vector.broadcast %343 : vector<24x1xf32> to vector<24x24xf32>
    %345 = arith.mulf %340, %344 : vector<24x24xf32>
    %cst_133 = arith.constant dense<0.000000e+00> : vector<24x8xf32>
    %346 = tpu.matmul %345, %332, %cst_133 {dimension_numbers = #tpu.dot_dimension_numbers<[1], [0], [0], [1], [0, 0, 1, 1], [], []>} : vector<24x24xf32>, vector<24x8xf32>, vector<24x8xf32> -> vector<24x8xf32>
    %c24_134 = arith.constant 24 : index
    %c0_135 = arith.constant 0 : index
    %347 = vector.load %arg10[%c24_134, %c0_135] : memref<48x32xf32, #tpu.memory_space<vmem>>, vector<24x8xf32>
    tpu.vector_store %arg10[%c24_134, %c0_135], %346 {strides = array<i32>} : memref<48x32xf32, #tpu.memory_space<vmem>>, vector<24x8xf32>,
    %348 = vector.extract_strided_slice %329 {offsets = [0, 8], sizes = [24, 8], strides = [1, 1]} : vector<24x128xf32> to vector<24x8xf32>
    %349 = vector.extract_strided_slice %329 {offsets = [0, 40], sizes = [24, 8], strides = [1, 1]} : vector<24x128xf32> to vector<24x8xf32>
    %350 = vector.extract_strided_slice %329 {offsets = [0, 72], sizes = [24, 8], strides = [1, 1]} : vector<24x128xf32> to vector<24x8xf32>
    %cst_136 = arith.constant dense<0.000000e+00> : vector<24x24xf32>
    %351 = tpu.matmul %348, %349, %cst_136 {dimension_numbers = #tpu.dot_dimension_numbers<[1], [1], [0], [0], [0, 0, 1, 0], [], []>} : vector<24x8xf32>, vector<24x8xf32>, vector<24x24xf32> -> vector<24x24xf32>
    %352 = vector.broadcast %10 : vector<1x24xf32> to vector<24x24xf32>
    %353 = arith.addf %351, %352 : vector<24x24xf32>
    %cst_137 = arith.constant dense<0xFF800000> : vector<24xf32>
    %354 = vector.multi_reduction <maximumf>, %353, %cst_137 [1] : vector<24x24xf32> to vector<24xf32>
    %355 = vector.shape_cast %354 : vector<24xf32> to vector<24x1xf32>
    %356 = vector.broadcast %355 : vector<24x1xf32> to vector<24x24xf32>
    %357 = arith.subf %353, %356 : vector<24x24xf32>
    %358 = math.exp %357 : vector<24x24xf32>
    %cst_138 = arith.constant dense<0.000000e+00> : vector<24xf32>
    %359 = vector.multi_reduction <add>, %358, %cst_138 [1] : vector<24x24xf32> to vector<24xf32>
    %360 = vector.shape_cast %359 : vector<24xf32> to vector<24x1xf32>
    %361 = tpu.reciprocal %360 {approx = true} : vector<24x1xf32> -> vector<24x1xf32>
    %362 = vector.broadcast %361 : vector<24x1xf32> to vector<24x24xf32>
    %363 = arith.mulf %358, %362 : vector<24x24xf32>
    %cst_139 = arith.constant dense<0.000000e+00> : vector<24x8xf32>
    %364 = tpu.matmul %363, %350, %cst_139 {dimension_numbers = #tpu.dot_dimension_numbers<[1], [0], [0], [1], [0, 0, 1, 1], [], []>} : vector<24x24xf32>, vector<24x8xf32>, vector<24x8xf32> -> vector<24x8xf32>
    %c24_140 = arith.constant 24 : index
    %c8_141 = arith.constant 8 : index
    %365 = vector.load %arg10[%c24_140, %c8_141] : memref<48x32xf32, #tpu.memory_space<vmem>>, vector<24x8xf32>
    tpu.vector_store %arg10[%c24_140, %c8_141], %364 {strides = array<i32>} : memref<48x32xf32, #tpu.memory_space<vmem>>, vector<24x8xf32>,
    %366 = vector.extract_strided_slice %329 {offsets = [0, 16], sizes = [24, 8], strides = [1, 1]} : vector<24x128xf32> to vector<24x8xf32>
    %367 = vector.extract_strided_slice %329 {offsets = [0, 48], sizes = [24, 8], strides = [1, 1]} : vector<24x128xf32> to vector<24x8xf32>
    %368 = vector.extract_strided_slice %329 {offsets = [0, 80], sizes = [24, 8], strides = [1, 1]} : vector<24x128xf32> to vector<24x8xf32>
    %cst_142 = arith.constant dense<0.000000e+00> : vector<24x24xf32>
    %369 = tpu.matmul %366, %367, %cst_142 {dimension_numbers = #tpu.dot_dimension_numbers<[1], [1], [0], [0], [0, 0, 1, 0], [], []>} : vector<24x8xf32>, vector<24x8xf32>, vector<24x24xf32> -> vector<24x24xf32>
    %370 = vector.broadcast %10 : vector<1x24xf32> to vector<24x24xf32>
    %371 = arith.addf %369, %370 : vector<24x24xf32>
    %cst_143 = arith.constant dense<0xFF800000> : vector<24xf32>
    %372 = vector.multi_reduction <maximumf>, %371, %cst_143 [1] : vector<24x24xf32> to vector<24xf32>
    %373 = vector.shape_cast %372 : vector<24xf32> to vector<24x1xf32>
    %374 = vector.broadcast %373 : vector<24x1xf32> to vector<24x24xf32>
    %375 = arith.subf %371, %374 : vector<24x24xf32>
    %376 = math.exp %375 : vector<24x24xf32>
    %cst_144 = arith.constant dense<0.000000e+00> : vector<24xf32>
    %377 = vector.multi_reduction <add>, %376, %cst_144 [1] : vector<24x24xf32> to vector<24xf32>
    %378 = vector.shape_cast %377 : vector<24xf32> to vector<24x1xf32>
    %379 = tpu.reciprocal %378 {approx = true} : vector<24x1xf32> -> vector<24x1xf32>
    %380 = vector.broadcast %379 : vector<24x1xf32> to vector<24x24xf32>
    %381 = arith.mulf %376, %380 : vector<24x24xf32>
    %cst_145 = arith.constant dense<0.000000e+00> : vector<24x8xf32>
    %382 = tpu.matmul %381, %368, %cst_145 {dimension_numbers = #tpu.dot_dimension_numbers<[1], [0], [0], [1], [0, 0, 1, 1], [], []>} : vector<24x24xf32>, vector<24x8xf32>, vector<24x8xf32> -> vector<24x8xf32>
    %c24_146 = arith.constant 24 : index
    %c16_147 = arith.constant 16 : index
    %383 = vector.load %arg10[%c24_146, %c16_147] : memref<48x32xf32, #tpu.memory_space<vmem>>, vector<24x8xf32>
    tpu.vector_store %arg10[%c24_146, %c16_147], %382 {strides = array<i32>} : memref<48x32xf32, #tpu.memory_space<vmem>>, vector<24x8xf32>,
    %384 = vector.extract_strided_slice %329 {offsets = [0, 24], sizes = [24, 8], strides = [1, 1]} : vector<24x128xf32> to vector<24x8xf32>
    %385 = vector.extract_strided_slice %329 {offsets = [0, 56], sizes = [24, 8], strides = [1, 1]} : vector<24x128xf32> to vector<24x8xf32>
    %386 = vector.extract_strided_slice %329 {offsets = [0, 88], sizes = [24, 8], strides = [1, 1]} : vector<24x128xf32> to vector<24x8xf32>
    %cst_148 = arith.constant dense<0.000000e+00> : vector<24x24xf32>
    %387 = tpu.matmul %384, %385, %cst_148 {dimension_numbers = #tpu.dot_dimension_numbers<[1], [1], [0], [0], [0, 0, 1, 0], [], []>} : vector<24x8xf32>, vector<24x8xf32>, vector<24x24xf32> -> vector<24x24xf32>
    %388 = vector.broadcast %10 : vector<1x24xf32> to vector<24x24xf32>
    %389 = arith.addf %387, %388 : vector<24x24xf32>
    %cst_149 = arith.constant dense<0xFF800000> : vector<24xf32>
    %390 = vector.multi_reduction <maximumf>, %389, %cst_149 [1] : vector<24x24xf32> to vector<24xf32>
    %391 = vector.shape_cast %390 : vector<24xf32> to vector<24x1xf32>
    %392 = vector.broadcast %391 : vector<24x1xf32> to vector<24x24xf32>
    %393 = arith.subf %389, %392 : vector<24x24xf32>
    %394 = math.exp %393 : vector<24x24xf32>
    %cst_150 = arith.constant dense<0.000000e+00> : vector<24xf32>
    %395 = vector.multi_reduction <add>, %394, %cst_150 [1] : vector<24x24xf32> to vector<24xf32>
    %396 = vector.shape_cast %395 : vector<24xf32> to vector<24x1xf32>
    %397 = tpu.reciprocal %396 {approx = true} : vector<24x1xf32> -> vector<24x1xf32>
    %398 = vector.broadcast %397 : vector<24x1xf32> to vector<24x24xf32>
    %399 = arith.mulf %394, %398 : vector<24x24xf32>
    %cst_151 = arith.constant dense<0.000000e+00> : vector<24x8xf32>
    %400 = tpu.matmul %399, %386, %cst_151 {dimension_numbers = #tpu.dot_dimension_numbers<[1], [0], [0], [1], [0, 0, 1, 1], [], []>} : vector<24x24xf32>, vector<24x8xf32>, vector<24x8xf32> -> vector<24x8xf32>
    %c24_152 = arith.constant 24 : index
    %c24_153 = arith.constant 24 : index
    %401 = vector.load %arg10[%c24_152, %c24_153] : memref<48x32xf32, #tpu.memory_space<vmem>>, vector<24x8xf32>
    tpu.vector_store %arg10[%c24_152, %c24_153], %400 {strides = array<i32>} : memref<48x32xf32, #tpu.memory_space<vmem>>, vector<24x8xf32>,
    %c0_154 = arith.constant 0 : index
    %c0_155 = arith.constant 0 : index
    %402 = vector.load %arg10[%c0_154, %c0_155] : memref<48x32xf32, #tpu.memory_space<vmem>>, vector<48x32xf32>
    %c1_156 = arith.constant 1 : index
    %c0_157 = arith.constant 0 : index
    %c0_158 = arith.constant 0 : index
    %403 = vector.load %arg5[%c1_156, %c0_157, %c0_158] : memref<2x160x32xf32, #tpu.memory_space<vmem>>, vector<1x32x32xf32>
    %404 = vector.shape_cast %403 : vector<1x32x32xf32> to vector<32x32xf32>
    %cst_159 = arith.constant dense<0.000000e+00> : vector<48x32xf32>
    %405 = tpu.matmul %402, %404, %cst_159 {dimension_numbers = #tpu.dot_dimension_numbers<[1], [0], [0], [1], [0, 0, 1, 1], [], []>} : vector<48x32xf32>, vector<32x32xf32>, vector<48x32xf32> -> vector<48x32xf32>
    %c1_160 = arith.constant 1 : index
    %c0_161 = arith.constant 0 : index
    %c0_162 = arith.constant 0 : index
    %406 = vector.load %arg6[%c1_160, %c0_161, %c0_162] : memref<2x2x32xf32, #tpu.memory_space<vmem>>, vector<1x1x32xf32>
    %407 = vector.shape_cast %406 : vector<1x1x32xf32> to vector<1x32xf32>
    %408 = vector.broadcast %407 : vector<1x32xf32> to vector<48x32xf32>
    %409 = arith.addf %405, %408 : vector<48x32xf32>
    %410 = arith.addf %232, %409 : vector<48x32xf32>
    %cst_163 = arith.constant dense<0.000000e+00> : vector<48xf32>
    %411 = vector.multi_reduction <add>, %410, %cst_163 [1] : vector<48x32xf32> to vector<48xf32>
    %412 = vector.shape_cast %411 : vector<48xf32> to vector<48x1xf32>
    %cst_164 = arith.constant 3.200000e+01 : f32
    %413 = vector.broadcast %cst_164 : f32 to vector<48x1xf32>
    %414 = arith.divf %412, %413 : vector<48x1xf32>
    %415 = vector.broadcast %414 : vector<48x1xf32> to vector<48x32xf32>
    %416 = arith.subf %410, %415 : vector<48x32xf32>
    %417 = arith.mulf %416, %416 : vector<48x32xf32>
    %cst_165 = arith.constant dense<0.000000e+00> : vector<48xf32>
    %418 = vector.multi_reduction <add>, %417, %cst_165 [1] : vector<48x32xf32> to vector<48xf32>
    %419 = vector.shape_cast %418 : vector<48xf32> to vector<48x1xf32>
    %cst_166 = arith.constant 3.200000e+01 : f32
    %420 = vector.broadcast %cst_166 : f32 to vector<48x1xf32>
    %421 = arith.divf %419, %420 : vector<48x1xf32>
    %cst_167 = arith.constant 9.99999997E-7 : f32
    %422 = vector.broadcast %cst_167 : f32 to vector<48x1xf32>
    %423 = arith.addf %421, %422 : vector<48x1xf32>
    %424 = math.rsqrt %423 : vector<48x1xf32>
    %425 = vector.broadcast %424 : vector<48x1xf32> to vector<48x32xf32>
    %426 = arith.mulf %416, %425 : vector<48x32xf32>
    %c1_168 = arith.constant 1 : index
    %c32_169 = arith.constant 32 : index
    %c0_170 = arith.constant 0 : index
    %427 = vector.load %arg3[%c1_168, %c32_169, %c0_170] : memref<2x64x128xf32, #tpu.memory_space<vmem>>, vector<1x32x128xf32>
    %428 = vector.shape_cast %427 : vector<1x32x128xf32> to vector<32x128xf32>
    %cst_171 = arith.constant dense<0.000000e+00> : vector<48x128xf32>
    %429 = tpu.matmul %426, %428, %cst_171 {dimension_numbers = #tpu.dot_dimension_numbers<[1], [0], [0], [1], [0, 0, 1, 1], [], []>} : vector<48x32xf32>, vector<32x128xf32>, vector<48x128xf32> -> vector<48x128xf32>
    %c1_172 = arith.constant 1 : index
    %c1_173 = arith.constant 1 : index
    %c0_174 = arith.constant 0 : index
    %430 = vector.load %arg4[%c1_172, %c1_173, %c0_174] : memref<2x2x128xf32, #tpu.memory_space<vmem>>, vector<1x1x128xf32>
    %431 = vector.shape_cast %430 : vector<1x1x128xf32> to vector<1x128xf32>
    %432 = vector.broadcast %431 : vector<1x128xf32> to vector<48x128xf32>
    %433 = arith.addf %429, %432 : vector<48x128xf32>
    %434 = arith.mulf %433, %433 : vector<48x128xf32>
    %435 = arith.mulf %433, %434 : vector<48x128xf32>
    %cst_175 = arith.constant 4.471500e-02 : f32
    %436 = vector.broadcast %cst_175 : f32 to vector<48x128xf32>
    %437 = arith.mulf %436, %435 : vector<48x128xf32>
    %438 = arith.addf %433, %437 : vector<48x128xf32>
    %cst_176 = arith.constant 0.797884583 : f32
    %439 = vector.broadcast %cst_176 : f32 to vector<48x128xf32>
    %440 = arith.mulf %439, %438 : vector<48x128xf32>
    %441 = math.tanh %440 : vector<48x128xf32>
    %cst_177 = arith.constant 1.000000e+00 : f32
    %442 = vector.broadcast %cst_177 : f32 to vector<48x128xf32>
    %443 = arith.addf %442, %441 : vector<48x128xf32>
    %cst_178 = arith.constant 5.000000e-01 : f32
    %444 = vector.broadcast %cst_178 : f32 to vector<48x128xf32>
    %445 = arith.mulf %444, %443 : vector<48x128xf32>
    %446 = arith.mulf %433, %445 : vector<48x128xf32>
    %c1_179 = arith.constant 1 : index
    %c32_180 = arith.constant 32 : index
    %c0_181 = arith.constant 0 : index
    %447 = vector.load %arg5[%c1_179, %c32_180, %c0_181] : memref<2x160x32xf32, #tpu.memory_space<vmem>>, vector<1x128x32xf32>
    %448 = vector.shape_cast %447 : vector<1x128x32xf32> to vector<128x32xf32>
    %cst_182 = arith.constant dense<0.000000e+00> : vector<48x32xf32>
    %449 = tpu.matmul %446, %448, %cst_182 {dimension_numbers = #tpu.dot_dimension_numbers<[1], [0], [0], [1], [0, 0, 1, 1], [], []>} : vector<48x128xf32>, vector<128x32xf32>, vector<48x32xf32> -> vector<48x32xf32>
    %450 = arith.addf %410, %449 : vector<48x32xf32>
    %c1_183 = arith.constant 1 : index
    %c1_184 = arith.constant 1 : index
    %c0_185 = arith.constant 0 : index
    %451 = vector.load %arg6[%c1_183, %c1_184, %c0_185] : memref<2x2x32xf32, #tpu.memory_space<vmem>>, vector<1x1x32xf32>
    %452 = vector.shape_cast %451 : vector<1x1x32xf32> to vector<1x32xf32>
    %453 = vector.broadcast %452 : vector<1x32xf32> to vector<48x32xf32>
    %454 = arith.addf %450, %453 : vector<48x32xf32>
    %cst_186 = arith.constant dense<0.000000e+00> : vector<48xf32>
    %455 = vector.multi_reduction <add>, %454, %cst_186 [1] : vector<48x32xf32> to vector<48xf32>
    %456 = vector.shape_cast %455 : vector<48xf32> to vector<48x1xf32>
    %cst_187 = arith.constant 3.200000e+01 : f32
    %457 = vector.broadcast %cst_187 : f32 to vector<48x1xf32>
    %458 = arith.divf %456, %457 : vector<48x1xf32>
    %459 = vector.broadcast %458 : vector<48x1xf32> to vector<48x32xf32>
    %460 = arith.subf %454, %459 : vector<48x32xf32>
    %461 = arith.mulf %460, %460 : vector<48x32xf32>
    %cst_188 = arith.constant dense<0.000000e+00> : vector<48xf32>
    %462 = vector.multi_reduction <add>, %461, %cst_188 [1] : vector<48x32xf32> to vector<48xf32>
    %463 = vector.shape_cast %462 : vector<48xf32> to vector<48x1xf32>
    %cst_189 = arith.constant 3.200000e+01 : f32
    %464 = vector.broadcast %cst_189 : f32 to vector<48x1xf32>
    %465 = arith.divf %463, %464 : vector<48x1xf32>
    %cst_190 = arith.constant 9.99999997E-7 : f32
    %466 = vector.broadcast %cst_190 : f32 to vector<48x1xf32>
    %467 = arith.addf %465, %466 : vector<48x1xf32>
    %468 = math.rsqrt %467 : vector<48x1xf32>
    %469 = vector.broadcast %468 : vector<48x1xf32> to vector<48x32xf32>
    %470 = arith.mulf %460, %469 : vector<48x32xf32>
    %c0_191 = arith.constant 0 : index
    %c0_192 = arith.constant 0 : index
    %471 = vector.load %arg7[%c0_191, %c0_192] : memref<2x32xf32, #tpu.memory_space<vmem>>, vector<1x32xf32>
    %472 = vector.broadcast %471 : vector<1x32xf32> to vector<48x32xf32>
    %473 = arith.mulf %470, %472 : vector<48x32xf32>
    %c1_193 = arith.constant 1 : index
    %c0_194 = arith.constant 0 : index
    %474 = vector.load %arg7[%c1_193, %c0_194] : memref<2x32xf32, #tpu.memory_space<vmem>>, vector<1x32xf32>
    %475 = vector.broadcast %474 : vector<1x32xf32> to vector<48x32xf32>
    %476 = arith.addf %473, %475 : vector<48x32xf32>
    %477 = arith.mulf %476, %476 : vector<48x32xf32>
    %cst_195 = arith.constant dense<0.000000e+00> : vector<48xf32>
    %478 = vector.multi_reduction <add>, %477, %cst_195 [1] : vector<48x32xf32> to vector<48xf32>
    %479 = vector.shape_cast %478 : vector<48xf32> to vector<48x1xf32>
    %cst_196 = arith.constant 1.000000e-24 : f32
    %480 = vector.broadcast %cst_196 : f32 to vector<48x1xf32>
    %481 = arith.maximumf %479, %480 : vector<48x1xf32>
    %482 = math.rsqrt %481 : vector<48x1xf32>
    %483 = vector.broadcast %482 : vector<48x1xf32> to vector<48x32xf32>
    %484 = arith.mulf %476, %483 : vector<48x32xf32>
    %c0_197 = arith.constant 0 : index
    %c0_198 = arith.constant 0 : index
    %485 = vector.load %arg8[%c0_197, %c0_198] : memref<32x128xf32, #tpu.memory_space<vmem>>, vector<32x128xf32>
    %cst_199 = arith.constant dense<0.000000e+00> : vector<48x128xf32>
    %486 = tpu.matmul %484, %485, %cst_199 {dimension_numbers = #tpu.dot_dimension_numbers<[1], [0], [0], [1], [0, 0, 1, 1], [], []>} : vector<48x32xf32>, vector<32x128xf32>, vector<48x128xf32> -> vector<48x128xf32>
    %c0_200 = arith.constant 0 : index
    %c0_201 = arith.constant 0 : index
    %487 = vector.load %arg9[%c0_200, %c0_201] : memref<48x128xf32, #tpu.memory_space<vmem>>, vector<48x128xf32>
    tpu.vector_store %arg9[%c0_200, %c0_201], %486 {strides = array<i32>} : memref<48x128xf32, #tpu.memory_space<vmem>>, vector<48x128xf32>,
    return
  }
}

</mosaic_0001>

<bundles_post_ra>
// kernel: vision_transformer_forward.1
= control target key start
LH: loop header
LB: loop body
LE: loop exit
PB: predicated region body
PF: predicated region fallthrough
CT: control target
= control target key end

     0   :  { %vm50_vm0 = vcmask 392192   ;;  %vm168_vm1 = vcmask 261120   ;;  %s7386_s30 = smov 96   ;;  %vm7387_vm2 = vmmov 0   ;;  %s7388_s10 = smov 88   ;;  %vm379_vm3 = vcmask 64512   ;;  %s9571_s1 = inlined_call_operand.vmem [shape: f32[48,32], index: 1, kind: input, shape index: {}]   ;;  %s9572_s0 = inlined_call_operand.vmem [shape: f32[48,48], index: 0, kind: input, shape index: {}]   ;;  %s9573_s2 = inlined_call_operand.vmem [shape: f32[48,32], index: 2, kind: input, shape index: {}]   ;;  %s9574_s3 = inlined_call_operand.vmem [shape: f32[2,64,128], index: 3, kind: input, shape index: {}]   ;;  %s9575_s4 = inlined_call_operand.vmem [shape: f32[2,2,128], index: 4, kind: input, shape index: {}]   ;;  %s9576_s5 = inlined_call_operand.vmem [shape: f32[2,160,32], index: 5, kind: input, shape index: {}]   ;;  %s9577_s6 = inlined_call_operand.vmem [shape: f32[2,2,32], index: 6, kind: input, shape index: {}]   ;;  %s9578_s7 = inlined_call_operand.vmem [shape: f32[2,32], index: 7, kind: input, shape index: {}]   ;;  %s9579_s8 = inlined_call_operand.vmem [shape: f32[32,128], index: 8, kind: input, shape index: {}]   ;;  %s9580_s9 = inlined_call_operand.vmem [shape: f32[48,128], index: 9, kind: output, shape index: {}]  }
   0x1   :  { %v43_v0 = vld [vmem:[%s9571_s1 + $0x28] sm:$0xff]  ;;  %v42_v1 = vld [vmem:[%s9571_s1 + $0x20] sm:$0xff]  ;;  %v41_v2 = vld [vmem:[%s9571_s1 + $0x18] sm:$0xff]  ;;  %s7389_s11 = smov 120   ;;  %s7390_s12 = smov 80   ;;  %vm472_vm5 = vcmask 195584  }
   0x2   :  { %6372 = vmatprep.subr.mxu0 %v43_v0  ;;  %v32_v3 = vld [vmem:[%s9572_s0] sm:$0xff]  ;;  %v40_v4 = vld [vmem:[%s9571_s1 + $0x10] sm:$0xff]  ;;  %v39_v5 = vld [vmem:[%s9571_s1 + $0x8] sm:$0xff]  ;;  %s7391_s13 = smov 112   ;;  %s7392_s14 = smov 72   ;;  %vm854_vm6 = vcmask 130112  }
   0x3   :  { %6373 = vmatpush3.msra.mxu0 %v43_v0  ;;  %6384 = vmatprep.mubr.msk.f32.mxu0 %vm50_vm0, %v32_v3  ;;  %v38_v6 = vld [vmem:[%s9571_s1] sm:$0xff]  ;;  %v33_v7 = vld [vmem:[%s9572_s0 + $0x8] sm:$0xff]  ;;  %v34_v8 = vld [vmem:[%s9572_s0 + $0x10] sm:$0xff]  ;;  %s7393_s15 = smov 104   ;;  %s7394_s16 = smov 64   ;;  %vm1105_vm7 = vcmask 195712  }
   0x4   :  { %6374 = vmatprep.subr.mxu0 %v42_v1  ;;  %v35_v9 = vld [vmem:[%s9572_s0 + $0x18] sm:$0xff]  ;;  %v36_v10 = vld [vmem:[%s9572_s0 + $0x20] sm:$0xff]  ;;  %v37_v11 = vld [vmem:[%s9572_s0 + $0x28] sm:$0xff]  ;;  %s7395_s0 = smov 56   ;;  %s7396_s17 = smov 48   ;;  %vm1356_vm8 = vcmask 261312  }
   0x5   :  { %6375 = vmatpush3.msra.mxu0 %v42_v1  ;;  %v44_v13 = vld [vmem:[%s9573_s2] sm:$0xff]  ;;  %v45_v14 = vld [vmem:[%s9573_s2 + $0x8] sm:$0xff]  ;;  %v46_v18 = vld [vmem:[%s9573_s2 + $0x10] sm:$0xff]  ;;  %s7397_s18 = smov 40   ;;  %s7399_s19 = smov 8  }
   0x6   :  { %6376 = vmatprep.subr.mxu0 %v41_v2  ;;  %v47_v21 = vld [vmem:[%s9573_s2 + $0x18] sm:$0xff]  ;;  %v49_v24 = vld [vmem:[%s9573_s2 + $0x28] sm:$0xff]  ;;  %v48_v26 = vld [vmem:[%s9573_s2 + $0x20] sm:$0xff]  ;;  %s7400_s20 = smov 16   ;;  %s7401_s21 = smov 24  }
   0x7   :  { %6377 = vmatpush3.msra.mxu0 %v41_v2  ;;  %v251_v2 = vld [vmem:[%s9574_s3 + $0x18] sm:$0xff]  ;;  %v250_v3 = vld [vmem:[%s9574_s3 + $0x10] sm:$0xff] }
   0x8   :  { %6378 = vmatprep.subr.mxu0 %v40_v4  ;;  %6393 = vmatprep.subr.mxu1 %v251_v2 }
   0x9   :  { %6379 = vmatpush3.msra.mxu0 %v40_v4  ;;  %6394 = vmatpush3.msra.mxu1 %v251_v2  ;;  %v249_v4 = vld [vmem:[%s9574_s3 + $0x8] sm:$0xff] }
   0xa   :  { %6380 = vmatprep.subr.mxu0 %v39_v5  ;;  %6395 = vmatprep.subr.mxu1 %v250_v3 }
   0xb   :  { %6381 = vmatpush3.msra.mxu0 %v39_v5  ;;  %6396 = vmatpush3.msra.mxu1 %v250_v3  ;;  %v248_v5 = vld [vmem:[%s9574_s3] sm:$0xff] }
   0xc   :  { %6382 = vmatprep.subr.mxu0 %v38_v6  ;;  %6397 = vmatprep.subr.mxu1 %v249_v4 }
   0xd   :  { %6383 = vmatpush3.msra.mxu0 %v38_v6  ;;  %6398 = vmatpush3.msra.mxu1 %v249_v4 }
   0xe   :  { %6385 = vmatmul.mubr.msk.f32.vlgmr.msra.gmra.mxu0 %vm50_vm0, %v33_v7  ;;  %6399 = vmatprep.subr.mxu1 %v248_v5 }
   0xf   :  { %6387 = vmatprep.mubr.msk.f32.mxu0 %vm50_vm0, %v34_v8  ;;  %6400 = vmatpush3.msra.mxu1 %v248_v5 }
  0x12   :  { %6388 = vmatmul.mubr.msk.f32.gmra.mxu0 %vm50_vm0, %v35_v9 }
  0x13   :  { %6390 = vmatprep.mubr.msk.f32.mxu0 %vm50_vm0, %v36_v10 }
  0x16   :  { %6391 = vmatmul.mubr.msk.f32.gmra.mxu0 %vm50_vm0, %v37_v11 }
  0xce   :  { %v6386_v12 = vpop.f32.mrf.mxu0 }
  0xcf   :  { %v7505_v19 = vadd.f32 %v6386_v12, %v45_v14 }
  0xd0   :  { %v135_v15 = vpop.f32.mrf.mxu0 }
  0xd1   :  { %v7500_v16 = vadd.f32 %v135_v15, %v44_v13  ;;  %v172_v29 = vsel %vm168_vm1, %v7505_v19, 0.0 }
  0xd2   :  { %v6389_v17 = vpop.f32.mrf.mxu0 }
  0xd3   :  { %v169_v20 = vsel %vm168_vm1, %v7500_v16, 0.0  ;;  %v7520_v27 = vadd.f32 %v6389_v17, %v47_v21 }
  0xd4   :  { %v145_v22 = vpop.f32.mrf.mxu0  ;;  %170 = vadd.xlane.f32.xlu0 %v169_v20 }
  0xd5   :  { %v7512_v23 = vadd.f32 %v145_v22, %v46_v18  ;;  %v178_v33 = vsel %vm168_vm1, %v7520_v27, 0.0 }
  0xd6   :  { %v6392_v25 = vpop.f32.mrf.mxu0 }
  0xd7   :  { %v175_v28 = vsel %vm168_vm1, %v7512_v23, 0.0  ;;  %v7526_v31 = vadd.f32 %v6392_v25, %v49_v24 }
  0xd8   :  { %v155_v30 = vpop.f32.mrf.mxu0  ;;  %176 = vadd.xlane.f32.xlu1 %v175_v28  ;;  %173 = vadd.xlane.f32.xlu0 %v172_v29 }
  0xd9   :  { %v7528_v32 = vadd.f32 %v155_v30, %v48_v26  ;;  %v184_v35 = vsel %vm168_vm1, %v7526_v31, 0.0 }
  0xdb   :  { %v181_v34 = vsel %vm168_vm1, %v7528_v32, 0.0 }
  0xdc   :  { %179 = vadd.xlane.f32.xlu1 %v178_v33  ;;  %182 = vadd.xlane.f32.xlu0 %v181_v34 }
  0xe0   :  { %185 = vadd.xlane.f32.xlu1 %v184_v35 }
 0x15d   :  { %v171_v36 = vpop.xlane.xlu0 %170 }
 0x15e   :  { %v188_v37 = vmul.f32 0.03125, %v171_v36 }
 0x160   :  { %v7537_v38 = vsub.f32 %v7500_v16, %v188_v37 }
 0x161   :  { %v177_v39 = vpop.xlane.xlu1 %176  ;;  %v174_v40 = vpop.xlane.xlu0 %173 }
 0x162   :  { %v190_v41 = vmul.f32 0.03125, %v177_v39  ;;  %v189_v42 = vmul.f32 0.03125, %v174_v40  ;;  %v200_v43 = vmul.f32 %v7537_v38, %v7537_v38 }
 0x164   :  { %v7542_v44 = vsub.f32 %v7512_v23, %v190_v41  ;;  %v7545_v45 = vsub.f32 %v7505_v19, %v189_v42  ;;  %v206_v46 = vsel %vm168_vm1, %v200_v43, 0.0  ;;  %v7385_v42 = vmov 0.0   ;;  %v5826_v43 = vld [vmem:[%s9575_s4] ss:$0 sm:$0xff] }
 0x165   :  { %v180_v47 = vpop.xlane.xlu1 %179  ;;  %207 = vadd.xlane.f32.xlu0 %v206_v46  ;;  %v183_v48 = vpop.xlane.xlu0 %182  ;;  %6410 = vmatprep.subr.mxu1 %v7385_v42 }
 0x166   :  { %v191_v49 = vmul.f32 0.03125, %v180_v47  ;;  %v192_v50 = vmul.f32 0.03125, %v183_v48  ;;  %v202_v51 = vmul.f32 %v7542_v44, %v7542_v44  ;;  %v201_v52 = vmul.f32 %v7545_v45, %v7545_v45  ;;  %6425 = vmatprep.subr.mxu0 %v7385_v42  ;;  %6431 = vmatprep.mubr.msk.f32.mxu0 %vm7387_vm2, %v7385_v42 }
 0x168   :  { %v7553_v53 = vsub.f32 %v7520_v27, %v191_v49  ;;  %v7556_v54 = vsub.f32 %v7528_v32, %v192_v50  ;;  %v212_v55 = vsel %vm168_vm1, %v202_v51, 0.0  ;;  %v209_v56 = vsel %vm168_vm1, %v201_v52, 0.0 }
 0x169   :  { %v186_v57 = vpop.xlane.xlu1 %185  ;;  %213 = vadd.xlane.f32.xlu0 %v212_v55  ;;  %210 = vadd.xlane.f32.xlu1 %v209_v56 }
 0x16a   :  { %v193_v58 = vmul.f32 0.03125, %v186_v57  ;;  %v203_v59 = vmul.f32 %v7553_v53, %v7553_v53  ;;  %v204_v60 = vmul.f32 %v7556_v54, %v7556_v54 }
 0x16c   :  { %v199_v61 = vsub.f32 %v7526_v31, %v193_v58  ;;  %v215_v62 = vsel %vm168_vm1, %v203_v59, 0.0  ;;  %v218_v63 = vsel %vm168_vm1, %v204_v60, 0.0 }
 0x16d   :  { %216 = vadd.xlane.f32.xlu1 %v215_v62  ;;  %219 = vadd.xlane.f32.xlu0 %v218_v63 }
 0x16e   :  { %v205_v0 = vmul.f32 %v199_v61, %v199_v61 }
 0x170   :  { %v221_v1 = vsel %vm168_vm1, %v205_v0, 0.0 }
 0x171   :  { %222 = vadd.xlane.f32.xlu1 %v221_v1 }
 0x1ee   :  { %v208_v6 = vpop.xlane.xlu0 %207 }
 0x1ef   :  { %v224_v7 = vmul.f32 0.03125, %v208_v6 }
 0x1f1   :  { %v230_v8 = vadd.f32 1e-06, %v224_v7 }
 0x1f2   :  { %v211_v9 = vpop.xlane.xlu1 %210  ;;  %v214_v10 = vpop.xlane.xlu0 %213 }
 0x1f3   :  { %7097 = vrsqrt.f32 %v230_v8  ;;  %v225_v11 = vmul.f32 0.03125, %v211_v9  ;;  %v226_v12 = vmul.f32 0.03125, %v214_v10 }
 0x1f5   :  { %v231_v13 = vadd.f32 1e-06, %v225_v11  ;;  %v232_v14 = vadd.f32 1e-06, %v226_v12 }
 0x1f6   :  { %v217_v15 = vpop.xlane.xlu1 %216  ;;  %v220_v17 = vpop.xlane.xlu0 %219 }
 0x1f7   :  { %7099 = vrsqrt.f32 %v231_v13  ;;  %v227_v18 = vmul.f32 0.03125, %v217_v15  ;;  %v228_v20 = vmul.f32 0.03125, %v220_v17 }
 0x1f8   :  { %7101 = vrsqrt.f32 %v232_v14 }
 0x1f9   :  { %v233_v21 = vadd.f32 1e-06, %v227_v18  ;;  %v234_v22 = vadd.f32 1e-06, %v228_v20 }
 0x1fa   :  { %v223_v24 = vpop.xlane.xlu1 %222 }
 0x1fb   :  { %7103 = vrsqrt.f32 %v233_v21  ;;  %v229_v25 = vmul.f32 0.03125, %v223_v24 }
 0x1fc   :  { %7105 = vrsqrt.f32 %v234_v22 }
 0x1fd   :  { %v235_v26 = vadd.f32 1e-06, %v229_v25 }
 0x1ff   :  { %7107 = vrsqrt.f32 %v235_v26 }
 0x200   :  { %v7098_v28 = vpop.eup %7097 }
 0x201   :  { %v242_v29 = vmul.f32 %v7098_v28, %v7537_v38 }
 0x203   :  { %6401 = vmatprep.mubr.msk.f32.mxu1 %vm168_vm1, %v242_v29 }
 0x204   :  { %v7100_v30 = vpop.eup %7099 }
 0x205   :  { %v7102_v33 = vpop.eup %7101  ;;  %v243_v34 = vmul.f32 %v7100_v30, %v7545_v45 }
 0x206   :  { %v244_v35 = vmul.f32 %v7102_v33, %v7542_v44 }
 0x207   :  { %6402 = vmatmul.mubr.msk.f32.vlgmr.msra.gmra.mxu1 %vm168_vm1, %v243_v34 }
 0x208   :  { %v7104_v36 = vpop.eup %7103  ;;  %6404 = vmatprep.mubr.msk.f32.mxu1 %vm168_vm1, %v244_v35 }
 0x209   :  { %v7106_v37 = vpop.eup %7105  ;;  %v245_v39 = vmul.f32 %v7104_v36, %v7553_v53 }
 0x20a   :  { %v246_v40 = vmul.f32 %v7106_v37, %v7556_v54  ;;  %v164_v37 = vlaneseq }
 0x20b   :  { %6405 = vmatmul.mubr.msk.f32.gmra.mxu1 %vm168_vm1, %v245_v39 }
 0x20c   :  { %v7108_v38 = vpop.eup %7107  ;;  %6407 = vmatprep.mubr.msk.f32.mxu1 %vm168_vm1, %v246_v40  ;;  %v165_v39 = vand.u32 127, %v164_v37  ;;  %v7398_v40 = vmov -1e+30  }
 0x20d   :  { %v247_v41 = vmul.f32 %v7108_v38, %v199_v61 }
 0x20e   :  { %vm166_vm4 = vcmp.lt.s32.totalorder %v165_v39, 17 }
 0x20f   :  { %6408 = vmatmul.mubr.msk.f32.gmra.mxu1 %vm168_vm1, %v247_v41  ;;  %v7830_v38 = vsel %vm166_vm4, 0.0, %v7398_v40 }
 0x210   :  { %6416 = vmatprep.mubr.msk.f32.mxu1 %vm7387_vm2, %v7385_v42 }
 0x2c7   :  { %v6403_v44 = vpop.f32.mrf.mxu1 }
 0x2c8   :  { %v7596_v45 = vadd.f32 %v6403_v44, %v5826_v43 }
 0x2c9   :  { %v341_v46 = vpop.f32.mrf.mxu1 }
 0x2ca   :  { %375 = vrot.lane.b32.xlu1 %v7596_v45, %s7386_s30  ;;  %v7600_v48 = vadd.f32 %v5826_v43, %v341_v46 }
 0x2cb   :  { %v6406_v47 = vpop.f32.mrf.mxu1 }
 0x2cc   :  { %v7654_v55 = vadd.f32 %v6406_v47, %v5826_v43 }
 0x2cd   :  { %v351_v49 = vpop.f32.mrf.mxu1 }
 0x2ce   :  { %v7606_v50 = vadd.f32 %v5826_v43, %v351_v49  ;;  %373 = vrot.lane.b32.xlu1 %v7600_v48, %s7386_s30 }
 0x2cf   :  { %v6409_v51 = vpop.f32.mrf.mxu1 }
 0x2d0   :  { %377 = vrot.lane.b32.xlu0 %v7606_v50, %s7386_s30  ;;  %v7642_v52 = vadd.f32 %v6409_v51, %v5826_v43 }
 0x2d1   :  { %v361_v53 = vpop.f32.mrf.mxu1 }
 0x2d2   :  { %617 = vrot.lane.b32.xlu1 %v7606_v50, %s7388_s10  ;;  %v7648_v54 = vadd.f32 %v5826_v43, %v361_v53 }
 0x2d4   :  { %615 = vrot.lane.b32.xlu0 %v7596_v45, %s7388_s10 }
 0x2d6   :  { %613 = vrot.lane.b32.xlu1 %v7600_v48, %s7388_s10 }
 0x2d8   :  { %607 = vrot.lane.b32.xlu0 %v7600_v48, %s7389_s11 }
 0x2da   :  { %868 = vrot.lane.b32.xlu1 %v7606_v50, %s7390_s12 }
 0x2dc   :  { %609 = vrot.lane.b32.xlu0 %v7596_v45, %s7389_s11 }
 0x2de   :  { %866 = vrot.lane.b32.xlu1 %v7596_v45, %s7390_s12 }
 0x2e0   :  { %611 = vrot.lane.b32.xlu0 %v7606_v50, %s7389_s11 }
 0x2e2   :  { %864 = vrot.lane.b32.xlu1 %v7600_v48, %s7390_s12 }
 0x2e4   :  { %858 = vrot.lane.b32.xlu0 %v7600_v48, %s7391_s13 }
 0x2e6   :  { %1119 = vrot.lane.b32.xlu1 %v7606_v50, %s7392_s14 }
 0x2e8   :  { %860 = vrot.lane.b32.xlu0 %v7596_v45, %s7391_s13 }
 0x2ea   :  { %1117 = vrot.lane.b32.xlu1 %v7596_v45, %s7392_s14 }
 0x2ec   :  { %862 = vrot.lane.b32.xlu0 %v7606_v50, %s7391_s13 }
 0x2ee   :  { %1115 = vrot.lane.b32.xlu1 %v7600_v48, %s7392_s14 }
 0x2f0   :  { %1109 = vrot.lane.b32.xlu0 %v7600_v48, %s7393_s15 }
 0x2f2   :  { %1367 = vrot.lane.b32.xlu1 %v7642_v52, %s7386_s30 }
 0x2f4   :  { %1111 = vrot.lane.b32.xlu0 %v7596_v45, %s7393_s15 }
 0x2f6   :  { %1365 = vrot.lane.b32.xlu1 %v7648_v54, %s7386_s30 }
 0x2f8   :  { %1113 = vrot.lane.b32.xlu0 %v7606_v50, %s7393_s15 }
 0x2fa   :  { %1363 = vrot.lane.b32.xlu1 %v7654_v55, %s7386_s30 }
 0x2fc   :  { %1605 = vrot.lane.b32.xlu0 %v7642_v52, %s7388_s10 }
 0x2fe   :  { %1603 = vrot.lane.b32.xlu1 %v7648_v54, %s7388_s10 }
 0x300   :  { %1601 = vrot.lane.b32.xlu0 %v7654_v55, %s7388_s10 }
 0x302   :  { %1595 = vrot.lane.b32.xlu1 %v7654_v55, %s7389_s11 }
 0x304   :  { %1855 = vrot.lane.b32.xlu0 %v7642_v52, %s7390_s12 }
 0x306   :  { %1597 = vrot.lane.b32.xlu1 %v7648_v54, %s7389_s11 }
 0x308   :  { %1853 = vrot.lane.b32.xlu0 %v7648_v54, %s7390_s12 }
 0x30a   :  { %1599 = vrot.lane.b32.xlu1 %v7642_v52, %s7389_s11 }
 0x30c   :  { %1851 = vrot.lane.b32.xlu0 %v7654_v55, %s7390_s12 }
 0x30e   :  { %1845 = vrot.lane.b32.xlu1 %v7654_v55, %s7391_s13 }
 0x310   :  { %1847 = vrot.lane.b32.xlu0 %v7648_v54, %s7391_s13 }
 0x312   :  { %1849 = vrot.lane.b32.xlu1 %v7642_v52, %s7391_s13 }
 0x314   :  { %508 = vrot.lane.b32.xlu0 %v7596_v45, %s7394_s16 }
 0x316   :  { %510 = vrot.lane.b32.xlu1 %v7606_v50, %s7394_s16 }
 0x318   :  { %746 = vrot.lane.b32.xlu0 %v7596_v45, %s7395_s0 }
 0x31a   :  { %506 = vrot.lane.b32.xlu1 %v7600_v48, %s7394_s16 }
 0x31c   :  { %997 = vrot.lane.b32.xlu0 %v7596_v45, %s7396_s17 }
 0x31e   :  { %748 = vrot.lane.b32.xlu1 %v7606_v50, %s7395_s0 }
 0x320   :  { %1248 = vrot.lane.b32.xlu0 %v7596_v45, %s7397_s18 }
 0x322   :  { %744 = vrot.lane.b32.xlu1 %v7600_v48, %s7395_s0 }
 0x324   :  { %1496 = vrot.lane.b32.xlu0 %v7648_v54, %s7394_s16 }
 0x326   :  { %999 = vrot.lane.b32.xlu1 %v7606_v50, %s7396_s17 }
 0x32a   :  { %995 = vrot.lane.b32.xlu1 %v7600_v48, %s7396_s17 }
 0x32e   :  { %1250 = vrot.lane.b32.xlu1 %v7606_v50, %s7397_s18 }
 0x332   :  { %1246 = vrot.lane.b32.xlu1 %v7600_v48, %s7397_s18 }
 0x336   :  { %1498 = vrot.lane.b32.xlu1 %v7642_v52, %s7394_s16 }
 0x33a   :  { %1494 = vrot.lane.b32.xlu1 %v7654_v55, %s7394_s16 }
 0x33c   :  { %v376_v56 = vpop.permute.xlu1 %375 }
 0x33e   :  { %1736 = vrot.lane.b32.xlu1 %v7642_v52, %s7395_s0 }
 0x340   :  { %v374_v57 = vpop.permute.xlu1 %373 }
 0x342   :  { %v378_v58 = vpop.permute.xlu0 %377 }
 0x343   :  { %6411 = vmatpush3.xpose.msk.msra.mxu1 %vm379_vm3, %v378_v58 }
 0x344   :  { %v618_v59 = vpop.permute.xlu1 %617  ;;  %6412 = vmatprep.subr.mxu1 %v7385_v42 }
 0x346   :  { %v616_v60 = vpop.permute.xlu0 %615 }
 0x347   :  { %6413 = vmatpush3.xpose.msk.msra.mxu1 %vm379_vm3, %v376_v56 }
 0x348   :  { %v614_v61 = vpop.permute.xlu1 %613  ;;  %6414 = vmatprep.subr.mxu1 %v7385_v42 }
 0x34a   :  { %v608_v62 = vpop.permute.xlu0 %607 }
 0x34b   :  { %6415 = vmatpush3.xpose.msk.msra.mxu1 %vm379_vm3, %v374_v57 }
 0x34c   :  { %v869_v63 = vpop.permute.xlu1 %868  ;;  %6440 = vmatprep.subr.mxu1 %v7385_v42 }
 0x34e   :  { %6417 = vmatmul.mubr.msk.f32.vlgmr.msra.gmra.mxu1 %vm379_vm3, %v7600_v48  ;;  %v610_v0 = vpop.permute.xlu0 %609 }
 0x34f   :  { %6441 = vmatpush3.xpose.msk.msra.mxu1 %vm379_vm3, %v618_v59  ;;  %6419 = vmatprep.mubr.msk.f32.mxu1 %vm7387_vm2, %v7385_v42 }
 0x350   :  { %v867_v1 = vpop.permute.xlu1 %866  ;;  %6442 = vmatprep.subr.mxu1 %v7385_v42 }
 0x352   :  { %6420 = vmatmul.mubr.msk.f32.gmra.mxu1 %vm379_vm3, %v7596_v45  ;;  %v612_v2 = vpop.permute.xlu0 %611 }
 0x353   :  { %6443 = vmatpush3.xpose.msk.msra.mxu1 %vm379_vm3, %v616_v60  ;;  %6422 = vmatprep.mubr.msk.f32.mxu1 %vm7387_vm2, %v7385_v42 }
 0x354   :  { %v865_v3 = vpop.permute.xlu1 %864  ;;  %6444 = vmatprep.subr.mxu1 %v7385_v42 }
 0x356   :  { %6423 = vmatmul.mubr.msk.f32.gmra.mxu1 %vm379_vm3, %v7606_v50  ;;  %v859_v4 = vpop.permute.xlu0 %858 }
 0x357   :  { %6445 = vmatpush3.xpose.msk.msra.mxu1 %vm379_vm3, %v614_v61  ;;  %6446 = vmatprep.mubr.msk.f32.mxu1 %vm7387_vm2, %v7385_v42 }
 0x358   :  { %v1120_v5 = vpop.permute.xlu1 %1119  ;;  %6470 = vmatprep.subr.mxu1 %v7385_v42 }
 0x35a   :  { %6447 = vmatmul.mubr.msk.f32.vlgmr.msra.gmra.mxu1 %vm379_vm3, %v608_v62  ;;  %v861_v6 = vpop.permute.xlu0 %860 }
 0x35b   :  { %6471 = vmatpush3.xpose.msk.msra.mxu1 %vm379_vm3, %v869_v63  ;;  %6449 = vmatprep.mubr.msk.f32.mxu1 %vm7387_vm2, %v7385_v42 }
 0x35c   :  { %v1118_v7 = vpop.permute.xlu1 %1117  ;;  %6472 = vmatprep.subr.mxu1 %v7385_v42 }
 0x35e   :  { %6450 = vmatmul.mubr.msk.f32.gmra.mxu1 %vm379_vm3, %v610_v0  ;;  %v863_v8 = vpop.permute.xlu0 %862 }
 0x35f   :  { %6473 = vmatpush3.xpose.msk.msra.mxu1 %vm379_vm3, %v867_v1  ;;  %6452 = vmatprep.mubr.msk.f32.mxu1 %vm7387_vm2, %v7385_v42 }
 0x360   :  { %v1116_v9 = vpop.permute.xlu1 %1115  ;;  %6474 = vmatprep.subr.mxu1 %v7385_v42 }
 0x362   :  { %6453 = vmatmul.mubr.msk.f32.gmra.mxu1 %vm379_vm3, %v612_v2  ;;  %v1110_v10 = vpop.permute.xlu0 %1109 }
 0x363   :  { %6475 = vmatpush3.xpose.msk.msra.mxu1 %vm379_vm3, %v865_v3  ;;  %6476 = vmatprep.mubr.msk.f32.mxu1 %vm7387_vm2, %v7385_v42 }
 0x364   :  { %v1368_v11 = vpop.permute.xlu1 %1367  ;;  %6500 = vmatprep.subr.mxu1 %v7385_v42 }
 0x366   :  { %6477 = vmatmul.mubr.msk.f32.vlgmr.msra.gmra.mxu1 %vm379_vm3, %v859_v4  ;;  %v1112_v12 = vpop.permute.xlu0 %1111 }
 0x367   :  { %6501 = vmatpush3.xpose.msk.msra.mxu1 %vm379_vm3, %v1120_v5  ;;  %6479 = vmatprep.mubr.msk.f32.mxu1 %vm7387_vm2, %v7385_v42 }
 0x368   :  { %v1366_v13 = vpop.permute.xlu1 %1365  ;;  %6502 = vmatprep.subr.mxu1 %v7385_v42 }
 0x36a   :  { %6480 = vmatmul.mubr.msk.f32.gmra.mxu1 %vm379_vm3, %v861_v6  ;;  %v1114_v14 = vpop.permute.xlu0 %1113 }
 0x36b   :  { %6503 = vmatpush3.xpose.msk.msra.mxu1 %vm379_vm3, %v1118_v7  ;;  %6482 = vmatprep.mubr.msk.f32.mxu1 %vm7387_vm2, %v7385_v42 }
 0x36c   :  { %v1364_v15 = vpop.permute.xlu1 %1363  ;;  %6504 = vmatprep.subr.mxu1 %v7385_v42 }
 0x36e   :  { %6483 = vmatmul.mubr.msk.f32.gmra.mxu1 %vm379_vm3, %v863_v8  ;;  %v1606_v17 = vpop.permute.xlu0 %1605 }
 0x36f   :  { %6505 = vmatpush3.xpose.msk.msra.mxu1 %vm379_vm3, %v1116_v9  ;;  %6506 = vmatprep.mubr.msk.f32.mxu1 %vm7387_vm2, %v7385_v42 }
 0x370   :  { %v1604_v18 = vpop.permute.xlu1 %1603  ;;  %6530 = vmatprep.subr.mxu1 %v7385_v42 }
 0x372   :  { %6507 = vmatmul.mubr.msk.f32.vlgmr.msra.gmra.mxu1 %vm379_vm3, %v1110_v10  ;;  %v1602_v20 = vpop.permute.xlu0 %1601 }
 0x373   :  { %6531 = vmatpush3.xpose.msk.msra.mxu1 %vm379_vm3, %v1368_v11  ;;  %6509 = vmatprep.mubr.msk.f32.mxu1 %vm7387_vm2, %v7385_v42 }
 0x374   :  { %v1596_v21 = vpop.permute.xlu1 %1595  ;;  %6532 = vmatprep.subr.mxu1 %v7385_v42 }
 0x376   :  { %6510 = vmatmul.mubr.msk.f32.gmra.mxu1 %vm379_vm3, %v1112_v12  ;;  %v1856_v22 = vpop.permute.xlu0 %1855 }
 0x377   :  { %6533 = vmatpush3.xpose.msk.msra.mxu1 %vm379_vm3, %v1366_v13  ;;  %6512 = vmatprep.mubr.msk.f32.mxu1 %vm7387_vm2, %v7385_v42 }
 0x378   :  { %v1598_v24 = vpop.permute.xlu1 %1597  ;;  %6534 = vmatprep.subr.mxu1 %v7385_v42 }
 0x37a   :  { %6513 = vmatmul.mubr.msk.f32.gmra.mxu1 %vm379_vm3, %v1114_v14  ;;  %v1854_v25 = vpop.permute.xlu0 %1853 }
 0x37b   :  { %6535 = vmatpush3.xpose.msk.msra.mxu1 %vm379_vm3, %v1364_v15  ;;  %6536 = vmatprep.mubr.msk.f32.mxu1 %vm7387_vm2, %v7385_v42 }
 0x37c   :  { %v1600_v26 = vpop.permute.xlu1 %1599  ;;  %6560 = vmatprep.subr.mxu1 %v7385_v42 }
 0x37e   :  { %6537 = vmatmul.mubr.msk.f32.vlgmr.msra.gmra.mxu1 %vm379_vm3, %v7654_v55  ;;  %v1852_v28 = vpop.permute.xlu0 %1851 }
 0x37f   :  { %6561 = vmatpush3.xpose.msk.msra.mxu1 %vm379_vm3, %v1606_v17  ;;  %6539 = vmatprep.mubr.msk.f32.mxu1 %vm7387_vm2, %v7385_v42 }
 0x380   :  { %v1846_v29 = vpop.permute.xlu1 %1845  ;;  %6562 = vmatprep.subr.mxu1 %v7385_v42 }
 0x382   :  { %6540 = vmatmul.mubr.msk.f32.gmra.mxu1 %vm379_vm3, %v7648_v54  ;;  %v1848_v30 = vpop.permute.xlu0 %1847 }
 0x383   :  { %6563 = vmatpush3.xpose.msk.msra.mxu1 %vm379_vm3, %v1604_v18  ;;  %6542 = vmatprep.mubr.msk.f32.mxu1 %vm7387_vm2, %v7385_v42 }
 0x384   :  { %v1850_v33 = vpop.permute.xlu1 %1849  ;;  %6564 = vmatprep.subr.mxu1 %v7385_v42 }
 0x386   :  { %6543 = vmatmul.mubr.msk.f32.gmra.mxu1 %vm379_vm3, %v7642_v52  ;;  %v509_v35 = vpop.permute.xlu0 %508 }
 0x387   :  { %6565 = vmatpush3.xpose.msk.msra.mxu1 %vm379_vm3, %v1602_v20  ;;  %6566 = vmatprep.mubr.msk.f32.mxu1 %vm7387_vm2, %v7385_v42 }
 0x388   :  { %v511_v34 = vpop.permute.xlu1 %510  ;;  %6590 = vmatprep.subr.mxu1 %v7385_v42 }
 0x389   :  { %6426 = vmatpush3.msra.mxu0 %v511_v34 }
 0x38a   :  { %6427 = vmatprep.subr.mxu0 %v7385_v42  ;;  %6567 = vmatmul.mubr.msk.f32.vlgmr.msra.gmra.mxu1 %vm379_vm3, %v1596_v21 }
 0x38b   :  { %6428 = vmatpush3.msra.mxu0 %v509_v35  ;;  %6591 = vmatpush3.xpose.msk.msra.mxu1 %vm379_vm3, %v1856_v22 }
 0x38c   :  { %v507_v36 = vpop.permute.xlu1 %506  ;;  %6429 = vmatprep.subr.mxu0 %v7385_v42  ;;  %6569 = vmatprep.mubr.msk.f32.mxu1 %vm7387_vm2, %v7385_v42 }
 0x38d   :  { %6430 = vmatpush3.msra.mxu0 %v507_v36  ;;  %6592 = vmatprep.subr.mxu1 %v7385_v42 }
 0x38e   :  { %6570 = vmatmul.mubr.msk.f32.gmra.mxu1 %vm379_vm3, %v1598_v24  ;;  %6455 = vmatprep.subr.mxu0 %v7385_v42 }
 0x38f   :  { %6593 = vmatpush3.xpose.msk.msra.mxu1 %vm379_vm3, %v1854_v25  ;;  %6572 = vmatprep.mubr.msk.f32.mxu1 %vm7387_vm2, %v7385_v42 }
 0x390   :  { %6594 = vmatprep.subr.mxu1 %v7385_v42 }
 0x392   :  { %6573 = vmatmul.mubr.msk.f32.gmra.mxu1 %vm379_vm3, %v1600_v26 }
 0x393   :  { %6595 = vmatpush3.xpose.msk.msra.mxu1 %vm379_vm3, %v1852_v28  ;;  %6596 = vmatprep.mubr.msk.f32.mxu1 %vm7387_vm2, %v7385_v42 }
 0x394   :  { %7074 = vmatprep.subr.mxu1 %v7385_v42 }
 0x396   :  { %6597 = vmatmul.mubr.msk.f32.vlgmr.msra.gmra.mxu1 %vm379_vm3, %v1846_v29 }
 0x397   :  { %6599 = vmatprep.mubr.msk.f32.mxu1 %vm7387_vm2, %v7385_v42 }
 0x39a   :  { %6600 = vmatmul.mubr.msk.f32.gmra.mxu1 %vm379_vm3, %v1848_v30 }
 0x39b   :  { %6602 = vmatprep.mubr.msk.f32.mxu1 %vm7387_vm2, %v7385_v42 }
 0x39e   :  { %6603 = vmatmul.mubr.msk.f32.gmra.mxu1 %vm379_vm3, %v1850_v33 }
 0x39f   :  { %6629 = vmatprep.mubr.msk.f32.mxu1 %vm7387_vm2, %v7385_v42 }
 0x40e   :  { %v458_v41 = vpop.f32.mrf.mxu1 }
 0x40f   :  { %v7833_v43 = vadd.f32 %v458_v41, %v7830_v38 }
 0x410   :  { %v6418_v44 = vpop.f32.mrf.mxu1 }
 0x411   :  { %v473_v45 = vsel %vm472_vm5, %v7833_v43, -inf }
 0x412   :  { %474 = vmax.xlane.f32.xlu0 %v473_v45  ;;  %v463_v46 = vpop.f32.mrf.mxu1 }
 0x413   :  { %v7838_v47 = vadd.f32 %v463_v46, %v7830_v38 }
 0x414   :  { %v6421_v48 = vpop.f32.mrf.mxu1 }
 0x415   :  { %v476_v49 = vsel %vm472_vm5, %v7838_v47, -inf }
 0x416   :  { %477 = vmax.xlane.f32.xlu1 %v476_v49  ;;  %v468_v50 = vpop.f32.mrf.mxu1 }
 0x417   :  { %v7843_v51 = vadd.f32 %v468_v50, %v7830_v38 }
 0x418   :  { %v6424_v53 = vpop.f32.mrf.mxu1 }
 0x419   :  { %v479_v56 = vsel %vm472_vm5, %v7843_v51, -inf }
 0x41a   :  { %480 = vmax.xlane.f32.xlu0 %v479_v56  ;;  %v697_v57 = vpop.f32.mrf.mxu1 }
 0x41b   :  { %v7848_v58 = vadd.f32 %v697_v57, %v7830_v38 }
 0x41c   :  { %v6448_v59 = vpop.f32.mrf.mxu1 }
 0x41d   :  { %v711_v60 = vsel %vm472_vm5, %v7848_v58, -inf }
 0x41e   :  { %712 = vmax.xlane.f32.xlu0 %v711_v60  ;;  %v702_v61 = vpop.f32.mrf.mxu1 }
 0x41f   :  { %v7853_v62 = vadd.f32 %v702_v61, %v7830_v38 }
 0x420   :  { %v6451_v63 = vpop.f32.mrf.mxu1 }
 0x421   :  { %v714_v0 = vsel %vm472_vm5, %v7853_v62, -inf  ;;  %v7899_v63 = vpop.permute.xlu1 %748 }
 0x422   :  { %715 = vmax.xlane.f32.xlu0 %v714_v0  ;;  %v707_v1 = vpop.f32.mrf.mxu1 }
 0x423   :  { %v7858_v2 = vadd.f32 %v707_v1, %v7830_v38 }
 0x424   :  { %v6454_v3 = vpop.f32.mrf.mxu1 }
 0x425   :  { %v717_v4 = vsel %vm472_vm5, %v7858_v2, -inf }
 0x426   :  { %718 = vmax.xlane.f32.xlu1 %v717_v4  ;;  %v948_v5 = vpop.f32.mrf.mxu1 }
 0x427   :  { %v7863_v6 = vadd.f32 %v948_v5, %v7830_v38  ;;  %v7911_v5 = vpop.permute.xlu1 %744 }
 0x428   :  { %v6478_v7 = vpop.f32.mrf.mxu1 }
 0x429   :  { %v962_v8 = vsel %vm472_vm5, %v7863_v6, -inf }
 0x42a   :  { %963 = vmax.xlane.f32.xlu0 %v962_v8  ;;  %v953_v9 = vpop.f32.mrf.mxu1 }
 0x42b   :  { %v7868_v10 = vadd.f32 %v953_v9, %v7830_v38 }
 0x42c   :  { %v6481_v11 = vpop.f32.mrf.mxu1 }
 0x42d   :  { %v965_v12 = vsel %vm472_vm5, %v7868_v10, -inf }
 0x42e   :  { %966 = vmax.xlane.f32.xlu1 %v965_v12  ;;  %v958_v13 = vpop.f32.mrf.mxu1 }
 0x42f   :  { %v7873_v14 = vadd.f32 %v958_v13, %v7830_v38 }
 0x430   :  { %v6484_v15 = vpop.f32.mrf.mxu1 }
 0x431   :  { %v968_v17 = vsel %vm472_vm5, %v7873_v14, -inf }
 0x432   :  { %969 = vmax.xlane.f32.xlu0 %v968_v17  ;;  %v1199_v18 = vpop.f32.mrf.mxu1 }
 0x433   :  { %v7878_v20 = vadd.f32 %v1199_v18, %v7830_v38  ;;  %v7933_v18 = vpop.permute.xlu1 %999 }
 0x434   :  { %v6508_v21 = vpop.f32.mrf.mxu1 }
 0x435   :  { %v1213_v22 = vsel %vm472_vm5, %v7878_v20, -inf }
 0x436   :  { %1214 = vmax.xlane.f32.xlu1 %v1213_v22  ;;  %v1204_v24 = vpop.f32.mrf.mxu1 }
 0x437   :  { %v7883_v25 = vadd.f32 %v1204_v24, %v7830_v38 }
 0x438   :  { %v6511_v26 = vpop.f32.mrf.mxu1 }
 0x439   :  { %v1216_v28 = vsel %vm472_vm5, %v7883_v25, -inf }
 0x43a   :  { %1217 = vmax.xlane.f32.xlu0 %v1216_v28  ;;  %v1209_v29 = vpop.f32.mrf.mxu1  ;;  %v7945_v28 = vpop.permute.xlu1 %995 }
 0x43b   :  { %v7894_v60 = vadd.f32 %v1209_v29, %v7830_v38 }
 0x43c   :  { %v6514_v30 = vpop.f32.mrf.mxu1 }
 0x43d   :  { %v1219_v3 = vsel %vm472_vm5, %v7894_v60, -inf }
 0x43e   :  { %v1447_v33 = vpop.f32.mrf.mxu1 }
 0x43f   :  { %v7897_v61 = vadd.f32 %v1447_v33, %v7830_v38  ;;  %v7951_v33 = vpop.permute.xlu1 %1250 }
 0x440   :  { %v6538_v34 = vpop.f32.mrf.mxu1 }
 0x441   :  { %v1461_v4 = vsel %vm472_vm5, %v7897_v61, -inf  ;;  %v7953_v34 = vpop.permute.xlu0 %746 }
 0x442   :  { %v1452_v35 = vpop.f32.mrf.mxu1 }
 0x443   :  { %v7902_v0 = vadd.f32 %v1452_v35, %v7830_v38  ;;  %v7955_v35 = vpop.permute.xlu1 %1246 }
 0x444   :  { %v6541_v36 = vpop.f32.mrf.mxu1 }
 0x445   :  { %v1464_v9 = vsel %vm472_vm5, %v7902_v0, -inf  ;;  %v7957_v36 = vpop.permute.xlu0 %997 }
 0x446   :  { %v1457_v37 = vpop.f32.mrf.mxu1 }
 0x447   :  { %1732 = vrot.lane.b32.xlu1 %v7654_v55, %s7395_s0  ;;  %v7905_v1 = vadd.f32 %v1457_v37, %v7830_v38  ;;  %v7959_v37 = vpop.permute.xlu1 %1498 }
 0x448   :  { %v6544_v39 = vpop.f32.mrf.mxu1 }
 0x449   :  { %v1467_v11 = vsel %vm472_vm5, %v7905_v1, -inf  ;;  %v7963_v39 = vpop.permute.xlu0 %1248 }
 0x44a   :  { %v1685_v40 = vpop.f32.mrf.mxu1 }
 0x44b   :  { %1986 = vrot.lane.b32.xlu1 %v7642_v52, %s7396_s17  ;;  %v7914_v7 = vadd.f32 %v1685_v40, %v7830_v38  ;;  %v7965_v40 = vpop.permute.xlu1 %1494 }
 0x44c   :  { %v6568_v41 = vpop.f32.mrf.mxu1 }
 0x44d   :  { %v1699_v15 = vsel %vm472_vm5, %v7914_v7, -inf  ;;  %v7967_v41 = vpop.permute.xlu0 %1496 }
 0x44e   :  { %v1690_v44 = vpop.f32.mrf.mxu1 }
 0x44f   :  { %v7917_v8 = vadd.f32 %v1690_v44, %v7830_v38  ;;  %v7969_v44 = vpop.permute.xlu1 %1736 }
 0x450   :  { %1734 = vrot.lane.b32.xlu0 %v7648_v54, %s7395_s0  ;;  %v6571_v45 = vpop.f32.mrf.mxu1 }
 0x451   :  { %v1702_v17 = vsel %vm472_vm5, %v7917_v8, -inf }
 0x452   :  { %v1695_v46 = vpop.f32.mrf.mxu1 }
 0x453   :  { %v7924_v12 = vadd.f32 %v1695_v46, %v7830_v38 }
 0x454   :  { %v6574_v48 = vpop.f32.mrf.mxu1 }
 0x455   :  { %v1705_v24 = vsel %vm472_vm5, %v7924_v12, -inf }
 0x456   :  { %v1935_v49 = vpop.f32.mrf.mxu1 }
 0x457   :  { %v7927_v13 = vadd.f32 %v1935_v49, %v7830_v38 }
 0x458   :  { %v6598_v50 = vpop.f32.mrf.mxu1 }
 0x459   :  { %v1949_v26 = vsel %vm472_vm5, %v7927_v13, -inf }
 0x45a   :  { %v1940_v53 = vpop.f32.mrf.mxu1 }
 0x45b   :  { %v7936_v21 = vadd.f32 %v1940_v53, %v7830_v38 }
 0x45c   :  { %v6601_v56 = vpop.f32.mrf.mxu1 }
 0x45d   :  { %v1952_v29 = vsel %vm472_vm5, %v7936_v21, -inf }
 0x45e   :  { %v1945_v57 = vpop.f32.mrf.mxu1 }
 0x45f   :  { %v7939_v22 = vadd.f32 %v1945_v57, %v7830_v38 }
 0x460   :  { %v6604_v59 = vpop.f32.mrf.mxu1 }
 0x461   :  { %v1955_v30 = vsel %vm472_vm5, %v7939_v22, -inf }
 0x46f   :  { %1220 = vmax.xlane.f32.xlu1 %v1219_v3  ;;  %1462 = vmax.xlane.f32.xlu0 %v1461_v4 }
 0x473   :  { %1465 = vmax.xlane.f32.xlu1 %v1464_v9  ;;  %1468 = vmax.xlane.f32.xlu0 %v1467_v11 }
 0x477   :  { %1700 = vmax.xlane.f32.xlu1 %v1699_v15  ;;  %1703 = vmax.xlane.f32.xlu0 %v1702_v17 }
 0x47b   :  { %1706 = vmax.xlane.f32.xlu1 %v1705_v24  ;;  %1950 = vmax.xlane.f32.xlu0 %v1949_v26 }
 0x47f   :  { %1953 = vmax.xlane.f32.xlu1 %v1952_v29  ;;  %1956 = vmax.xlane.f32.xlu0 %v1955_v30 }
 0x490   :  { %1984 = vrot.lane.b32.xlu1 %v7648_v54, %s7396_s17 }
 0x49b   :  { %v475_v45 = vpop.xlane.xlu0 %474 }
 0x49c   :  { %v482_v46 = vsub.f32 %v7833_v43, %v475_v45 }
 0x49e   :  { %v485_v48 = vmul.f32 1.442695, %v482_v46 }
 0x49f   :  { %v478_v49 = vpop.xlane.xlu1 %477 }
 0x4a0   :  { %v483_v50 = vsub.f32 %v7838_v47, %v478_v49  ;;  %7109 = vpow2.f32 %v485_v48 }
 0x4a2   :  { %v487_v53 = vmul.f32 1.442695, %v483_v50 }
 0x4a3   :  { %v481_v56 = vpop.xlane.xlu0 %480 }
 0x4a4   :  { %7111 = vpow2.f32 %v487_v53  ;;  %v484_v57 = vsub.f32 %v7843_v51, %v481_v56 }
 0x4a6   :  { %v489_v59 = vmul.f32 1.442695, %v484_v57 }
 0x4a7   :  { %v713_v3 = vpop.xlane.xlu0 %712 }
 0x4a8   :  { %7113 = vpow2.f32 %v489_v59  ;;  %v720_v4 = vsub.f32 %v7848_v58, %v713_v3 }
 0x4aa   :  { %v723_v9 = vmul.f32 1.442695, %v720_v4 }
 0x4ab   :  { %v716_v11 = vpop.xlane.xlu0 %715 }
 0x4ac   :  { %7115 = vpow2.f32 %v723_v9  ;;  %v721_v43 = vsub.f32 %v7853_v62, %v716_v11 }
 0x4ad   :  { %v7976_v24 = vpop.eup %7109 }
 0x4ae   :  { %v725_v15 = vmul.f32 1.442695, %v721_v43  ;;  %v491_v30 = vsel %vm472_vm5, %v7976_v24, 0.0 }
 0x4af   :  { %v719_v17 = vpop.xlane.xlu1 %718 }
 0x4b0   :  { %7117 = vpow2.f32 %v725_v15  ;;  %v722_v47 = vsub.f32 %v7858_v2, %v719_v17 }
 0x4b1   :  { %v7979_v26 = vpop.eup %7111 }
 0x4b2   :  { %v727_v51 = vmul.f32 1.442695, %v722_v47  ;;  %v494_v29 = vsel %vm472_vm5, %v7979_v26, 0.0 }
 0x4b3   :  { %495 = vadd.xlane.f32.xlu0 %v494_v29  ;;  %v964_v58 = vpop.xlane.xlu0 %963 }
 0x4b4   :  { %7119 = vpow2.f32 %v727_v51  ;;  %v971_v62 = vsub.f32 %v7863_v6, %v964_v58  ;;  %492 = vadd.xlane.f32.xlu1 %v491_v30 }
 0x4b5   :  { %v7986_v45 = vpop.eup %7113 }
 0x4b6   :  { %v974_v46 = vmul.f32 1.442695, %v971_v62  ;;  %v497_v2 = vsel %vm472_vm5, %v7986_v45, 0.0 }
 0x4b7   :  { %v967_v48 = vpop.xlane.xlu1 %966 }
 0x4b8   :  { %7121 = vpow2.f32 %v974_v46  ;;  %v972_v49 = vsub.f32 %v7868_v10, %v967_v48  ;;  %498 = vadd.xlane.f32.xlu1 %v497_v2 }
 0x4b9   :  { %v7991_v50 = vpop.eup %7115 }
 0x4ba   :  { %v976_v53 = vmul.f32 1.442695, %v972_v49  ;;  %v729_v56 = vsel %vm472_vm5, %v7991_v50, 0.0 }
 0x4bb   :  { %730 = vadd.xlane.f32.xlu0 %v729_v56  ;;  %v970_v6 = vpop.xlane.xlu0 %969 }
 0x4bc   :  { %7123 = vpow2.f32 %v976_v53  ;;  %v973_v57 = vsub.f32 %v7873_v14, %v970_v6 }
 0x4bd   :  { %v7996_v59 = vpop.eup %7117 }
 0x4be   :  { %v978_v3 = vmul.f32 1.442695, %v973_v57  ;;  %v732_v4 = vsel %vm472_vm5, %v7996_v59, 0.0 }
 0x4bf   :  { %v1215_v9 = vpop.xlane.xlu1 %1214  ;;  %733 = vadd.xlane.f32.xlu1 %v732_v4 }
 0x4c0   :  { %7125 = vpow2.f32 %v978_v3  ;;  %v1222_v10 = vsub.f32 %v7878_v20, %v1215_v9 }
 0x4c1   :  { %v8001_v11 = vpop.eup %7119 }
 0x4c2   :  { %v1225_v43 = vmul.f32 1.442695, %v1222_v10  ;;  %v735_v15 = vsel %vm472_vm5, %v8001_v11, 0.0 }
 0x4c3   :  { %736 = vadd.xlane.f32.xlu0 %v735_v15  ;;  %v1218_v17 = vpop.xlane.xlu0 %1217  ;;  %v8026_v49 = vpop.permute.xlu1 %1732 }
 0x4c4   :  { %7127 = vpow2.f32 %v1225_v43  ;;  %v1223_v14 = vsub.f32 %v7883_v25, %v1218_v17 }
 0x4c5   :  { %v8006_v47 = vpop.eup %7121 }
 0x4c6   :  { %v1227_v51 = vmul.f32 1.442695, %v1223_v14  ;;  %v980_v29 = vsel %vm472_vm5, %v8006_v47, 0.0 }
 0x4c7   :  { %981 = vadd.xlane.f32.xlu0 %v980_v29  ;;  %v8028_v53 = vpop.permute.xlu1 %1986  ;;  %v8030_v56 = vpop.permute.xlu0 %1734 }
 0x4c8   :  { %7129 = vpow2.f32 %v1227_v51 }
 0x4c9   :  { %v8010_v20 = vpop.eup %7123 }
 0x4ca   :  { %v983_v58 = vsel %vm472_vm5, %v8010_v20, 0.0 }
 0x4cb   :  { %984 = vadd.xlane.f32.xlu1 %v983_v58 }
 0x4cd   :  { %v8014_v30 = vpop.eup %7125 }
 0x4ce   :  { %v986_v62 = vsel %vm472_vm5, %v8014_v30, 0.0 }
 0x4cf   :  { %987 = vadd.xlane.f32.xlu0 %v986_v62 }
 0x4d1   :  { %v8018_v25 = vpop.eup %7127 }
 0x4d2   :  { %v1231_v46 = vsel %vm472_vm5, %v8018_v25, 0.0 }
 0x4d3   :  { %1232 = vadd.xlane.f32.xlu0 %v1231_v46 }
 0x4d5   :  { %v8022_v2 = vpop.eup %7129 }
 0x4d6   :  { %v1234_v48 = vsel %vm472_vm5, %v8022_v2, 0.0 }
 0x4d7   :  { %1235 = vadd.xlane.f32.xlu1 %v1234_v48 }
 0x4f8   :  { %v1221_v6 = vpop.xlane.xlu1 %1220  ;;  %v1463_v57 = vpop.xlane.xlu0 %1462 }
 0x4f9   :  { %v1224_v3 = vsub.f32 %v7894_v60, %v1221_v6  ;;  %v1470_v4 = vsub.f32 %v7897_v61, %v1463_v57 }
 0x4fb   :  { %v1229_v9 = vmul.f32 1.442695, %v1224_v3  ;;  %v1473_v10 = vmul.f32 1.442695, %v1470_v4 }
 0x4fc   :  { %v1466_v43 = vpop.xlane.xlu1 %1465  ;;  %v1469_v15 = vpop.xlane.xlu0 %1468 }
 0x4fd   :  { %7131 = vpow2.f32 %v1229_v9  ;;  %v1471_v17 = vsub.f32 %v7902_v0, %v1466_v43  ;;  %v1472_v14 = vsub.f32 %v7905_v1, %v1469_v15 }
 0x4fe   :  { %7133 = vpow2.f32 %v1473_v10 }
 0x4ff   :  { %v1475_v51 = vmul.f32 1.442695, %v1471_v17  ;;  %v1477_v29 = vmul.f32 1.442695, %v1472_v14 }
 0x500   :  { %v1701_v58 = vpop.xlane.xlu1 %1700  ;;  %v1704_v62 = vpop.xlane.xlu0 %1703 }
 0x501   :  { %7135 = vpow2.f32 %v1475_v51  ;;  %v1708_v46 = vsub.f32 %v7914_v7, %v1701_v58  ;;  %v1709_v60 = vsub.f32 %v7917_v8, %v1704_v62 }
 0x502   :  { %7137 = vpow2.f32 %v1477_v29 }
 0x503   :  { %v1711_v61 = vmul.f32 1.442695, %v1708_v46  ;;  %v1713_v48 = vmul.f32 1.442695, %v1709_v60 }
 0x504   :  { %v1707_v17 = vpop.xlane.xlu1 %1706  ;;  %v1951_v29 = vpop.xlane.xlu0 %1950 }
 0x505   :  { %7139 = vpow2.f32 %v1713_v48  ;;  %v1710_v58 = vsub.f32 %v7924_v12, %v1707_v17  ;;  %v1958_v46 = vsub.f32 %v7927_v13, %v1951_v29 }
 0x506   :  { %7141 = vpow2.f32 %v1711_v61 }
 0x507   :  { %v1715_v60 = vmul.f32 1.442695, %v1710_v58 }
 0x508   :  { %v1954_v14 = vpop.xlane.xlu1 %1953  ;;  %v1957_v61 = vpop.xlane.xlu0 %1956 }
 0x509   :  { %v1959_v51 = vsub.f32 %v7936_v21, %v1954_v14 }
 0x50a   :  { %v8038_v6 = vpop.eup %7131 }
 0x50b   :  { %v1237_v0 = vsel %vm472_vm5, %v8038_v6, 0.0  ;;  %v8042_v1 = vpop.eup %7133  ;;  %v1963_v62 = vmul.f32 1.442695, %v1959_v51 }
 0x50c   :  { %1238 = vadd.xlane.f32.xlu0 %v1237_v0  ;;  %v1479_v8 = vsel %vm472_vm5, %v8042_v1, 0.0  ;;  %v8069_v48 = vpop.permute.xlu1 %1984  ;;  %v1961_v0 = vmul.f32 1.442695, %v1958_v46 }
 0x50d   :  { %7143 = vpow2.f32 %v1963_v62 }
 0x50e   :  { %v8044_v57 = vpop.eup %7135  ;;  %7145 = vpow2.f32 %v1715_v60 }
 0x50f   :  { %v1482_v7 = vsel %vm472_vm5, %v8044_v57, 0.0  ;;  %v8050_v3 = vpop.eup %7137 }
 0x510   :  { %1483 = vadd.xlane.f32.xlu1 %v1482_v7  ;;  %1480 = vadd.xlane.f32.xlu0 %v1479_v8  ;;  %v1485_v9 = vsel %vm472_vm5, %v8050_v3, 0.0  ;;  %v1960_v7 = vsub.f32 %v7939_v22, %v1957_v61 }
 0x512   :  { %v8052_v4 = vpop.eup %7139  ;;  %v1965_v21 = vmul.f32 1.442695, %v1960_v7 }
 0x513   :  { %v8056_v10 = vpop.eup %7141  ;;  %v1720_v43 = vsel %vm472_vm5, %v8052_v4, 0.0 }
 0x514   :  { %1486 = vadd.xlane.f32.xlu0 %v1485_v9  ;;  %1721 = vadd.xlane.f32.xlu1 %v1720_v43  ;;  %v1717_v15 = vsel %vm472_vm5, %v8056_v10, 0.0 }
 0x518   :  { %1718 = vadd.xlane.f32.xlu0 %v1717_v15 }
 0x51a   :  { %v8072_v13 = vpop.eup %7143 }
 0x51b   :  { %v8074_v15 = vpop.eup %7145  ;;  %v1970_v22 = vsel %vm472_vm5, %v8072_v13, 0.0 }
 0x51c   :  { %v1723_v62 = vsel %vm472_vm5, %v8074_v15, 0.0 }
 0x525   :  { %2105 = vrot.lane.b32.xlu1 %v7642_v52, %s7392_s14 }
 0x52e   :  { %1982 = vrot.lane.b32.xlu0 %v7654_v55, %s7396_s17 }
 0x53c   :  { %v496_v8 = vpop.xlane.xlu0 %495 }
 0x53d   :  { %v493_v9 = vpop.xlane.xlu1 %492 }
 0x53e   :  { %7147 = vrcp.f32 %v493_v9 }
 0x53f   :  { %7149 = vpow2.f32 %v1961_v0 }
 0x540   :  { %7151 = vrcp.f32 %v496_v8 }
 0x541   :  { %v499_v43 = vpop.xlane.xlu1 %498  ;;  %7153 = vpow2.f32 %v1965_v21 }
 0x542   :  { %7155 = vrcp.f32 %v499_v43 }
 0x544   :  { %v731_v12 = vpop.xlane.xlu0 %730 }
 0x545   :  { %7157 = vrcp.f32 %v731_v12 }
 0x548   :  { %v734_v17 = vpop.xlane.xlu1 %733 }
 0x549   :  { %1971 = vadd.xlane.f32.xlu1 %v1970_v22  ;;  %7159 = vrcp.f32 %v734_v17 }
 0x54b   :  { %v7148_v14 = vpop.eup %7147 }
 0x54c   :  { %v8078_v51 = vpop.eup %7149  ;;  %v503_v29 = vmul.f32 %v7148_v14, %v7976_v24  ;;  %v737_v58 = vpop.xlane.xlu0 %736 }
 0x54d   :  { %v7152_v46 = vpop.eup %7151  ;;  %1724 = vadd.xlane.f32.xlu0 %v1723_v62  ;;  %7161 = vrcp.f32 %v737_v58  ;;  %v1967_v24 = vsel %vm472_vm5, %v8078_v51, 0.0 }
 0x54e   :  { %6432 = vmatmul.mubr.msk.f32.vlgmr.msra.gmra.mxu0 %vm472_vm5, %v503_v29  ;;  %v8087_v60 = vpop.eup %7153  ;;  %v504_v61 = vmul.f32 %v7152_v46, %v7979_v26 }
 0x54f   :  { %6456 = vmatpush3.msra.mxu0 %v7899_v63  ;;  %6434 = vmatprep.mubr.msk.f32.mxu0 %vm7387_vm2, %v7385_v42  ;;  %v7156_v0 = vpop.eup %7155  ;;  %v1973_v63 = vsel %vm472_vm5, %v8087_v60, 0.0 }
 0x550   :  { %6457 = vmatprep.subr.mxu0 %v7385_v42  ;;  %v982_v7 = vpop.xlane.xlu0 %981  ;;  %v505_v26 = vmul.f32 %v7156_v0, %v7986_v45 }
 0x551   :  { %6458 = vmatpush3.msra.mxu0 %v7953_v34  ;;  %1968 = vadd.xlane.f32.xlu0 %v1967_v24  ;;  %7163 = vrcp.f32 %v982_v7 }
 0x552   :  { %6459 = vmatprep.subr.mxu0 %v7385_v42  ;;  %6435 = vmatmul.mubr.msk.f32.gmra.mxu0 %vm472_vm5, %v504_v61  ;;  %v7158_v34 = vpop.eup %7157 }
 0x553   :  { %6460 = vmatpush3.msra.mxu0 %v7911_v5  ;;  %6437 = vmatprep.mubr.msk.f32.mxu0 %vm7387_vm2, %v7385_v42  ;;  %v741_v5 = vmul.f32 %v7158_v34, %v7991_v50 }
 0x554   :  { %6485 = vmatprep.subr.mxu0 %v7385_v42  ;;  %v985_v8 = vpop.xlane.xlu1 %984 }
 0x555   :  { %1974 = vadd.xlane.f32.xlu0 %v1973_v63  ;;  %7165 = vrcp.f32 %v985_v8 }
 0x556   :  { %6438 = vmatmul.mubr.msk.f32.gmra.mxu0 %vm472_vm5, %v505_v26  ;;  %v7160_v21 = vpop.eup %7159 }
 0x557   :  { %6461 = vmatprep.mubr.msk.f32.mxu0 %vm7387_vm2, %v7385_v42  ;;  %v742_v45 = vmul.f32 %v7160_v21, %v7996_v59 }
 0x558   :  { %v988_v9 = vpop.xlane.xlu0 %987 }
 0x559   :  { %7167 = vrcp.f32 %v988_v9 }
 0x55a   :  { %6462 = vmatmul.mubr.msk.f32.vlgmr.msra.gmra.mxu0 %vm472_vm5, %v741_v5  ;;  %2101 = vrot.lane.b32.xlu1 %v7654_v55, %s7392_s14  ;;  %v7162_v43 = vpop.eup %7161 }
 0x55b   :  { %6486 = vmatpush3.msra.mxu0 %v7933_v18  ;;  %6464 = vmatprep.mubr.msk.f32.mxu0 %vm7387_vm2, %v7385_v42  ;;  %v743_v18 = vmul.f32 %v7162_v43, %v8001_v11 }
 0x55c   :  { %6487 = vmatprep.subr.mxu0 %v7385_v42  ;;  %v1233_v50 = vpop.xlane.xlu0 %1232 }
 0x55d   :  { %6488 = vmatpush3.msra.mxu0 %v7957_v36  ;;  %7169 = vrcp.f32 %v1233_v50 }
 0x55e   :  { %6489 = vmatprep.subr.mxu0 %v7385_v42  ;;  %6465 = vmatmul.mubr.msk.f32.gmra.mxu0 %vm472_vm5, %v742_v45  ;;  %v7164_v59 = vpop.eup %7163 }
 0x55f   :  { %2097 = vrot.lane.b32.xlu1 %v7648_v54, %s7393_s15  ;;  %6490 = vmatpush3.msra.mxu0 %v7945_v28  ;;  %v992_v12 = vmul.f32 %v7164_v59, %v8006_v47 }
 0x560   :  { %6467 = vmatprep.mubr.msk.f32.mxu0 %vm7387_vm2, %v7385_v42  ;;  %6515 = vmatprep.subr.mxu0 %v7385_v42  ;;  %v1236_v36 = vpop.xlane.xlu1 %1235 }
 0x561   :  { %7171 = vrcp.f32 %v1236_v36 }
 0x562   :  { %6468 = vmatmul.mubr.msk.f32.gmra.mxu0 %vm472_vm5, %v743_v18  ;;  %v7166_v17 = vpop.eup %7165 }
 0x563   :  { %6491 = vmatprep.mubr.msk.f32.mxu0 %vm7387_vm2, %v7385_v42  ;;  %v993_v28 = vmul.f32 %v7166_v17, %v8010_v20 }
 0x566   :  { %6492 = vmatmul.mubr.msk.f32.vlgmr.msra.gmra.mxu0 %vm472_vm5, %v992_v12  ;;  %v7168_v11 = vpop.eup %7167 }
 0x567   :  { %6516 = vmatpush3.msra.mxu0 %v7951_v33  ;;  %6494 = vmatprep.mubr.msk.f32.mxu0 %vm7387_vm2, %v7385_v42  ;;  %v994_v33 = vmul.f32 %v7168_v11, %v8014_v30 }
 0x568   :  { %6517 = vmatprep.subr.mxu0 %v7385_v42 }
 0x569   :  { %6518 = vmatpush3.msra.mxu0 %v7963_v39 }
 0x56a   :  { %6519 = vmatprep.subr.mxu0 %v7385_v42  ;;  %6495 = vmatmul.mubr.msk.f32.gmra.mxu0 %vm472_vm5, %v993_v28  ;;  %v7170_v47 = vpop.eup %7169 }
 0x56b   :  { %6520 = vmatpush3.msra.mxu0 %v7955_v35  ;;  %2103 = vrot.lane.b32.xlu0 %v7648_v54, %s7392_s14  ;;  %v1243_v35 = vmul.f32 %v7170_v47, %v8018_v25 }
 0x56c   :  { %6497 = vmatprep.mubr.msk.f32.mxu0 %vm7387_vm2, %v7385_v42  ;;  %6545 = vmatprep.subr.mxu0 %v7385_v42 }
 0x56e   :  { %6498 = vmatmul.mubr.msk.f32.gmra.mxu0 %vm472_vm5, %v994_v33  ;;  %v7172_v39 = vpop.eup %7171 }
 0x56f   :  { %2095 = vrot.lane.b32.xlu0 %v7654_v55, %s7393_s15  ;;  %6521 = vmatprep.mubr.msk.f32.mxu0 %vm7387_vm2, %v7385_v42  ;;  %v1244_v20 = vmul.f32 %v7172_v39, %v8022_v2 }
 0x572   :  { %6522 = vmatmul.mubr.msk.f32.vlgmr.msra.gmra.mxu0 %vm472_vm5, %v1243_v35 }
 0x573   :  { %6546 = vmatpush3.msra.mxu0 %v7959_v37  ;;  %2099 = vrot.lane.b32.xlu0 %v7642_v52, %s7393_s15 }
 0x574   :  { %6547 = vmatprep.subr.mxu0 %v7385_v42  ;;  %6524 = vmatprep.mubr.msk.f32.mxu0 %vm7387_vm2, %v7385_v42 }
 0x575   :  { %6548 = vmatpush3.msra.mxu0 %v7967_v41 }
 0x576   :  { %6549 = vmatprep.subr.mxu0 %v7385_v42  ;;  %6525 = vmatmul.mubr.msk.f32.gmra.mxu0 %vm472_vm5, %v1244_v20 }
 0x577   :  { %6550 = vmatpush3.msra.mxu0 %v7965_v40  ;;  %6527 = vmatprep.mubr.msk.f32.mxu0 %vm7387_vm2, %v7385_v42 }
 0x578   :  { %6575 = vmatprep.subr.mxu0 %v7385_v42 }
 0x595   :  { %v1239_v37 = vpop.xlane.xlu0 %1238 }
 0x596   :  { %7173 = vrcp.f32 %v1239_v37 }
 0x599   :  { %v1484_v30 = vpop.xlane.xlu1 %1483  ;;  %v1481_v25 = vpop.xlane.xlu0 %1480 }
 0x59a   :  { %7175 = vrcp.f32 %v1481_v25 }
 0x59b   :  { %7177 = vrcp.f32 %v1484_v30 }
 0x59d   :  { %v1487_v2 = vpop.xlane.xlu0 %1486  ;;  %v1722_v22 = vpop.xlane.xlu1 %1721 }
 0x59e   :  { %7179 = vrcp.f32 %v1487_v2 }
 0x5a1   :  { %v8166_v41 = vpop.permute.xlu1 %2105  ;;  %v1719_v14 = vpop.xlane.xlu0 %1718 }
 0x5a2   :  { %7077 = vmatpush3.xpose.msk.msra.mxu1 %vm379_vm3, %v8166_v41  ;;  %7181 = vrcp.f32 %v1719_v14 }
 0x5a3   :  { %v7174_v29 = vpop.eup %7173  ;;  %7075 = vmatprep.subr.mxu1 %v7385_v42  ;;  %7183 = vrcp.f32 %v1722_v22 }
 0x5a4   :  { %v1245_v40 = vmul.f32 %v7174_v29, %v8038_v6 }
 0x5a6   :  { %6528 = vmatmul.mubr.msk.f32.gmra.mxu0 %vm472_vm5, %v1245_v40 }
 0x5a7   :  { %6551 = vmatprep.mubr.msk.f32.mxu0 %vm7387_vm2, %v7385_v42  ;;  %v7176_v58 = vpop.eup %7175 }
 0x5a8   :  { %v1491_v62 = vmul.f32 %v7176_v58, %v8042_v1  ;;  %v7178_v46 = vpop.eup %7177 }
 0x5a9   :  { %v1492_v6 = vmul.f32 %v7178_v46, %v8044_v57 }
 0x5aa   :  { %6552 = vmatmul.mubr.msk.f32.vlgmr.msra.gmra.mxu0 %vm472_vm5, %v1491_v62 }
 0x5ab   :  { %6576 = vmatpush3.msra.mxu0 %v7969_v44  ;;  %6554 = vmatprep.mubr.msk.f32.mxu0 %vm7387_vm2, %v7385_v42  ;;  %v7180_v24 = vpop.eup %7179 }
 0x5ac   :  { %6577 = vmatprep.subr.mxu0 %v7385_v42  ;;  %v1493_v44 = vmul.f32 %v7180_v24, %v8050_v3  ;;  %v1983_v3 = vpop.permute.xlu0 %1982 }
 0x5ad   :  { %6578 = vmatpush3.msra.mxu0 %v8030_v56 }
 0x5ae   :  { %6579 = vmatprep.subr.mxu0 %v7385_v42  ;;  %6555 = vmatmul.mubr.msk.f32.gmra.mxu0 %vm472_vm5, %v1492_v6 }
 0x5af   :  { %6580 = vmatpush3.msra.mxu0 %v8026_v49  ;;  %6557 = vmatprep.mubr.msk.f32.mxu0 %vm7387_vm2, %v7385_v42  ;;  %v7182_v1 = vpop.eup %7181 }
 0x5b0   :  { %6605 = vmatprep.subr.mxu0 %v7385_v42  ;;  %v1729_v56 = vmul.f32 %v7182_v1, %v8056_v10  ;;  %v7184_v57 = vpop.eup %7183 }
 0x5b1   :  { %v1730_v49 = vmul.f32 %v7184_v57, %v8052_v4 }
 0x5b2   :  { %6558 = vmatmul.mubr.msk.f32.gmra.mxu0 %vm472_vm5, %v1493_v44 }
 0x5b3   :  { %6581 = vmatprep.mubr.msk.f32.mxu0 %vm7387_vm2, %v7385_v42 }
 0x5b6   :  { %6582 = vmatmul.mubr.msk.f32.vlgmr.msra.gmra.mxu0 %vm472_vm5, %v1729_v56 }
 0x5b7   :  { %6606 = vmatpush3.msra.mxu0 %v8028_v53  ;;  %6584 = vmatprep.mubr.msk.f32.mxu0 %vm7387_vm2, %v7385_v42 }
 0x5b8   :  { %6607 = vmatprep.subr.mxu0 %v7385_v42 }
 0x5b9   :  { %6608 = vmatpush3.msra.mxu0 %v8069_v48 }
 0x5ba   :  { %6609 = vmatprep.subr.mxu0 %v7385_v42  ;;  %6585 = vmatmul.mubr.msk.f32.gmra.mxu0 %vm472_vm5, %v1730_v49 }
 0x5bb   :  { %6610 = vmatpush3.msra.mxu0 %v1983_v3  ;;  %6587 = vmatprep.mubr.msk.f32.mxu0 %vm7387_vm2, %v7385_v42 }
 0x5bc   :  { %6620 = vmatprep.subr.mxu0 %v7385_v42 }
 0x5d2   :  { %v1972_v10 = vpop.xlane.xlu1 %1971 }
 0x5d6   :  { %v1725_v53 = vpop.xlane.xlu0 %1724  ;;  %v2102_v0 = vpop.permute.xlu1 %2101 }
 0x5d7   :  { %7185 = vrcp.f32 %v1725_v53 }
 0x5da   :  { %v1969_v61 = vpop.xlane.xlu0 %1968  ;;  %v2098_v8 = vpop.permute.xlu1 %2097 }
 0x5db   :  { %7187 = vrcp.f32 %v1969_v61 }
 0x5dc   :  { %7189 = vrcp.f32 %v1972_v10 }
 0x5de   :  { %v1975_v4 = vpop.xlane.xlu0 %1974 }
 0x5df   :  { %7191 = vrcp.f32 %v1975_v4 }
 0x5e2   :  { %v2104_v48 = vpop.permute.xlu0 %2103 }
 0x5e3   :  { %7078 = vmatpush3.xpose.msk.msra.mxu1 %vm379_vm3, %v2104_v48 }
 0x5e4   :  { %v7186_v7 = vpop.eup %7185  ;;  %7076 = vmatprep.subr.mxu1 %v7385_v42 }
 0x5e5   :  { %v1731_v63 = vmul.f32 %v7186_v7, %v8074_v15 }
 0x5e6   :  { %v2096_v26 = vpop.permute.xlu0 %2095 }
 0x5e7   :  { %6588 = vmatmul.mubr.msk.f32.gmra.mxu0 %vm472_vm5, %v1731_v63  ;;  %7079 = vmatpush3.xpose.msk.msra.mxu1 %vm379_vm3, %v2102_v0 }
 0x5e8   :  { %v7188_v34 = vpop.eup %7187  ;;  %6611 = vmatprep.mubr.msk.f32.mxu0 %vm7387_vm2, %v7385_v42 }
 0x5e9   :  { %v1979_v5 = vmul.f32 %v7188_v34, %v8078_v51  ;;  %v7190_v9 = vpop.eup %7189 }
 0x5ea   :  { %6630 = vmatmul.mubr.msk.f32.vlgmr.msra.gmra.mxu1 %vm379_vm3, %v2098_v8  ;;  %v2100_v15 = vpop.permute.xlu0 %2099  ;;  %v1980_v21 = vmul.f32 %v7190_v9, %v8072_v13 }
 0x5eb   :  { %6612 = vmatmul.mubr.msk.f32.vlgmr.msra.gmra.mxu0 %vm472_vm5, %v1979_v5  ;;  %6632 = vmatprep.mubr.msk.f32.mxu1 %vm7387_vm2, %v7385_v42 }
 0x5ec   :  { %6621 = vmatpush3.xpose.msk.msra.mxu0 %vm379_vm3, %v8166_v41  ;;  %6614 = vmatprep.mubr.msk.f32.mxu0 %vm7387_vm2, %v7385_v42  ;;  %v7192_v51 = vpop.eup %7191 }
 0x5ed   :  { %6622 = vmatprep.subr.mxu0 %v7385_v42  ;;  %v1981_v45 = vmul.f32 %v7192_v51, %v8087_v60 }
 0x5ee   :  { %6633 = vmatmul.mubr.msk.f32.gmra.mxu1 %vm379_vm3, %v2100_v15 }
 0x5ef   :  { %6615 = vmatmul.mubr.msk.f32.gmra.mxu0 %vm472_vm5, %v1980_v21 }
 0x5f0   :  { %6623 = vmatpush3.xpose.msk.msra.mxu0 %vm379_vm3, %v2104_v48  ;;  %6617 = vmatprep.mubr.msk.f32.mxu0 %vm7387_vm2, %v7385_v42 }
 0x5f1   :  { %6624 = vmatprep.subr.mxu0 %v7385_v42 }
 0x5f3   :  { %6618 = vmatmul.mubr.msk.f32.gmra.mxu0 %vm472_vm5, %v1981_v45 }
 0x5f4   :  { %6625 = vmatpush3.xpose.msk.msra.mxu0 %vm379_vm3, %v2102_v0  ;;  %6626 = vmatprep.mubr.msk.f32.mxu0 %vm7387_vm2, %v7385_v42 }
 0x5f5   :  { %6635 = vmatprep.subr.mxu0 %v7385_v42 }
 0x5f7   :  { %6627 = vmatmul.mubr.msk.f32.vlgmr.msra.gmra.mxu0 %vm379_vm3, %v2096_v26 }
 0x5f8   :  { %6641 = vmatprep.mubr.msk.f32.mxu0 %vm7387_vm2, %v7385_v42 }
 0x60e   :  { %v590_v13 = vpop.f32.mrf.mxu0 }
 0x60f   :  { %604 = vst.msk [vmem:[#allocation2] sm:$0xff] %vm379_vm3, %v590_v13 }
 0x610   :  { %v6433_v43 = vpop.f32.mrf.mxu0 }
 0x612   :  { %v595_v50 = vpop.f32.mrf.mxu0 }
 0x613   :  { %605 = vst.msk [vmem:[#allocation2 + $0x8] sm:$0xff] %vm379_vm3, %v595_v50 }
 0x614   :  { %v6436_v60 = vpop.f32.mrf.mxu0 }
 0x616   :  { %v600_v18 = vpop.f32.mrf.mxu0 }
 0x617   :  { %606 = vst.msk [vmem:[#allocation2 + $0x10] sm:$0xff] %vm379_vm3, %v600_v18 }
 0x618   :  { %v6439_v59 = vpop.f32.mrf.mxu0 }
 0x61a   :  { %v8242_v36 = vpop.f32.mrf.mxu0 }
 0x61c   :  { %v6463_v12 = vpop.f32.mrf.mxu0 }
 0x61e   :  { %v8244_v17 = vpop.f32.mrf.mxu0 }
 0x620   :  { %v6466_v28 = vpop.f32.mrf.mxu0 }
 0x622   :  { %v8246_v11 = vpop.f32.mrf.mxu0 }
 0x624   :  { %v6469_v33 = vpop.f32.mrf.mxu0 }
 0x626   :  { %v8248_v47 = vpop.f32.mrf.mxu0 }
 0x628   :  { %v6493_v35 = vpop.f32.mrf.mxu0 }
 0x62a   :  { %v8250_v39 = vpop.f32.mrf.mxu0 }
 0x62c   :  { %v6496_v20 = vpop.f32.mrf.mxu0 }
 0x62e   :  { %v8252_v37 = vpop.f32.mrf.mxu0 }
 0x630   :  { %v6499_v30 = vpop.f32.mrf.mxu0 }
 0x632   :  { %v8254_v25 = vpop.f32.mrf.mxu0 }
 0x634   :  { %v6523_v2 = vpop.f32.mrf.mxu0 }
 0x635   :  { %v2352_v2 = vld [vmem:[%s9576_s5 + $0x8] sm:$0xff] }
 0x636   :  { %v8256_v22 = vpop.f32.mrf.mxu0 }
 0x638   :  { %v6526_v41 = vpop.f32.mrf.mxu0 }
 0x666   :  { %v8258_v14 = vpop.f32.mrf.mxu0 }
 0x668   :  { %v6529_v29 = vpop.f32.mrf.mxu0 }
 0x66a   :  { %v1578_v40 = vpop.f32.mrf.mxu0 }
 0x66b   :  { %1592 = vst.msk [vmem:[#allocation2 + $0x18] sm:$0xff] %vm379_vm3, %v1578_v40 }
 0x66c   :  { %v6553_v58 = vpop.f32.mrf.mxu0 }
 0x66e   :  { %v1583_v62 = vpop.f32.mrf.mxu0 }
 0x66f   :  { %1593 = vst.msk [vmem:[#allocation2 + $0x20] sm:$0xff] %vm379_vm3, %v1583_v62 }
 0x670   :  { %v6556_v46 = vpop.f32.mrf.mxu0 }
 0x672   :  { %v1588_v6 = vpop.f32.mrf.mxu0 }
 0x673   :  { %1594 = vst.msk [vmem:[#allocation2 + $0x28] sm:$0xff] %vm379_vm3, %v1588_v6 }
 0x674   :  { %v6559_v24 = vpop.f32.mrf.mxu0 }
 0x676   :  { %v8263_v44 = vpop.f32.mrf.mxu0 }
 0x678   :  { %v6583_v1 = vpop.f32.mrf.mxu0 }
 0x67a   :  { %v8265_v56 = vpop.f32.mrf.mxu0 }
 0x67c   :  { %v6586_v57 = vpop.f32.mrf.mxu0 }
 0x6a7   :  { %v8267_v49 = vpop.f32.mrf.mxu0 }
 0x6a9   :  { %v6589_v3 = vpop.f32.mrf.mxu0 }
 0x6aa   :  { %v2190_v53 = vpop.f32.mrf.mxu1 }
 0x6ab   :  { %v2191_v10 = vadd.f32 %v2190_v53, %v7830_v38  ;;  %v8270_v61 = vpop.f32.mrf.mxu0 }
 0x6ac   :  { %v6631_v4 = vpop.f32.mrf.mxu1 }
 0x6ad   :  { %v6613_v48 = vpop.f32.mrf.mxu0  ;;  %v2202_v0 = vsel %vm472_vm5, %v2191_v10, -inf }
 0x6ae   :  { %2203 = vmax.xlane.f32.xlu0 %v2202_v0  ;;  %v2195_v7 = vpop.f32.mrf.mxu1 }
 0x6af   :  { %v2196_v63 = vadd.f32 %v2195_v7, %v7830_v38  ;;  %v8274_v26 = vpop.f32.mrf.mxu0 }
 0x6b0   :  { %v6634_v34 = vpop.f32.mrf.mxu1 }
 0x6b1   :  { %v6616_v8 = vpop.f32.mrf.mxu0  ;;  %v2205_v5 = vsel %vm472_vm5, %v2196_v63, -inf }
 0x6b2   :  { %2206 = vmax.xlane.f32.xlu0 %v2205_v5 }
 0x6b3   :  { %v8277_v9 = vpop.f32.mrf.mxu0 }
 0x6b5   :  { %v6619_v15 = vpop.f32.mrf.mxu0 }
 0x6b7   :  { %v2185_v21 = vpop.f32.mrf.mxu0 }
 0x6b8   :  { %v2186_v51 = vadd.f32 %v2185_v21, %v7830_v38 }
 0x6b9   :  { %v6628_v45 = vpop.f32.mrf.mxu0 }
 0x6ba   :  { %v2199_v13 = vsel %vm472_vm5, %v2186_v51, -inf }
 0x6bb   :  { %2200 = vmax.xlane.f32.xlu1 %v2199_v13 }
 0x6cc   :  { %2236 = vrot.lane.b32.xlu1 %v7642_v52, %s7397_s18 }
 0x6d0   :  { %2232 = vrot.lane.b32.xlu1 %v7654_v55, %s7397_s18 }
 0x737   :  { %v2204_v43 = vpop.xlane.xlu0 %2203 }
 0x738   :  { %v2209_v50 = vsub.f32 %v2191_v10, %v2204_v43  ;;  %v5905_v43 = vld [vmem:[%s9577_s6] ss:$0 sm:$0xff] }
 0x73a   :  { %v2213_v60 = vmul.f32 1.442695, %v2209_v50 }
 0x73c   :  { %7193 = vpow2.f32 %v2213_v60 }
 0x744   :  { %v2201_v18 = vpop.xlane.xlu1 %2200 }
 0x745   :  { %v2208_v59 = vsub.f32 %v2186_v51, %v2201_v18 }
 0x747   :  { %v2211_v12 = vmul.f32 1.442695, %v2208_v59 }
 0x748   :  { %v2237_v28 = vpop.permute.xlu1 %2236 }
 0x749   :  { %v8285_v33 = vpop.eup %7193  ;;  %7195 = vpow2.f32 %v2211_v12  ;;  %6636 = vmatpush3.msra.mxu0 %v2237_v28 }
 0x74a   :  { %v2220_v35 = vsel %vm472_vm5, %v8285_v33, 0.0  ;;  %6637 = vmatprep.subr.mxu0 %v7385_v42 }
 0x74b   :  { %2221 = vadd.xlane.f32.xlu1 %v2220_v35 }
 0x756   :  { %v7196_v52 = vpop.eup %7195 }
 0x757   :  { %v2217_v55 = vsel %vm472_vm5, %v7196_v52, 0.0 }
 0x758   :  { %2218 = vadd.xlane.f32.xlu0 %v2217_v55 }
 0x75c   :  { %847 = vrot.lane.b32.xlu1 %v8244_v17, %s7399_s19  ;;  %v2207_v17 = vpop.xlane.xlu0 %2206 }
 0x75d   :  { %v2210_v20 = vsub.f32 %v2196_v63, %v2207_v17 }
 0x75f   :  { %v2215_v30 = vmul.f32 1.442695, %v2210_v20 }
 0x760   :  { %1096 = vrot.lane.b32.xlu1 %v8248_v47, %s7400_s20 }
 0x761   :  { %7197 = vpow2.f32 %v2215_v30 }
 0x764   :  { %1098 = vrot.lane.b32.xlu1 %v8250_v39, %s7400_s20 }
 0x768   :  { %1349 = vrot.lane.b32.xlu1 %v8256_v22, %s7401_s21  ;;  %v2351_v22 = vld [vmem:[%s9576_s5] sm:$0xff] }
 0x76c   :  { %1100 = vrot.lane.b32.xlu1 %v8252_v37, %s7400_s20  ;;  %v2354_v37 = vld [vmem:[%s9576_s5 + $0x18] sm:$0xff] }
 0x76d   :  { %6650 = vmatprep.subr.mxu1 %v2354_v37 }
 0x76e   :  { %2234 = vrot.lane.b32.xlu0 %v7648_v54, %s7397_s18  ;;  %v8305_v47 = vpop.eup %7197  ;;  %v2353_v54 = vld [vmem:[%s9576_s5 + $0x10] sm:$0xff]  ;;  %6651 = vmatpush3.msra.mxu1 %v2354_v37 }
 0x76f   :  { %v2223_v39 = vsel %vm472_vm5, %v8305_v47, 0.0  ;;  %6652 = vmatprep.subr.mxu1 %v2353_v54 }
 0x770   :  { %1351 = vrot.lane.b32.xlu1 %v8258_v14, %s7401_s21  ;;  %6653 = vmatpush3.msra.mxu1 %v2353_v54 }
 0x771   :  { %6654 = vmatprep.subr.mxu1 %v2352_v2 }
 0x772   :  { %6655 = vmatpush3.msra.mxu1 %v2352_v2 }
 0x773   :  { %6656 = vmatprep.subr.mxu1 %v2351_v22 }
 0x774   :  { %6657 = vmatpush3.msra.mxu1 %v2351_v22 }
 0x78d   :  { %2224 = vadd.xlane.f32.xlu0 %v2223_v39 }
 0x7a3   :  { %845 = vrot.lane.b32.xlu0 %v8242_v36, %s7399_s19  ;;  %v2233_v36 = vpop.permute.xlu1 %2232 }
 0x7a7   :  { %1347 = vrot.lane.b32.xlu0 %v8254_v25, %s7401_s21 }
 0x7ab   :  { %849 = vrot.lane.b32.xlu0 %v8246_v11, %s7399_s19 }
 0x7af   :  { %1833 = vrot.lane.b32.xlu0 %v8263_v44, %s7399_s19 }
 0x7b3   :  { %2083 = vrot.lane.b32.xlu0 %v8270_v61, %s7400_s20 }
 0x7b7   :  { %1835 = vrot.lane.b32.xlu0 %v8265_v56, %s7399_s19 }
 0x7bb   :  { %2085 = vrot.lane.b32.xlu0 %v8274_v26, %s7400_s20 }
 0x7d4   :  { %v2222_v25 = vpop.xlane.xlu1 %2221 }
 0x7d8   :  { %v848_v41 = vpop.permute.xlu1 %847 }
 0x7d9   :  { %856 = vst.msk [vmem:[#allocation2 + $0x8] sm:$0xff] %vm854_vm6, %v848_v41 }
 0x7dc   :  { %v1097_v14 = vpop.permute.xlu1 %1096 }
 0x7e0   :  { %v1099_v11 = vpop.permute.xlu1 %1098 }
 0x7e1   :  { %1107 = vst.msk [vmem:[#allocation2 + $0x8] sm:$0xff] %vm1105_vm7, %v1099_v11  ;;  %v2219_v29 = vpop.xlane.xlu0 %2218 }
 0x7e2   :  { %7199 = vrcp.f32 %v2219_v29 }
 0x7e3   :  { %7201 = vrcp.f32 %v2222_v25 }
 0x7e4   :  { %v1350_v40 = vpop.permute.xlu1 %1349 }
 0x7e5   :  { %1358 = vst.msk [vmem:[#allocation2 + $0x8] sm:$0xff] %vm1356_vm8, %v1350_v40  ;;  %v2235_v58 = vpop.permute.xlu0 %2234 }
 0x7e6   :  { %6638 = vmatpush3.msra.mxu0 %v2235_v58 }
 0x7e7   :  { %6639 = vmatprep.subr.mxu0 %v7385_v42 }
 0x7e8   :  { %6640 = vmatpush3.msra.mxu0 %v2233_v36  ;;  %v1101_v56 = vpop.permute.xlu1 %1100 }
 0x7ec   :  { %v1352_v10 = vpop.permute.xlu1 %1351  ;;  %v2346_v0 = vld [vmem:[#allocation2 + $0x8] sm:$0xff] }
 0x7ef   :  { %v7200_v62 = vpop.eup %7199 }
 0x7f0   :  { %v2229_v46 = vmul.f32 %v7200_v62, %v7196_v52  ;;  %v7202_v6 = vpop.eup %7201 }
 0x7f1   :  { %v2230_v24 = vmul.f32 %v7202_v6, %v8285_v33 }
 0x7f2   :  { %6642 = vmatmul.mubr.msk.f32.vlgmr.msra.gmra.mxu0 %vm472_vm5, %v2229_v46 }
 0x7f3   :  { %6644 = vmatprep.mubr.msk.f32.mxu0 %vm7387_vm2, %v7385_v42 }
 0x7f6   :  { %6645 = vmatmul.mubr.msk.f32.gmra.mxu0 %vm472_vm5, %v2230_v24 }
 0x7f7   :  { %6647 = vmatprep.mubr.msk.f32.mxu0 %vm7387_vm2, %v7385_v42 }
 0x816   :  { %v2225_v44 = vpop.xlane.xlu0 %2224 }
 0x817   :  { %7203 = vrcp.f32 %v2225_v44 }
 0x81a   :  { %v846_v1 = vpop.permute.xlu0 %845 }
 0x81b   :  { %855 = vst.msk [vmem:[#allocation2] sm:$0xff] %vm854_vm6, %v846_v1 }
 0x81c   :  { %1106 = vst.msk [vmem:[#allocation2] sm:$0xff] %vm1105_vm7, %v1097_v14 }
 0x81e   :  { %v1348_v57 = vpop.permute.xlu0 %1347 }
 0x81f   :  { %1357 = vst.msk [vmem:[#allocation2] sm:$0xff] %vm1356_vm8, %v1348_v57  ;;  %v2559_v57 = vld [vmem:[%s9574_s3 + $0x30] sm:$0xff] }
 0x822   :  { %v850_v3 = vpop.permute.xlu0 %849 }
 0x823   :  { %857 = vst.msk [vmem:[#allocation2 + $0x10] sm:$0xff] %vm854_vm6, %v850_v3  ;;  %v2558_v3 = vld [vmem:[%s9574_s3 + $0x28] sm:$0xff] }
 0x824   :  { %v7204_v53 = vpop.eup %7203  ;;  %1108 = vst.msk [vmem:[#allocation2 + $0x10] sm:$0xff] %vm1105_vm7, %v1101_v56 }
 0x825   :  { %1359 = vst.msk [vmem:[#allocation2 + $0x10] sm:$0xff] %vm1356_vm8, %v1352_v10  ;;  %v2231_v61 = vmul.f32 %v7204_v53, %v8305_v47  ;;  %v2557_v53 = vld [vmem:[%s9574_s3 + $0x20] sm:$0xff] }
 0x826   :  { %v1834_v4 = vpop.permute.xlu0 %1833  ;;  %v2345_v48 = vld [vmem:[#allocation2] sm:$0xff] }
 0x827   :  { %1842 = vst.msk [vmem:[#allocation2 + $0x18] sm:$0xff] %vm854_vm6, %v1834_v4  ;;  %6648 = vmatmul.mubr.msk.f32.gmra.mxu0 %vm472_vm5, %v2231_v61  ;;  %6658 = vmatprep.mubr.msk.f32.mxu1 %vm168_vm1, %v2345_v48 }
 0x828   :  { %6659 = vmatmul.mubr.msk.f32.vlgmr.msra.gmra.mxu1 %vm168_vm1, %v2346_v0 }
 0x82a   :  { %v2084_v7 = vpop.permute.xlu0 %2083 }
 0x82b   :  { %2092 = vst.msk [vmem:[#allocation2 + $0x18] sm:$0xff] %vm1105_vm7, %v2084_v7 }
 0x82c   :  { %v2347_v63 = vld [vmem:[#allocation2 + $0x10] sm:$0xff] }
 0x82d   :  { %6661 = vmatprep.mubr.msk.f32.mxu1 %vm168_vm1, %v2347_v63 }
 0x82e   :  { %v1836_v26 = vpop.permute.xlu0 %1835 }
 0x82f   :  { %1843 = vst.msk [vmem:[#allocation2 + $0x20] sm:$0xff] %vm854_vm6, %v1836_v26 }
 0x832   :  { %v2086_v34 = vpop.permute.xlu0 %2085 }
 0x833   :  { %2093 = vst.msk [vmem:[#allocation2 + $0x20] sm:$0xff] %vm1105_vm7, %v2086_v34 }
 0x8b2   :  { %v2316_v8 = vpop.f32.mrf.mxu0 }
 0x8b3   :  { %2333 = vrot.lane.b32.xlu1 %v2316_v8, %s7401_s21 }
 0x8b4   :  { %v6643_v5 = vpop.f32.mrf.mxu0 }
 0x8b6   :  { %v2321_v15 = vpop.f32.mrf.mxu0 }
 0x8b7   :  { %1837 = vrot.lane.b32.xlu1 %v8267_v49, %s7399_s19  ;;  %2335 = vrot.lane.b32.xlu0 %v2321_v15, %s7401_s21 }
 0x8b8   :  { %v6646_v21 = vpop.f32.mrf.mxu0 }
 0x8bb   :  { %2087 = vrot.lane.b32.xlu1 %v8277_v9, %s7400_s20 }
 0x8e7   :  { %v2326_v51 = vpop.f32.mrf.mxu0 }
 0x8e8   :  { %2337 = vrot.lane.b32.xlu1 %v2326_v51, %s7401_s21  ;;  %v6660_v45 = vpop.f32.mrf.mxu1 }
 0x8e9   :  { %v6649_v13 = vpop.f32.mrf.mxu0  ;;  %v2450_v59 = vadd.f32 %v6660_v45, %v5905_v43 }
 0x8ea   :  { %v2444_v50 = vpop.f32.mrf.mxu1 }
 0x8eb   :  { %v2445_v60 = vadd.f32 %v5905_v43, %v2444_v50  ;;  %v8377_v9 = vadd.f32 %v2450_v59, %v7505_v19 }
 0x8ed   :  { %v8372_v18 = vadd.f32 %v2445_v60, %v7500_v16  ;;  %v2482_v12 = vsel %vm168_vm1, %v8377_v9, 0.0 }
 0x8ef   :  { %v2479_v49 = vsel %vm168_vm1, %v8372_v18, 0.0 }
 0x8f0   :  { %2480 = vadd.xlane.f32.xlu0 %v2479_v49 }
 0x90c   :  { %2483 = vadd.xlane.f32.xlu1 %v2482_v12 }
 0x925   :  { %v2334_v28 = vpop.permute.xlu1 %2333 }
 0x926   :  { %2342 = vst.msk [vmem:[#allocation2 + $0x18] sm:$0xff] %vm1356_vm8, %v2334_v28 }
 0x929   :  { %v1838_v33 = vpop.permute.xlu1 %1837  ;;  %v2336_v35 = vpop.permute.xlu0 %2335 }
 0x92a   :  { %1844 = vst.msk [vmem:[#allocation2 + $0x28] sm:$0xff] %vm854_vm6, %v1838_v33 }
 0x92b   :  { %2343 = vst.msk [vmem:[#allocation2 + $0x20] sm:$0xff] %vm1356_vm8, %v2336_v35 }
 0x92d   :  { %v2088_v16 = vpop.permute.xlu1 %2087  ;;  %v2348_v52 = vld [vmem:[#allocation2 + $0x18] sm:$0xff] }
 0x92e   :  { %2094 = vst.msk [vmem:[#allocation2 + $0x28] sm:$0xff] %vm1105_vm7, %v2088_v16  ;;  %6662 = vmatmul.mubr.msk.f32.gmra.mxu1 %vm168_vm1, %v2348_v52 }
 0x932   :  { %v2349_v19 = vld [vmem:[#allocation2 + $0x20] sm:$0xff] }
 0x933   :  { %6664 = vmatprep.mubr.msk.f32.mxu1 %vm168_vm1, %v2349_v19 }
 0x95a   :  { %v2338_v55 = vpop.permute.xlu1 %2337 }
 0x95b   :  { %2344 = vst.msk [vmem:[#allocation2 + $0x28] sm:$0xff] %vm1356_vm8, %v2338_v55 }
 0x962   :  { %v2350_v17 = vld [vmem:[#allocation2 + $0x28] sm:$0xff] }
 0x963   :  { %6665 = vmatmul.mubr.msk.f32.gmra.mxu1 %vm168_vm1, %v2350_v17 }
 0x979   :  { %v2481_v25 = vpop.xlane.xlu0 %2480 }
 0x97a   :  { %v2497_v14 = vmul.f32 0.03125, %v2481_v25 }
 0x995   :  { %v2484_v36 = vpop.xlane.xlu1 %2483 }
 0x996   :  { %v2498_v41 = vmul.f32 0.03125, %v2484_v36  ;;  %v2747_v36 = vld [vmem:[%s9576_s5 + $0x90] sm:$0xff] }
 0x998   :  { %v8400_v29 = vsub.f32 %v8377_v9, %v2498_v41  ;;  %v2746_v41 = vld [vmem:[%s9576_s5 + $0x88] sm:$0xff] }
 0x99a   :  { %v2510_v24 = vmul.f32 %v8400_v29, %v8400_v29 }
 0x99c   :  { %v2518_v56 = vsel %vm168_vm1, %v2510_v24, 0.0  ;;  %v2739_v24 = vld [vmem:[%s9576_s5 + $0x50] sm:$0xff] }
 0x9ee   :  { %v6663_v20 = vpop.f32.mrf.mxu1 }
 0x9ef   :  { %v2460_v47 = vadd.f32 %v6663_v20, %v5905_v43 }
 0x9f0   :  { %v2454_v30 = vpop.f32.mrf.mxu1 }
 0x9f1   :  { %v2455_v39 = vadd.f32 %v5905_v43, %v2454_v30  ;;  %v8393_v54 = vadd.f32 %v2460_v47, %v7520_v27  ;;  %v2503_v27 = vsub.f32 %v8372_v18, %v2497_v14  ;;  %v2745_v14 = vld [vmem:[%s9576_s5 + $0x80] sm:$0xff] }
 0x9f3   :  { %v8390_v37 = vadd.f32 %v2455_v39, %v7512_v23  ;;  %v2488_v22 = vsel %vm168_vm1, %v8393_v54, 0.0  ;;  %v2509_v1 = vmul.f32 %v2503_v27, %v2503_v27  ;;  %v2748_v39 = vld [vmem:[%s9576_s5 + $0x98] sm:$0xff] }
 0x9f4   :  { %6684 = vmatprep.subr.mxu1 %v2748_v39 }
 0x9f5   :  { %v2485_v2 = vsel %vm168_vm1, %v8390_v37, 0.0  ;;  %6685 = vmatpush3.msra.mxu1 %v2748_v39 }
 0x9f6   :  { %2486 = vadd.xlane.f32.xlu0 %v2485_v2  ;;  %6686 = vmatprep.subr.mxu1 %v2747_v36 }
 0x9f7   :  { %6687 = vmatpush3.msra.mxu1 %v2747_v36 }
 0x9f8   :  { %6688 = vmatprep.subr.mxu1 %v2746_v41 }
 0x9f9   :  { %6689 = vmatpush3.msra.mxu1 %v2746_v41 }
 0x9fa   :  { %2489 = vadd.xlane.f32.xlu0 %v2488_v22  ;;  %6690 = vmatprep.subr.mxu1 %v2745_v14 }
 0x9fb   :  { %6691 = vmatpush3.msra.mxu1 %v2745_v14 }
 0xa23   :  { %v6666_v11 = vpop.f32.mrf.mxu1 }
 0xa24   :  { %v2470_v23 = vadd.f32 %v6666_v11, %v5905_v43  ;;  %v2744_v11 = vld [vmem:[%s9576_s5 + $0x78] sm:$0xff] }
 0xa25   :  { %v2464_v40 = vpop.f32.mrf.mxu1  ;;  %6692 = vmatprep.subr.mxu1 %v2744_v11 }
 0xa26   :  { %v8404_v58 = vadd.f32 %v2470_v23, %v7526_v31  ;;  %v2465_v62 = vadd.f32 %v5905_v43, %v2464_v40  ;;  %v2515_v31 = vsel %vm168_vm1, %v2509_v1, 0.0  ;;  %6693 = vmatpush3.msra.mxu1 %v2744_v11  ;;  %v2742_v23 = vld [vmem:[%s9576_s5 + $0x68] sm:$0xff]  ;;  %v2741_v40 = vld [vmem:[%s9576_s5 + $0x60] sm:$0xff] }
 0xa28   :  { %v8407_v46 = vadd.f32 %v2465_v62, %v7528_v32  ;;  %v2494_v6 = vsel %vm168_vm1, %v8404_v58, 0.0  ;;  %v2560_v32 = vld [vmem:[%s9574_s3 + $0x38] sm:$0xff] }
 0xa29   :  { %2495 = vadd.xlane.f32.xlu1 %v2494_v6  ;;  %6667 = vmatprep.subr.mxu0 %v2560_v32  ;;  %v2740_v6 = vld [vmem:[%s9576_s5 + $0x58] sm:$0xff] }
 0xa2a   :  { %v2491_v44 = vsel %vm168_vm1, %v8407_v46, 0.0  ;;  %6668 = vmatpush3.msra.mxu0 %v2560_v32  ;;  %v2736_v32 = vld [vmem:[%s9576_s5 + $0x38] sm:$0xff] }
 0xa2b   :  { %2492 = vadd.xlane.f32.xlu0 %v2491_v44  ;;  %6669 = vmatprep.subr.mxu0 %v2559_v57 }
 0xa2c   :  { %6670 = vmatpush3.msra.mxu0 %v2559_v57  ;;  %v2735_v57 = vld [vmem:[%s9576_s5 + $0x30] sm:$0xff] }
 0xa2d   :  { %2519 = vadd.xlane.f32.xlu1 %v2518_v56  ;;  %6671 = vmatprep.subr.mxu0 %v2558_v3  ;;  %v2738_v56 = vld [vmem:[%s9576_s5 + $0x48] sm:$0xff] }
 0xa2e   :  { %6672 = vmatpush3.msra.mxu0 %v2558_v3  ;;  %v2734_v3 = vld [vmem:[%s9576_s5 + $0x28] sm:$0xff] }
 0xa2f   :  { %2516 = vadd.xlane.f32.xlu0 %v2515_v31  ;;  %6673 = vmatprep.subr.mxu0 %v2557_v53  ;;  %v2737_v31 = vld [vmem:[%s9576_s5 + $0x40] sm:$0xff] }
 0xa30   :  { %6674 = vmatpush3.msra.mxu0 %v2557_v53  ;;  %v2733_v53 = vld [vmem:[%s9576_s5 + $0x20] sm:$0xff] }
 0xa7f   :  { %v2487_v10 = vpop.xlane.xlu0 %2486 }
 0xa80   :  { %v2499_v61 = vmul.f32 0.03125, %v2487_v10 }
 0xa82   :  { %v8430_v4 = vsub.f32 %v8390_v37, %v2499_v61 }
 0xa83   :  { %v2490_v48 = vpop.xlane.xlu0 %2489 }
 0xa84   :  { %v2500_v0 = vmul.f32 0.03125, %v2490_v48  ;;  %v2511_v7 = vmul.f32 %v8430_v4, %v8430_v4 }
 0xa86   :  { %v8435_v63 = vsub.f32 %v8393_v54, %v2500_v0  ;;  %v2521_v26 = vsel %vm168_vm1, %v2511_v7, 0.0 }
 0xa87   :  { %2522 = vadd.xlane.f32.xlu0 %v2521_v26 }
 0xa88   :  { %v2512_v34 = vmul.f32 %v8435_v63, %v8435_v63 }
 0xa8a   :  { %v2524_v8 = vsel %vm168_vm1, %v2512_v34, 0.0 }
 0xa8b   :  { %2525 = vadd.xlane.f32.xlu1 %v2524_v8 }
 0xab2   :  { %v2496_v5 = vpop.xlane.xlu1 %2495 }
 0xab3   :  { %v2502_v15 = vmul.f32 0.03125, %v2496_v5  ;;  %v5912_v5 = vld [vmem:[%s9575_s4 + $0x1] ss:$0 sm:$0xff] }
 0xab4   :  { %v2493_v21 = vpop.xlane.xlu0 %2492 }
 0xab5   :  { %v8442_v51 = vsub.f32 %v8404_v58, %v2502_v15  ;;  %v2501_v45 = vmul.f32 0.03125, %v2493_v21 }
 0xab6   :  { %v2520_v13 = vpop.xlane.xlu1 %2519 }
 0xab7   :  { %v8445_v43 = vsub.f32 %v8407_v46, %v2501_v45  ;;  %v2534_v50 = vmul.f32 0.03125, %v2520_v13  ;;  %v2514_v60 = vmul.f32 %v8442_v51, %v8442_v51 }
 0xab8   :  { %v2517_v49 = vpop.xlane.xlu0 %2516 }
 0xab9   :  { %v2540_v59 = vadd.f32 1e-06, %v2534_v50  ;;  %v2533_v12 = vmul.f32 0.03125, %v2517_v49  ;;  %v2530_v28 = vsel %vm168_vm1, %v2514_v60, 0.0  ;;  %v2513_v33 = vmul.f32 %v8445_v43, %v8445_v43 }
 0xaba   :  { %2531 = vadd.xlane.f32.xlu1 %v2530_v28 }
 0xabb   :  { %v2539_v35 = vadd.f32 1e-06, %v2533_v12  ;;  %v2527_v16 = vsel %vm168_vm1, %v2513_v33, 0.0  ;;  %7205 = vrsqrt.f32 %v2540_v59 }
 0xabc   :  { %2528 = vadd.xlane.f32.xlu0 %v2527_v16 }
 0xabd   :  { %7207 = vrsqrt.f32 %v2539_v35 }
 0xac8   :  { %v7206_v52 = vpop.eup %7205 }
 0xac9   :  { %v2552_v17 = vmul.f32 %v7206_v52, %v8400_v29  ;;  %v2743_v29 = vld [vmem:[%s9576_s5 + $0x70] sm:$0xff] }
 0xaca   :  { %v7208_v19 = vpop.eup %7207  ;;  %6694 = vmatprep.subr.mxu1 %v2743_v29 }
 0xacb   :  { %v2551_v55 = vmul.f32 %v7208_v19, %v2503_v27  ;;  %6695 = vmatpush3.msra.mxu1 %v2743_v29 }
 0xacc   :  { %6696 = vmatprep.subr.mxu1 %v2742_v23 }
 0xacd   :  { %6675 = vmatprep.mubr.msk.f32.mxu0 %vm168_vm1, %v2551_v55  ;;  %6697 = vmatpush3.msra.mxu1 %v2742_v23 }
 0xace   :  { %6676 = vmatmul.mubr.msk.f32.vlgmr.msra.gmra.mxu0 %vm168_vm1, %v2552_v17  ;;  %6698 = vmatprep.subr.mxu1 %v2741_v40 }
 0xacf   :  { %6699 = vmatpush3.msra.mxu1 %v2741_v40 }
 0xad0   :  { %6700 = vmatprep.subr.mxu1 %v2740_v6 }
 0xad1   :  { %6701 = vmatpush3.msra.mxu1 %v2740_v6 }
 0xad2   :  { %6702 = vmatprep.subr.mxu1 %v2739_v24 }
 0xad3   :  { %6703 = vmatpush3.msra.mxu1 %v2739_v24 }
 0xad4   :  { %6704 = vmatprep.subr.mxu1 %v2738_v56 }
 0xad5   :  { %6705 = vmatpush3.msra.mxu1 %v2738_v56 }
 0xad6   :  { %6706 = vmatprep.subr.mxu1 %v2737_v31 }
 0xad7   :  { %6707 = vmatpush3.msra.mxu1 %v2737_v31 }
 0xad8   :  { %6708 = vmatprep.subr.mxu1 %v2736_v32 }
 0xad9   :  { %6709 = vmatpush3.msra.mxu1 %v2736_v32 }
 0xada   :  { %6710 = vmatprep.subr.mxu1 %v2735_v57 }
 0xadb   :  { %6711 = vmatpush3.msra.mxu1 %v2735_v57 }
 0xadc   :  { %6712 = vmatprep.subr.mxu1 %v2734_v3 }
 0xadd   :  { %6713 = vmatpush3.msra.mxu1 %v2734_v3 }
 0xade   :  { %6714 = vmatprep.subr.mxu1 %v2733_v53 }
 0xadf   :  { %6715 = vmatpush3.msra.mxu1 %v2733_v53 }
 0xae0   :  { %6772 = vmatprep.subr.mxu1 %v7385_v42 }
 0xb10   :  { %v2523_v20 = vpop.xlane.xlu0 %2522 }
 0xb11   :  { %v2535_v30 = vmul.f32 0.03125, %v2523_v20 }
 0xb13   :  { %v2541_v47 = vadd.f32 1e-06, %v2535_v30 }
 0xb14   :  { %v2526_v2 = vpop.xlane.xlu1 %2525 }
 0xb15   :  { %7209 = vrsqrt.f32 %v2541_v47  ;;  %v2536_v22 = vmul.f32 0.03125, %v2526_v2 }
 0xb17   :  { %v2542_v25 = vadd.f32 1e-06, %v2536_v22 }
 0xb19   :  { %7211 = vrsqrt.f32 %v2542_v25 }
 0xb22   :  { %v7210_v27 = vpop.eup %7209 }
 0xb23   :  { %v2553_v62 = vmul.f32 %v7210_v27, %v8430_v4 }
 0xb25   :  { %6678 = vmatprep.mubr.msk.f32.mxu0 %vm168_vm1, %v2553_v62 }
 0xb26   :  { %v7212_v44 = vpop.eup %7211 }
 0xb27   :  { %v2554_v1 = vmul.f32 %v7212_v44, %v8435_v63 }
 0xb29   :  { %6679 = vmatmul.mubr.msk.f32.gmra.mxu0 %vm168_vm1, %v2554_v1 }
 0xb43   :  { %v2532_v10 = vpop.xlane.xlu1 %2531 }
 0xb44   :  { %v2538_v61 = vmul.f32 0.03125, %v2532_v10 }
 0xb45   :  { %v2529_v4 = vpop.xlane.xlu0 %2528 }
 0xb46   :  { %v2544_v48 = vadd.f32 1e-06, %v2538_v61  ;;  %v2537_v0 = vmul.f32 0.03125, %v2529_v4 }
 0xb48   :  { %v2543_v7 = vadd.f32 1e-06, %v2537_v0  ;;  %7213 = vrsqrt.f32 %v2544_v48 }
 0xb4a   :  { %7215 = vrsqrt.f32 %v2543_v7 }
 0xb55   :  { %v7214_v63 = vpop.eup %7213 }
 0xb56   :  { %v2556_v8 = vmul.f32 %v7214_v63, %v8442_v51 }
 0xb57   :  { %v7216_v26 = vpop.eup %7215 }
 0xb58   :  { %v2555_v34 = vmul.f32 %v7216_v26, %v8445_v43 }
 0xb5a   :  { %6681 = vmatprep.mubr.msk.f32.mxu0 %vm168_vm1, %v2555_v34 }
 0xb5b   :  { %6682 = vmatmul.mubr.msk.f32.gmra.mxu0 %vm168_vm1, %v2556_v8 }
 0xb8e   :  { %v6677_v15 = vpop.f32.mrf.mxu0 }
 0xb8f   :  { %v2656_v21 = vadd.f32 %v6677_v15, %v5912_v5 }
 0xb90   :  { %v2650_v45 = vpop.f32.mrf.mxu0 }
 0xb91   :  { %v2680_v13 = vmul.f32 %v2656_v21, %v2656_v21  ;;  %v2651_v50 = vadd.f32 %v5912_v5, %v2650_v45 }
 0xb93   :  { %v2686_v60 = vmul.f32 %v2680_v13, %v2656_v21  ;;  %v2679_v49 = vmul.f32 %v2651_v50, %v2651_v50 }
 0xb95   :  { %v2692_v59 = vmul.f32 0.044715, %v2686_v60  ;;  %v2685_v12 = vmul.f32 %v2679_v49, %v2651_v50 }
 0xb97   :  { %v2698_v43 = vadd.f32 %v2692_v59, %v2656_v21  ;;  %v2691_v28 = vmul.f32 0.044715, %v2685_v12 }
 0xb99   :  { %v2704_v51 = vmul.f32 0.7978846, %v2698_v43  ;;  %v2697_v33 = vadd.f32 %v2691_v28, %v2651_v50 }
 0xb9b   :  { %7217 = vtanh.f32 %v2704_v51  ;;  %v2703_v35 = vmul.f32 0.7978846, %v2697_v33  ;;  %v5919_v51 = vld [vmem:[%s9577_s6 + $0x1] ss:$0 sm:$0xff] }
 0xb9d   :  { %7219 = vtanh.f32 %v2703_v35 }
 0xba8   :  { %v7218_v16 = vpop.eup %7217 }
 0xba9   :  { %v2716_v52 = vadd.f32 1.0, %v7218_v16 }
 0xbaa   :  { %v7220_v19 = vpop.eup %7219 }
 0xbab   :  { %v2715_v55 = vadd.f32 1.0, %v7220_v19  ;;  %v2722_v17 = vmul.f32 0.5, %v2716_v52 }
 0xbad   :  { %v2721_v20 = vmul.f32 0.5, %v2715_v55  ;;  %v2728_v47 = vmul.f32 %v2722_v17, %v2656_v21 }
 0xbaf   :  { %v2727_v30 = vmul.f32 %v2721_v20, %v2651_v50 }
 0xbb1   :  { %6716 = vmatprep.mubr.f32.mxu1 %v2727_v30 }
 0xbb2   :  { %6717 = vmatmul.mubr.f32.vlgmr.msra.gmra.mxu1 %v2728_v47 }
 0xbe9   :  { %v6680_v39 = vpop.f32.mrf.mxu0 }
 0xbea   :  { %v2666_v2 = vadd.f32 %v6680_v39, %v5912_v5 }
 0xbeb   :  { %v2660_v22 = vpop.f32.mrf.mxu0 }
 0xbec   :  { %v2682_v36 = vmul.f32 %v2666_v2, %v2666_v2  ;;  %v2661_v25 = vadd.f32 %v5912_v5, %v2660_v22 }
 0xbee   :  { %v2688_v41 = vmul.f32 %v2682_v36, %v2666_v2  ;;  %v2681_v14 = vmul.f32 %v2661_v25, %v2661_v25 }
 0xbf0   :  { %v2694_v11 = vmul.f32 0.044715, %v2688_v41  ;;  %v2687_v29 = vmul.f32 %v2681_v14, %v2661_v25 }
 0xbf2   :  { %v2700_v23 = vadd.f32 %v2694_v11, %v2666_v2  ;;  %v2693_v40 = vmul.f32 0.044715, %v2687_v29 }
 0xbf4   :  { %v2706_v27 = vmul.f32 0.7978846, %v2700_v23  ;;  %v2699_v62 = vadd.f32 %v2693_v40, %v2661_v25 }
 0xbf6   :  { %7221 = vtanh.f32 %v2706_v27  ;;  %v2705_v6 = vmul.f32 0.7978846, %v2699_v62 }
 0xbf8   :  { %7223 = vtanh.f32 %v2705_v6 }
 0xc03   :  { %v7222_v24 = vpop.eup %7221 }
 0xc04   :  { %v2718_v44 = vadd.f32 1.0, %v7222_v24 }
 0xc05   :  { %v7224_v1 = vpop.eup %7223 }
 0xc06   :  { %v2717_v56 = vadd.f32 1.0, %v7224_v1  ;;  %v2724_v31 = vmul.f32 0.5, %v2718_v44 }
 0xc08   :  { %v2723_v32 = vmul.f32 0.5, %v2717_v56  ;;  %v2730_v3 = vmul.f32 %v2724_v31, %v2666_v2  ;;  %v5923_v56 = vld [vmem:[%s9574_s3 + $0x58] sm:$0xff]  ;;  %v5922_v31 = vld [vmem:[%s9574_s3 + $0x50] sm:$0xff] }
 0xc09   :  { %6725 = vmatprep.subr.mxu0 %v5923_v56 }
 0xc0a   :  { %v2729_v57 = vmul.f32 %v2723_v32, %v2661_v25  ;;  %6726 = vmatpush3.msra.mxu0 %v5923_v56  ;;  %v5921_v32 = vld [vmem:[%s9574_s3 + $0x48] sm:$0xff] }
 0xc0b   :  { %6727 = vmatprep.subr.mxu0 %v5922_v31 }
 0xc0c   :  { %6719 = vmatprep.mubr.f32.mxu1 %v2729_v57  ;;  %6728 = vmatpush3.msra.mxu0 %v5922_v31  ;;  %v5920_v57 = vld [vmem:[%s9574_s3 + $0x40] sm:$0xff] }
 0xc0d   :  { %6720 = vmatmul.mubr.f32.gmra.mxu1 %v2730_v3  ;;  %6729 = vmatprep.subr.mxu0 %v5921_v32 }
 0xc0e   :  { %6730 = vmatpush3.msra.mxu0 %v5921_v32 }
 0xc0f   :  { %6731 = vmatprep.subr.mxu0 %v5920_v57 }
 0xc10   :  { %6732 = vmatpush3.msra.mxu0 %v5920_v57 }
 0xc11   :  { %6742 = vmatprep.subr.mxu0 %v7385_v42 }
 0xc1b   :  { %v6683_v53 = vpop.f32.mrf.mxu0 }
 0xc1c   :  { %v2676_v10 = vadd.f32 %v6683_v53, %v5912_v5 }
 0xc1d   :  { %v2670_v61 = vpop.f32.mrf.mxu0 }
 0xc1e   :  { %v2684_v4 = vmul.f32 %v2676_v10, %v2676_v10  ;;  %v2671_v48 = vadd.f32 %v5912_v5, %v2670_v61 }
 0xc20   :  { %v2690_v0 = vmul.f32 %v2684_v4, %v2676_v10  ;;  %v2683_v7 = vmul.f32 %v2671_v48, %v2671_v48 }
 0xc22   :  { %v2696_v63 = vmul.f32 0.044715, %v2690_v0  ;;  %v2689_v26 = vmul.f32 %v2683_v7, %v2671_v48 }
 0xc24   :  { %v2702_v34 = vadd.f32 %v2696_v63, %v2676_v10  ;;  %v2695_v8 = vmul.f32 0.044715, %v2689_v26 }
 0xc26   :  { %v2708_v15 = vmul.f32 0.7978846, %v2702_v34  ;;  %v2701_v21 = vadd.f32 %v2695_v8, %v2671_v48 }
 0xc28   :  { %7225 = vtanh.f32 %v2708_v15  ;;  %v2707_v45 = vmul.f32 0.7978846, %v2701_v21 }
 0xc2a   :  { %7227 = vtanh.f32 %v2707_v45 }
 0xc35   :  { %v7226_v13 = vpop.eup %7225 }
 0xc36   :  { %v2720_v50 = vadd.f32 1.0, %v7226_v13 }
 0xc37   :  { %v7228_v60 = vpop.eup %7227 }
 0xc38   :  { %v2719_v49 = vadd.f32 1.0, %v7228_v60  ;;  %v2726_v59 = vmul.f32 0.5, %v2720_v50 }
 0xc3a   :  { %v2725_v12 = vmul.f32 0.5, %v2719_v49  ;;  %v2732_v28 = vmul.f32 %v2726_v59, %v2676_v10 }
 0xc3c   :  { %v2731_v43 = vmul.f32 %v2725_v12, %v2671_v48 }
 0xc3e   :  { %6722 = vmatprep.mubr.f32.mxu1 %v2731_v43 }
 0xc3f   :  { %6723 = vmatmul.mubr.f32.gmra.mxu1 %v2732_v28 }
 0xc40   :  { %6778 = vmatprep.mubr.msk.f32.mxu1 %vm7387_vm2, %v7385_v42 }
 0xc72   :  { %v6718_v5 = vpop.f32.mrf.mxu1 }
 0xc73   :  { %v2845_v33 = vadd.f32 %v6718_v5, %v8377_v9 }
 0xc74   :  { %v2815_v35 = vpop.f32.mrf.mxu1 }
 0xc75   :  { %v8522_v16 = vadd.f32 %v5919_v51, %v2845_v33  ;;  %v2844_v52 = vadd.f32 %v2815_v35, %v8372_v18 }
 0xc77   :  { %v8525_v19 = vadd.f32 %v5919_v51, %v2844_v52  ;;  %v2864_v55 = vsel %vm168_vm1, %v8522_v16, 0.0 }
 0xc78   :  { %2865 = vadd.xlane.f32.xlu1 %v2864_v55 }
 0xc79   :  { %v2861_v17 = vsel %vm168_vm1, %v8525_v19, 0.0 }
 0xc7a   :  { %2862 = vadd.xlane.f32.xlu0 %v2861_v17 }
 0xccd   :  { %v6721_v20 = vpop.f32.mrf.mxu1 }
 0xcce   :  { %v2847_v30 = vadd.f32 %v6721_v20, %v8393_v54 }
 0xccf   :  { %v2825_v47 = vpop.f32.mrf.mxu1 }
 0xcd0   :  { %v8532_v9 = vadd.f32 %v5919_v51, %v2847_v30  ;;  %v2846_v39 = vadd.f32 %v2825_v47, %v8390_v37 }
 0xcd2   :  { %v8535_v2 = vadd.f32 %v5919_v51, %v2846_v39  ;;  %v2870_v18 = vsel %vm168_vm1, %v8532_v9, 0.0 }
 0xcd3   :  { %2871 = vadd.xlane.f32.xlu1 %v2870_v18 }
 0xcd4   :  { %v2867_v22 = vsel %vm168_vm1, %v8535_v2, 0.0 }
 0xcd5   :  { %2868 = vadd.xlane.f32.xlu0 %v2867_v22 }
 0xcff   :  { %v6724_v36 = vpop.f32.mrf.mxu1 }
 0xd00   :  { %v2849_v25 = vadd.f32 %v6724_v36, %v8404_v58 }
 0xd01   :  { %v2866_v41 = vpop.xlane.xlu1 %2865  ;;  %v2835_v54 = vpop.f32.mrf.mxu1 }
 0xd02   :  { %v8542_v14 = vadd.f32 %v5919_v51, %v2849_v25  ;;  %v2880_v11 = vmul.f32 0.03125, %v2866_v41  ;;  %v2848_v37 = vadd.f32 %v2835_v54, %v8407_v46 }
 0xd03   :  { %v2863_v29 = vpop.xlane.xlu0 %2862 }
 0xd04   :  { %v2886_v23 = vsub.f32 %v8522_v16, %v2880_v11  ;;  %v8546_v40 = vadd.f32 %v5919_v51, %v2848_v37  ;;  %v2879_v27 = vmul.f32 0.03125, %v2863_v29  ;;  %v2876_v62 = vsel %vm168_vm1, %v8542_v14, 0.0 }
 0xd05   :  { %2877 = vadd.xlane.f32.xlu1 %v2876_v62 }
 0xd06   :  { %v2885_v6 = vsub.f32 %v8525_v19, %v2879_v27  ;;  %v2873_v58 = vsel %vm168_vm1, %v8546_v40, 0.0  ;;  %v2892_v24 = vmul.f32 %v2886_v23, %v2886_v23 }
 0xd07   :  { %2874 = vadd.xlane.f32.xlu0 %v2873_v58 }
 0xd08   :  { %v2900_v44 = vsel %vm168_vm1, %v2892_v24, 0.0  ;;  %v2891_v46 = vmul.f32 %v2885_v6, %v2885_v6 }
 0xd09   :  { %2901 = vadd.xlane.f32.xlu1 %v2900_v44 }
 0xd0a   :  { %v2897_v1 = vsel %vm168_vm1, %v2891_v46, 0.0  ;;  %v5925_v46 = vld [vmem:[%s9575_s4 + $0x2] ss:$0 sm:$0xff] }
 0xd0b   :  { %2898 = vadd.xlane.f32.xlu0 %v2897_v1 }
 0xd5c   :  { %v2872_v3 = vpop.xlane.xlu1 %2871 }
 0xd5d   :  { %v2882_v53 = vmul.f32 0.03125, %v2872_v3 }
 0xd5e   :  { %v2869_v10 = vpop.xlane.xlu0 %2868 }
 0xd5f   :  { %v2888_v61 = vsub.f32 %v8532_v9, %v2882_v53  ;;  %v2881_v4 = vmul.f32 0.03125, %v2869_v10 }
 0xd61   :  { %v2887_v48 = vsub.f32 %v8535_v2, %v2881_v4  ;;  %v2894_v0 = vmul.f32 %v2888_v61, %v2888_v61 }
 0xd63   :  { %v2906_v7 = vsel %vm168_vm1, %v2894_v0, 0.0  ;;  %v2893_v63 = vmul.f32 %v2887_v48, %v2887_v48 }
 0xd64   :  { %2907 = vadd.xlane.f32.xlu1 %v2906_v7 }
 0xd65   :  { %v2903_v26 = vsel %vm168_vm1, %v2893_v63, 0.0 }
 0xd66   :  { %2904 = vadd.xlane.f32.xlu0 %v2903_v26 }
 0xd8e   :  { %v2878_v34 = vpop.xlane.xlu1 %2877 }
 0xd8f   :  { %v2884_v8 = vmul.f32 0.03125, %v2878_v34 }
 0xd90   :  { %v2875_v15 = vpop.xlane.xlu0 %2874 }
 0xd91   :  { %v2890_v21 = vsub.f32 %v8542_v14, %v2884_v8  ;;  %v2883_v45 = vmul.f32 0.03125, %v2875_v15 }
 0xd92   :  { %v2902_v13 = vpop.xlane.xlu1 %2901 }
 0xd93   :  { %v2889_v50 = vsub.f32 %v8546_v40, %v2883_v45  ;;  %v2916_v60 = vmul.f32 0.03125, %v2902_v13  ;;  %v2896_v49 = vmul.f32 %v2890_v21, %v2890_v21 }
 0xd94   :  { %v2899_v59 = vpop.xlane.xlu0 %2898 }
 0xd95   :  { %v2922_v12 = vadd.f32 1e-06, %v2916_v60  ;;  %v2915_v43 = vmul.f32 0.03125, %v2899_v59  ;;  %v2912_v28 = vsel %vm168_vm1, %v2896_v49, 0.0  ;;  %v2895_v5 = vmul.f32 %v2889_v50, %v2889_v50 }
 0xd96   :  { %2913 = vadd.xlane.f32.xlu1 %v2912_v28 }
 0xd97   :  { %v2921_v51 = vadd.f32 1e-06, %v2915_v43  ;;  %v2909_v33 = vsel %vm168_vm1, %v2895_v5, 0.0  ;;  %7229 = vrsqrt.f32 %v2922_v12 }
 0xd98   :  { %2910 = vadd.xlane.f32.xlu0 %v2909_v33 }
 0xd99   :  { %7231 = vrsqrt.f32 %v2921_v51 }
 0xda4   :  { %v7230_v35 = vpop.eup %7229 }
 0xda5   :  { %v2934_v17 = vmul.f32 %v7230_v35, %v2886_v23 }
 0xda6   :  { %v7232_v52 = vpop.eup %7231 }
 0xda7   :  { %v2933_v55 = vmul.f32 %v7232_v52, %v2885_v6 }
 0xda9   :  { %6733 = vmatprep.mubr.msk.f32.mxu0 %vm168_vm1, %v2933_v55 }
 0xdaa   :  { %6734 = vmatmul.mubr.msk.f32.vlgmr.msra.gmra.mxu0 %vm168_vm1, %v2934_v17 }
 0xded   :  { %v2908_v20 = vpop.xlane.xlu1 %2907 }
 0xdee   :  { %v2918_v30 = vmul.f32 0.03125, %v2908_v20 }
 0xdef   :  { %v2905_v47 = vpop.xlane.xlu0 %2904 }
 0xdf0   :  { %v2924_v39 = vadd.f32 1e-06, %v2918_v30  ;;  %v2917_v18 = vmul.f32 0.03125, %v2905_v47 }
 0xdf2   :  { %v2923_v22 = vadd.f32 1e-06, %v2917_v18  ;;  %7233 = vrsqrt.f32 %v2924_v39 }
 0xdf4   :  { %7235 = vrsqrt.f32 %v2923_v22 }
 0xdff   :  { %v7234_v36 = vpop.eup %7233 }
 0xe00   :  { %v2936_v54 = vmul.f32 %v7234_v36, %v2888_v61 }
 0xe01   :  { %v7236_v25 = vpop.eup %7235 }
 0xe02   :  { %v2935_v41 = vmul.f32 %v7236_v25, %v2887_v48 }
 0xe04   :  { %6736 = vmatprep.mubr.msk.f32.mxu0 %vm168_vm1, %v2935_v41 }
 0xe05   :  { %6737 = vmatmul.mubr.msk.f32.gmra.mxu0 %vm168_vm1, %v2936_v54 }
 0xe1f   :  { %v2914_v11 = vpop.xlane.xlu1 %2913 }
 0xe20   :  { %v2920_v37 = vmul.f32 0.03125, %v2914_v11 }
 0xe21   :  { %v2911_v29 = vpop.xlane.xlu0 %2910 }
 0xe22   :  { %v2926_v23 = vadd.f32 1e-06, %v2920_v37  ;;  %v2919_v27 = vmul.f32 0.03125, %v2911_v29 }
 0xe24   :  { %v2925_v62 = vadd.f32 1e-06, %v2919_v27  ;;  %7237 = vrsqrt.f32 %v2926_v23 }
 0xe26   :  { %7239 = vrsqrt.f32 %v2925_v62 }
 0xe31   :  { %v7238_v6 = vpop.eup %7237 }
 0xe32   :  { %v2938_v44 = vmul.f32 %v7238_v6, %v2890_v21 }
 0xe33   :  { %v7240_v58 = vpop.eup %7239 }
 0xe34   :  { %v2937_v24 = vmul.f32 %v7240_v58, %v2889_v50 }
 0xe36   :  { %6739 = vmatprep.mubr.msk.f32.mxu0 %vm168_vm1, %v2937_v24 }
 0xe37   :  { %6740 = vmatmul.mubr.msk.f32.gmra.mxu0 %vm168_vm1, %v2938_v44 }
 0xe38   :  { %6748 = vmatprep.mubr.msk.f32.mxu0 %vm7387_vm2, %v7385_v42 }
 0xe6a   :  { %v6735_v1 = vpop.f32.mrf.mxu0 }
 0xe6b   :  { %v8587_v56 = vadd.f32 %v6735_v1, %v5925_v46 }
 0xe6c   :  { %v3034_v31 = vpop.f32.mrf.mxu0 }
 0xe6d   :  { %3068 = vrot.lane.b32.xlu1 %v8587_v56, %s7386_s30  ;;  %v8591_v32 = vadd.f32 %v5925_v46, %v3034_v31 }
 0xe71   :  { %3066 = vrot.lane.b32.xlu1 %v8591_v32, %s7386_s30 }
 0xec5   :  { %v6738_v57 = vpop.f32.mrf.mxu0 }
 0xec6   :  { %v8641_v48 = vadd.f32 %v6738_v57, %v5925_v46 }
 0xec7   :  { %v3044_v3 = vpop.f32.mrf.mxu0 }
 0xec8   :  { %v8595_v53 = vadd.f32 %v5925_v46, %v3044_v3 }
 0xeca   :  { %3308 = vrot.lane.b32.xlu1 %v8595_v53, %s7388_s10  ;;  %3070 = vrot.lane.b32.xlu0 %v8595_v53, %s7386_s30 }
 0xece   :  { %3304 = vrot.lane.b32.xlu1 %v8591_v32, %s7388_s10  ;;  %3306 = vrot.lane.b32.xlu0 %v8587_v56, %s7388_s10 }
 0xed2   :  { %3558 = vrot.lane.b32.xlu1 %v8595_v53, %s7390_s12  ;;  %3298 = vrot.lane.b32.xlu0 %v8591_v32, %s7389_s11 }
 0xed6   :  { %3556 = vrot.lane.b32.xlu1 %v8587_v56, %s7390_s12  ;;  %3300 = vrot.lane.b32.xlu0 %v8587_v56, %s7389_s11 }
 0xeda   :  { %3554 = vrot.lane.b32.xlu1 %v8591_v32, %s7390_s12  ;;  %3302 = vrot.lane.b32.xlu0 %v8595_v53, %s7389_s11 }
 0xede   :  { %3808 = vrot.lane.b32.xlu1 %v8595_v53, %s7392_s14  ;;  %3548 = vrot.lane.b32.xlu0 %v8591_v32, %s7391_s13 }
 0xedf   :  { %v3069_v7 = vpop.permute.xlu1 %3068 }
 0xee2   :  { %3806 = vrot.lane.b32.xlu1 %v8587_v56, %s7392_s14  ;;  %3550 = vrot.lane.b32.xlu0 %v8587_v56, %s7391_s13 }
 0xee3   :  { %v3067_v63 = vpop.permute.xlu1 %3066 }
 0xee6   :  { %3804 = vrot.lane.b32.xlu1 %v8591_v32, %s7392_s14  ;;  %3552 = vrot.lane.b32.xlu0 %v8595_v53, %s7391_s13 }
 0xeea   :  { %3798 = vrot.lane.b32.xlu0 %v8591_v32, %s7393_s15 }
 0xeee   :  { %3800 = vrot.lane.b32.xlu0 %v8587_v56, %s7393_s15 }
 0xef2   :  { %3802 = vrot.lane.b32.xlu0 %v8595_v53, %s7393_s15 }
 0xef7   :  { %v6741_v10 = vpop.f32.mrf.mxu0 }
 0xef8   :  { %v8635_v61 = vadd.f32 %v6741_v10, %v5925_v46 }
 0xef9   :  { %v3054_v4 = vpop.f32.mrf.mxu0 }
 0xefa   :  { %4293 = vrot.lane.b32.xlu0 %v8635_v61, %s7388_s10  ;;  %4055 = vrot.lane.b32.xlu1 %v8635_v61, %s7386_s30  ;;  %v8643_v0 = vadd.f32 %v5925_v46, %v3054_v4 }
 0xefe   :  { %4289 = vrot.lane.b32.xlu0 %v8641_v48, %s7388_s10  ;;  %4053 = vrot.lane.b32.xlu1 %v8643_v0, %s7386_s30 }
 0xf02   :  { %4543 = vrot.lane.b32.xlu0 %v8635_v61, %s7390_s12  ;;  %4051 = vrot.lane.b32.xlu1 %v8641_v48, %s7386_s30 }
 0xf06   :  { %4541 = vrot.lane.b32.xlu0 %v8643_v0, %s7390_s12  ;;  %4291 = vrot.lane.b32.xlu1 %v8643_v0, %s7388_s10 }
 0xf0a   :  { %4539 = vrot.lane.b32.xlu0 %v8641_v48, %s7390_s12  ;;  %4283 = vrot.lane.b32.xlu1 %v8641_v48, %s7389_s11 }
 0xf0e   :  { %4793 = vrot.lane.b32.xlu0 %v8635_v61, %s7392_s14  ;;  %4285 = vrot.lane.b32.xlu1 %v8643_v0, %s7389_s11 }
 0xf12   :  { %4791 = vrot.lane.b32.xlu0 %v8643_v0, %s7392_s14  ;;  %4287 = vrot.lane.b32.xlu1 %v8635_v61, %s7389_s11 }
 0xf16   :  { %4789 = vrot.lane.b32.xlu0 %v8641_v48, %s7392_s14  ;;  %4533 = vrot.lane.b32.xlu1 %v8641_v48, %s7391_s13 }
 0xf1a   :  { %4785 = vrot.lane.b32.xlu0 %v8643_v0, %s7393_s15  ;;  %4535 = vrot.lane.b32.xlu1 %v8643_v0, %s7391_s13 }
 0xf1e   :  { %3201 = vrot.lane.b32.xlu0 %v8595_v53, %s7394_s16  ;;  %4537 = vrot.lane.b32.xlu1 %v8635_v61, %s7391_s13 }
 0xf22   :  { %3439 = vrot.lane.b32.xlu0 %v8595_v53, %s7395_s0  ;;  %4783 = vrot.lane.b32.xlu1 %v8641_v48, %s7393_s15 }
 0xf26   :  { %3435 = vrot.lane.b32.xlu0 %v8591_v32, %s7395_s0  ;;  %4787 = vrot.lane.b32.xlu1 %v8635_v61, %s7393_s15 }
 0xf2a   :  { %3689 = vrot.lane.b32.xlu0 %v8595_v53, %s7396_s17  ;;  %3199 = vrot.lane.b32.xlu1 %v8587_v56, %s7394_s16 }
 0xf2e   :  { %3685 = vrot.lane.b32.xlu0 %v8591_v32, %s7396_s17  ;;  %3197 = vrot.lane.b32.xlu1 %v8591_v32, %s7394_s16 }
 0xf32   :  { %3939 = vrot.lane.b32.xlu0 %v8595_v53, %s7397_s18  ;;  %3437 = vrot.lane.b32.xlu1 %v8587_v56, %s7395_s0 }
 0xf36   :  { %3935 = vrot.lane.b32.xlu0 %v8591_v32, %s7397_s18  ;;  %3687 = vrot.lane.b32.xlu1 %v8587_v56, %s7396_s17 }
 0xf3a   :  { %4186 = vrot.lane.b32.xlu0 %v8635_v61, %s7394_s16  ;;  %3937 = vrot.lane.b32.xlu1 %v8587_v56, %s7397_s18 }
 0xf3c   :  { %v3309_v26 = vpop.permute.xlu1 %3308  ;;  %v3071_v34 = vpop.permute.xlu0 %3070 }
 0xf3d   :  { %6743 = vmatpush3.xpose.msk.msra.mxu0 %vm379_vm3, %v3071_v34  ;;  %6773 = vmatpush3.xpose.msk.msra.mxu1 %vm379_vm3, %v3309_v26 }
 0xf3e   :  { %4182 = vrot.lane.b32.xlu0 %v8641_v48, %s7394_s16  ;;  %4184 = vrot.lane.b32.xlu1 %v8643_v0, %s7394_s16 }
 0xf3f   :  { %6774 = vmatprep.subr.mxu1 %v7385_v42  ;;  %6744 = vmatprep.subr.mxu0 %v7385_v42 }
 0xf40   :  { %v3305_v8 = vpop.permute.xlu1 %3304  ;;  %v3307_v15 = vpop.permute.xlu0 %3306 }
 0xf41   :  { %6745 = vmatpush3.xpose.msk.msra.mxu0 %vm379_vm3, %v3069_v7  ;;  %6775 = vmatpush3.xpose.msk.msra.mxu1 %vm379_vm3, %v3307_v15 }
 0xf42   :  { %4424 = vrot.lane.b32.xlu0 %v8635_v61, %s7395_s0  ;;  %4422 = vrot.lane.b32.xlu1 %v8643_v0, %s7395_s0 }
 0xf43   :  { %6746 = vmatprep.subr.mxu0 %v7385_v42  ;;  %6776 = vmatprep.subr.mxu1 %v7385_v42 }
 0xf44   :  { %v3559_v21 = vpop.permute.xlu1 %3558  ;;  %v3299_v45 = vpop.permute.xlu0 %3298 }
 0xf45   :  { %6747 = vmatpush3.xpose.msk.msra.mxu0 %vm379_vm3, %v3067_v63  ;;  %6777 = vmatpush3.xpose.msk.msra.mxu1 %vm379_vm3, %v3305_v8 }
 0xf46   :  { %4420 = vrot.lane.b32.xlu0 %v8641_v48, %s7395_s0  ;;  %6802 = vmatprep.subr.mxu1 %v7385_v42 }
 0xf47   :  { %6757 = vmatprep.subr.mxu0 %v7385_v42 }
 0xf48   :  { %v3557_v13 = vpop.permute.xlu1 %3556  ;;  %6749 = vmatmul.mubr.msk.f32.vlgmr.msra.gmra.mxu0 %vm379_vm3, %v8591_v32  ;;  %6779 = vmatmul.mubr.msk.f32.vlgmr.msra.gmra.mxu1 %vm379_vm3, %v3299_v45  ;;  %v3301_v50 = vpop.permute.xlu0 %3300 }
 0xf49   :  { %6803 = vmatpush3.xpose.msk.msra.mxu1 %vm379_vm3, %v3559_v21  ;;  %6751 = vmatprep.mubr.msk.f32.mxu0 %vm7387_vm2, %v7385_v42 }
 0xf4a   :  { %6781 = vmatprep.mubr.msk.f32.mxu1 %vm7387_vm2, %v7385_v42  ;;  %6804 = vmatprep.subr.mxu1 %v7385_v42 }
 0xf4c   :  { %v3555_v60 = vpop.permute.xlu1 %3554  ;;  %6752 = vmatmul.mubr.msk.f32.gmra.mxu0 %vm379_vm3, %v8587_v56  ;;  %6782 = vmatmul.mubr.msk.f32.gmra.mxu1 %vm379_vm3, %v3301_v50  ;;  %v3303_v49 = vpop.permute.xlu0 %3302 }
 0xf4d   :  { %6805 = vmatpush3.xpose.msk.msra.mxu1 %vm379_vm3, %v3557_v13  ;;  %6754 = vmatprep.mubr.msk.f32.mxu0 %vm7387_vm2, %v7385_v42 }
 0xf4e   :  { %6784 = vmatprep.mubr.msk.f32.mxu1 %vm7387_vm2, %v7385_v42  ;;  %6806 = vmatprep.subr.mxu1 %v7385_v42 }
 0xf50   :  { %v3809_v59 = vpop.permute.xlu1 %3808  ;;  %6755 = vmatmul.mubr.msk.f32.gmra.mxu0 %vm379_vm3, %v8595_v53  ;;  %6785 = vmatmul.mubr.msk.f32.gmra.mxu1 %vm379_vm3, %v3303_v49  ;;  %v3549_v12 = vpop.permute.xlu0 %3548 }
 0xf51   :  { %6807 = vmatpush3.xpose.msk.msra.mxu1 %vm379_vm3, %v3555_v60  ;;  %6808 = vmatprep.mubr.msk.f32.mxu1 %vm7387_vm2, %v7385_v42 }
 0xf52   :  { %6832 = vmatprep.subr.mxu1 %v7385_v42  ;;  %6763 = vmatprep.mubr.msk.f32.mxu0 %vm7387_vm2, %v7385_v42 }
 0xf54   :  { %6809 = vmatmul.mubr.msk.f32.vlgmr.msra.gmra.mxu1 %vm379_vm3, %v3549_v12  ;;  %v3551_v43 = vpop.permute.xlu0 %3550  ;;  %v3807_v28 = vpop.permute.xlu1 %3806 }
 0xf55   :  { %6833 = vmatpush3.xpose.msk.msra.mxu1 %vm379_vm3, %v3809_v59  ;;  %6811 = vmatprep.mubr.msk.f32.mxu1 %vm7387_vm2, %v7385_v42 }
 0xf56   :  { %6834 = vmatprep.subr.mxu1 %v7385_v42 }
 0xf58   :  { %6812 = vmatmul.mubr.msk.f32.gmra.mxu1 %vm379_vm3, %v3551_v43  ;;  %v3553_v5 = vpop.permute.xlu0 %3552  ;;  %v3805_v51 = vpop.permute.xlu1 %3804 }
 0xf59   :  { %6835 = vmatpush3.xpose.msk.msra.mxu1 %vm379_vm3, %v3807_v28  ;;  %6814 = vmatprep.mubr.msk.f32.mxu1 %vm7387_vm2, %v7385_v42 }
 0xf5a   :  { %6836 = vmatprep.subr.mxu1 %v7385_v42 }
 0xf5c   :  { %6815 = vmatmul.mubr.msk.f32.gmra.mxu1 %vm379_vm3, %v3553_v5  ;;  %v3799_v33 = vpop.permute.xlu0 %3798 }
 0xf5d   :  { %6837 = vmatpush3.xpose.msk.msra.mxu1 %vm379_vm3, %v3805_v51  ;;  %6838 = vmatprep.mubr.msk.f32.mxu1 %vm7387_vm2, %v7385_v42 }
 0xf5e   :  { %6862 = vmatprep.subr.mxu1 %v7385_v42 }
 0xf60   :  { %6839 = vmatmul.mubr.msk.f32.vlgmr.msra.gmra.mxu1 %vm379_vm3, %v3799_v33  ;;  %v3801_v35 = vpop.permute.xlu0 %3800 }
 0xf61   :  { %6841 = vmatprep.mubr.msk.f32.mxu1 %vm7387_vm2, %v7385_v42 }
 0xf64   :  { %6842 = vmatmul.mubr.msk.f32.gmra.mxu1 %vm379_vm3, %v3801_v35  ;;  %v3803_v52 = vpop.permute.xlu0 %3802 }
 0xf65   :  { %6844 = vmatprep.mubr.msk.f32.mxu1 %vm7387_vm2, %v7385_v42 }
 0xf68   :  { %6845 = vmatmul.mubr.msk.f32.gmra.mxu1 %vm379_vm3, %v3803_v52 }
 0xf69   :  { %6868 = vmatprep.mubr.msk.f32.mxu1 %vm7387_vm2, %v7385_v42 }
 0xf6c   :  { %v4056_v55 = vpop.permute.xlu1 %4055  ;;  %v4294_v17 = vpop.permute.xlu0 %4293 }
 0xf6d   :  { %6863 = vmatpush3.xpose.msk.msra.mxu1 %vm379_vm3, %v4056_v55 }
 0xf6e   :  { %6864 = vmatprep.subr.mxu1 %v7385_v42 }
 0xf70   :  { %v4054_v20 = vpop.permute.xlu1 %4053  ;;  %v4290_v30 = vpop.permute.xlu0 %4289 }
 0xf71   :  { %6865 = vmatpush3.xpose.msk.msra.mxu1 %vm379_vm3, %v4054_v20 }
 0xf72   :  { %6866 = vmatprep.subr.mxu1 %v7385_v42 }
 0xf74   :  { %v4052_v47 = vpop.permute.xlu1 %4051  ;;  %v4544_v39 = vpop.permute.xlu0 %4543 }
 0xf75   :  { %6867 = vmatpush3.xpose.msk.msra.mxu1 %vm379_vm3, %v4052_v47 }
 0xf76   :  { %6892 = vmatprep.subr.mxu1 %v7385_v42 }
 0xf78   :  { %v4292_v18 = vpop.permute.xlu1 %4291  ;;  %6869 = vmatmul.mubr.msk.f32.vlgmr.msra.gmra.mxu1 %vm379_vm3, %v8641_v48  ;;  %v4542_v22 = vpop.permute.xlu0 %4541 }
 0xf79   :  { %6893 = vmatpush3.xpose.msk.msra.mxu1 %vm379_vm3, %v4294_v17  ;;  %6871 = vmatprep.mubr.msk.f32.mxu1 %vm7387_vm2, %v7385_v42 }
 0xf7a   :  { %6894 = vmatprep.subr.mxu1 %v7385_v42 }
 0xf7c   :  { %v4284_v36 = vpop.permute.xlu1 %4283  ;;  %6872 = vmatmul.mubr.msk.f32.gmra.mxu1 %vm379_vm3, %v8643_v0  ;;  %v4540_v25 = vpop.permute.xlu0 %4539 }
 0xf7d   :  { %6895 = vmatpush3.xpose.msk.msra.mxu1 %vm379_vm3, %v4292_v18  ;;  %6874 = vmatprep.mubr.msk.f32.mxu1 %vm7387_vm2, %v7385_v42 }
 0xf7e   :  { %6896 = vmatprep.subr.mxu1 %v7385_v42 }
 0xf80   :  { %v4286_v41 = vpop.permute.xlu1 %4285  ;;  %6875 = vmatmul.mubr.msk.f32.gmra.mxu1 %vm379_vm3, %v8635_v61  ;;  %v4794_v54 = vpop.permute.xlu0 %4793 }
 0xf81   :  { %6897 = vmatpush3.xpose.msk.msra.mxu1 %vm379_vm3, %v4290_v30  ;;  %6898 = vmatprep.mubr.msk.f32.mxu1 %vm7387_vm2, %v7385_v42 }
 0xf82   :  { %6922 = vmatprep.subr.mxu1 %v7385_v42 }
 0xf84   :  { %v4288_v11 = vpop.permute.xlu1 %4287  ;;  %6899 = vmatmul.mubr.msk.f32.vlgmr.msra.gmra.mxu1 %vm379_vm3, %v4284_v36  ;;  %v4792_v37 = vpop.permute.xlu0 %4791 }
 0xf85   :  { %6923 = vmatpush3.xpose.msk.msra.mxu1 %vm379_vm3, %v4544_v39  ;;  %6901 = vmatprep.mubr.msk.f32.mxu1 %vm7387_vm2, %v7385_v42 }
 0xf86   :  { %6924 = vmatprep.subr.mxu1 %v7385_v42 }
 0xf88   :  { %v4534_v29 = vpop.permute.xlu1 %4533  ;;  %6902 = vmatmul.mubr.msk.f32.gmra.mxu1 %vm379_vm3, %v4286_v41  ;;  %v4790_v23 = vpop.permute.xlu0 %4789 }
 0xf89   :  { %6925 = vmatpush3.xpose.msk.msra.mxu1 %vm379_vm3, %v4542_v22  ;;  %6904 = vmatprep.mubr.msk.f32.mxu1 %vm7387_vm2, %v7385_v42 }
 0xf8a   :  { %6926 = vmatprep.subr.mxu1 %v7385_v42 }
 0xf8c   :  { %v4536_v27 = vpop.permute.xlu1 %4535  ;;  %6905 = vmatmul.mubr.msk.f32.gmra.mxu1 %vm379_vm3, %v4288_v11  ;;  %v4786_v62 = vpop.permute.xlu0 %4785 }
 0xf8d   :  { %6927 = vmatpush3.xpose.msk.msra.mxu1 %vm379_vm3, %v4540_v25  ;;  %6928 = vmatprep.mubr.msk.f32.mxu1 %vm7387_vm2, %v7385_v42 }
 0xf8e   :  { %6952 = vmatprep.subr.mxu1 %v7385_v42 }
 0xf90   :  { %v4538_v6 = vpop.permute.xlu1 %4537  ;;  %6929 = vmatmul.mubr.msk.f32.vlgmr.msra.gmra.mxu1 %vm379_vm3, %v4534_v29  ;;  %v3202_v58 = vpop.permute.xlu0 %3201 }
 0xf91   :  { %6758 = vmatpush3.msra.mxu0 %v3202_v58  ;;  %6953 = vmatpush3.xpose.msk.msra.mxu1 %vm379_vm3, %v4794_v54 }
 0xf92   :  { %6931 = vmatprep.mubr.msk.f32.mxu1 %vm7387_vm2, %v7385_v42  ;;  %6954 = vmatprep.subr.mxu1 %v7385_v42 }
 0xf93   :  { %6759 = vmatprep.subr.mxu0 %v7385_v42 }
 0xf94   :  { %v4784_v24 = vpop.permute.xlu1 %4783  ;;  %6932 = vmatmul.mubr.msk.f32.gmra.mxu1 %vm379_vm3, %v4536_v27 }
 0xf95   :  { %6955 = vmatpush3.xpose.msk.msra.mxu1 %vm379_vm3, %v4792_v37  ;;  %6934 = vmatprep.mubr.msk.f32.mxu1 %vm7387_vm2, %v7385_v42 }
 0xf96   :  { %6956 = vmatprep.subr.mxu1 %v7385_v42 }
 0xf98   :  { %v4788_v44 = vpop.permute.xlu1 %4787  ;;  %6935 = vmatmul.mubr.msk.f32.gmra.mxu1 %vm379_vm3, %v4538_v6 }
 0xf99   :  { %6957 = vmatpush3.xpose.msk.msra.mxu1 %vm379_vm3, %v4790_v23  ;;  %6958 = vmatprep.mubr.msk.f32.mxu1 %vm7387_vm2, %v7385_v42 }
 0xf9c   :  { %v3200_v46 = vpop.permute.xlu1 %3199  ;;  %6959 = vmatmul.mubr.msk.f32.vlgmr.msra.gmra.mxu1 %vm379_vm3, %v4784_v24 }
 0xf9d   :  { %6760 = vmatpush3.msra.mxu0 %v3200_v46  ;;  %6961 = vmatprep.mubr.msk.f32.mxu1 %vm7387_vm2, %v7385_v42 }
 0xf9e   :  { %6761 = vmatprep.subr.mxu0 %v7385_v42 }
 0xfa0   :  { %v3198_v1 = vpop.permute.xlu1 %3197  ;;  %6962 = vmatmul.mubr.msk.f32.gmra.mxu1 %vm379_vm3, %v4786_v62 }
 0xfa1   :  { %6762 = vmatpush3.msra.mxu0 %v3198_v1  ;;  %6964 = vmatprep.mubr.msk.f32.mxu1 %vm7387_vm2, %v7385_v42 }
 0xfa2   :  { %6787 = vmatprep.subr.mxu0 %v7385_v42 }
 0xfa4   :  { %6965 = vmatmul.mubr.msk.f32.gmra.mxu1 %vm379_vm3, %v4788_v44 }
0x1008   :  { %v3150_v56 = vpop.f32.mrf.mxu0  ;;  %v3388_v31 = vpop.f32.mrf.mxu1 }
0x1009   :  { %v8846_v32 = vadd.f32 %v3150_v56, %v7830_v38  ;;  %v8849_v53 = vadd.f32 %v3388_v31, %v7830_v38 }
0x100a   :  { %v6750_v57 = vpop.f32.mrf.mxu0  ;;  %v6780_v3 = vpop.f32.mrf.mxu1 }
0x100b   :  { %v3164_v10 = vsel %vm472_vm5, %v8846_v32, -inf  ;;  %v3402_v21 = vsel %vm472_vm5, %v8849_v53, -inf }
0x100c   :  { %3165 = vmax.xlane.f32.xlu0 %v3164_v10  ;;  %v3155_v4 = vpop.f32.mrf.mxu0  ;;  %v3393_v7 = vpop.f32.mrf.mxu1 }
0x100d   :  { %v8854_v63 = vadd.f32 %v3155_v4, %v7830_v38  ;;  %v8857_v8 = vadd.f32 %v3393_v7, %v7830_v38 }
0x100e   :  { %v6753_v26 = vpop.f32.mrf.mxu0  ;;  %v6783_v34 = vpop.f32.mrf.mxu1 }
0x100f   :  { %v3167_v15 = vsel %vm472_vm5, %v8854_v63, -inf  ;;  %v3405_v12 = vsel %vm472_vm5, %v8857_v8, -inf }
0x1010   :  { %3168 = vmax.xlane.f32.xlu1 %v3167_v15  ;;  %v3160_v45 = vpop.f32.mrf.mxu0  ;;  %3403 = vmax.xlane.f32.xlu0 %v3402_v21  ;;  %v3398_v13 = vpop.f32.mrf.mxu1 }
0x1011   :  { %v8864_v50 = vadd.f32 %v3398_v13, %v7830_v38  ;;  %v8867_v59 = vadd.f32 %v3160_v45, %v7830_v38 }
0x1012   :  { %v6756_v60 = vpop.f32.mrf.mxu0  ;;  %v6786_v49 = vpop.f32.mrf.mxu1 }
0x1013   :  { %v3408_v43 = vsel %vm472_vm5, %v8864_v50, -inf  ;;  %v3170_v33 = vsel %vm472_vm5, %v8867_v59, -inf }
0x1014   :  { %3406 = vmax.xlane.f32.xlu0 %v3405_v12  ;;  %3409 = vmax.xlane.f32.xlu1 %v3408_v43  ;;  %v3638_v28 = vpop.f32.mrf.mxu1 }
0x1015   :  { %v8874_v51 = vadd.f32 %v3638_v28, %v7830_v38 }
0x1016   :  { %v6810_v5 = vpop.f32.mrf.mxu1 }
0x1017   :  { %v3652_v17 = vsel %vm472_vm5, %v8874_v51, -inf }
0x1018   :  { %3171 = vmax.xlane.f32.xlu0 %v3170_v33  ;;  %v3643_v35 = vpop.f32.mrf.mxu1 }
0x1019   :  { %v8879_v52 = vadd.f32 %v3643_v35, %v7830_v38 }
0x101a   :  { %v6813_v55 = vpop.f32.mrf.mxu1 }
0x101b   :  { %v3655_v20 = vsel %vm472_vm5, %v8879_v52, -inf }
0x101c   :  { %3653 = vmax.xlane.f32.xlu0 %v3652_v17  ;;  %3656 = vmax.xlane.f32.xlu1 %v3655_v20  ;;  %v3648_v30 = vpop.f32.mrf.mxu1 }
0x101d   :  { %v8886_v47 = vadd.f32 %v3648_v30, %v7830_v38 }
0x101e   :  { %v6816_v39 = vpop.f32.mrf.mxu1 }
0x101f   :  { %v3658_v18 = vsel %vm472_vm5, %v8886_v47, -inf }
0x1020   :  { %3659 = vmax.xlane.f32.xlu0 %v3658_v18  ;;  %v3888_v22 = vpop.f32.mrf.mxu1 }
0x1021   :  { %v8891_v36 = vadd.f32 %v3888_v22, %v7830_v38  ;;  %v8940_v22 = vpop.permute.xlu0 %3439 }
0x1022   :  { %v6840_v25 = vpop.f32.mrf.mxu1 }
0x1023   :  { %v3902_v41 = vsel %vm472_vm5, %v8891_v36, -inf }
0x1024   :  { %3903 = vmax.xlane.f32.xlu1 %v3902_v41  ;;  %v3893_v54 = vpop.f32.mrf.mxu1 }
0x1025   :  { %v8896_v11 = vadd.f32 %v3893_v54, %v7830_v38 }
0x1026   :  { %v6843_v37 = vpop.f32.mrf.mxu1 }
0x1027   :  { %v3905_v29 = vsel %vm472_vm5, %v8896_v11, -inf  ;;  %v8942_v37 = vpop.permute.xlu0 %3435 }
0x1028   :  { %3906 = vmax.xlane.f32.xlu0 %v3905_v29  ;;  %v3898_v23 = vpop.f32.mrf.mxu1 }
0x1029   :  { %v8901_v27 = vadd.f32 %v3898_v23, %v7830_v38 }
0x102a   :  { %v6846_v62 = vpop.f32.mrf.mxu1 }
0x102b   :  { %v3908_v6 = vsel %vm472_vm5, %v8901_v27, -inf }
0x102c   :  { %3909 = vmax.xlane.f32.xlu1 %v3908_v6  ;;  %v8946_v6 = vpop.permute.xlu0 %3689 }
0x1038   :  { %v4135_v58 = vpop.f32.mrf.mxu1 }
0x1039   :  { %v8906_v24 = vadd.f32 %v4135_v58, %v7830_v38  ;;  %v8950_v58 = vpop.permute.xlu0 %3685 }
0x103a   :  { %v6870_v44 = vpop.f32.mrf.mxu1 }
0x103b   :  { %v4149_v46 = vsel %vm472_vm5, %v8906_v24, -inf }
0x103c   :  { %4150 = vmax.xlane.f32.xlu0 %v4149_v46  ;;  %v4140_v1 = vpop.f32.mrf.mxu1 }
0x103d   :  { %v8911_v56 = vadd.f32 %v4140_v1, %v7830_v38  ;;  %v8952_v44 = vpop.permute.xlu0 %3939  ;;  %v8956_v1 = vpop.permute.xlu1 %3437 }
0x103e   :  { %v6873_v31 = vpop.f32.mrf.mxu1 }
0x103f   :  { %v4152_v57 = vsel %vm472_vm5, %v8911_v56, -inf }
0x1040   :  { %4153 = vmax.xlane.f32.xlu1 %v4152_v57  ;;  %v4145_v3 = vpop.f32.mrf.mxu1 }
0x1041   :  { %v8916_v10 = vadd.f32 %v4145_v3, %v7830_v38  ;;  %v8954_v46 = vpop.permute.xlu0 %3935  ;;  %v8963_v3 = vpop.permute.xlu1 %3687 }
0x1042   :  { %v6876_v4 = vpop.f32.mrf.mxu1 }
0x1043   :  { %v4155_v7 = vsel %vm472_vm5, %v8916_v10, -inf }
0x1044   :  { %4156 = vmax.xlane.f32.xlu0 %v4155_v7  ;;  %v4373_v26 = vpop.f32.mrf.mxu1 }
0x1045   :  { %v8921_v34 = vadd.f32 %v4373_v26, %v7830_v38  ;;  %v8958_v31 = vpop.permute.xlu0 %4186 }
0x1046   :  { %v6900_v15 = vpop.f32.mrf.mxu1 }
0x1047   :  { %v4387_v21 = vsel %vm472_vm5, %v8921_v34, -inf }
0x1048   :  { %4388 = vmax.xlane.f32.xlu1 %v4387_v21  ;;  %v4378_v45 = vpop.f32.mrf.mxu1 }
0x1049   :  { %v8926_v13 = vadd.f32 %v4378_v45, %v7830_v38  ;;  %v8973_v15 = vpop.permute.xlu0 %4182 }
0x104a   :  { %v6903_v60 = vpop.f32.mrf.mxu1 }
0x104b   :  { %v4390_v49 = vsel %vm472_vm5, %v8926_v13, -inf }
0x104c   :  { %4391 = vmax.xlane.f32.xlu0 %v4390_v49  ;;  %v4383_v12 = vpop.f32.mrf.mxu1  ;;  %v8982_v49 = vpop.permute.xlu1 %3937 }
0x104d   :  { %v8931_v43 = vadd.f32 %v4383_v12, %v7830_v38  ;;  %v8984_v12 = vpop.permute.xlu0 %4424 }
0x104e   :  { %v6906_v28 = vpop.f32.mrf.mxu1 }
0x104f   :  { %v4393_v5 = vsel %vm472_vm5, %v8931_v43, -inf }
0x1050   :  { %4394 = vmax.xlane.f32.xlu1 %v4393_v5  ;;  %v4623_v33 = vpop.f32.mrf.mxu1 }
0x1051   :  { %v8936_v35 = vadd.f32 %v4623_v33, %v7830_v38  ;;  %v8991_v33 = vpop.permute.xlu1 %4184 }
0x1052   :  { %v6930_v55 = vpop.f32.mrf.mxu1 }
0x1053   :  { %v4637_v17 = vsel %vm472_vm5, %v8936_v35, -inf }
0x1054   :  { %4638 = vmax.xlane.f32.xlu0 %v4637_v17  ;;  %v4628_v20 = vpop.f32.mrf.mxu1  ;;  %v8995_v17 = vpop.permute.xlu0 %4420 }
0x1055   :  { %v8961_v57 = vadd.f32 %v4628_v20, %v7830_v38  ;;  %v8997_v20 = vpop.permute.xlu1 %4422 }
0x1056   :  { %v6933_v30 = vpop.f32.mrf.mxu1 }
0x1057   :  { %v4640_v26 = vsel %vm472_vm5, %v8961_v57, -inf }
0x1058   :  { %v4633_v39 = vpop.f32.mrf.mxu1 }
0x1059   :  { %v8966_v4 = vadd.f32 %v4633_v39, %v7830_v38 }
0x105a   :  { %v6936_v18 = vpop.f32.mrf.mxu1 }
0x105b   :  { %v4643_v45 = vsel %vm472_vm5, %v8966_v4, -inf }
0x105c   :  { %v4873_v25 = vpop.f32.mrf.mxu1 }
0x105d   :  { %v8969_v7 = vadd.f32 %v4873_v25, %v7830_v38 }
0x105e   :  { %v6960_v41 = vpop.f32.mrf.mxu1 }
0x105f   :  { %v4887_v60 = vsel %vm472_vm5, %v8969_v7, -inf }
0x1060   :  { %v4878_v54 = vpop.f32.mrf.mxu1 }
0x1061   :  { %4672 = vrot.lane.b32.xlu1 %v8643_v0, %s7396_s17  ;;  %v8976_v21 = vadd.f32 %v4878_v54, %v7830_v38 }
0x1062   :  { %v6963_v29 = vpop.f32.mrf.mxu1 }
0x1063   :  { %v4890_v5 = vsel %vm472_vm5, %v8976_v21, -inf }
0x1064   :  { %v4883_v23 = vpop.f32.mrf.mxu1 }
0x1065   :  { %v8987_v28 = vadd.f32 %v4883_v23, %v7830_v38 }
0x1066   :  { %v6966_v62 = vpop.f32.mrf.mxu1 }
0x1067   :  { %v4893_v55 = vsel %vm472_vm5, %v8987_v28, -inf }
0x106a   :  { %4674 = vrot.lane.b32.xlu0 %v8635_v61, %s7396_s17 }
0x1085   :  { %4641 = vmax.xlane.f32.xlu1 %v4640_v26 }
0x1089   :  { %4644 = vmax.xlane.f32.xlu0 %v4643_v45  ;;  %4888 = vmax.xlane.f32.xlu1 %v4887_v60 }
0x108d   :  { %4891 = vmax.xlane.f32.xlu0 %v4890_v5 }
0x1091   :  { %4894 = vmax.xlane.f32.xlu0 %v4893_v55 }
0x1095   :  { %v3166_v30 = vpop.xlane.xlu0 %3165 }
0x1096   :  { %v3173_v39 = vsub.f32 %v8846_v32, %v3166_v30 }
0x1098   :  { %v3176_v18 = vmul.f32 1.442695, %v3173_v39 }
0x1099   :  { %v3169_v38 = vpop.xlane.xlu1 %3168  ;;  %v3404_v25 = vpop.xlane.xlu0 %3403 }
0x109a   :  { %7241 = vpow2.f32 %v3176_v18  ;;  %v3174_v41 = vsub.f32 %v8854_v63, %v3169_v38  ;;  %v3411_v54 = vsub.f32 %v8849_v53, %v3404_v25 }
0x109c   :  { %v3414_v29 = vmul.f32 1.442695, %v3411_v54  ;;  %v3178_v23 = vmul.f32 1.442695, %v3174_v41 }
0x109d   :  { %v3410_v62 = vpop.xlane.xlu1 %3409  ;;  %v3407_v26 = vpop.xlane.xlu0 %3406 }
0x109e   :  { %v3413_v45 = vsub.f32 %v8864_v50, %v3410_v62  ;;  %v3412_v60 = vsub.f32 %v8857_v8, %v3407_v26  ;;  %7243 = vpow2.f32 %v3414_v29 }
0x109f   :  { %7245 = vpow2.f32 %v3178_v23 }
0x10a0   :  { %v3416_v5 = vmul.f32 1.442695, %v3412_v60  ;;  %v3418_v32 = vmul.f32 1.442695, %v3413_v45 }
0x10a1   :  { %v3172_v55 = vpop.xlane.xlu0 %3171 }
0x10a2   :  { %v3175_v30 = vsub.f32 %v8867_v59, %v3172_v55  ;;  %7247 = vpow2.f32 %v3416_v5 }
0x10a3   :  { %7249 = vpow2.f32 %v3418_v32 }
0x10a4   :  { %v3180_v39 = vmul.f32 1.442695, %v3175_v30 }
0x10a5   :  { %v3657_v63 = vpop.xlane.xlu1 %3656  ;;  %v3654_v53 = vpop.xlane.xlu0 %3653 }
0x10a6   :  { %7251 = vpow2.f32 %v3180_v39  ;;  %v3662_v18 = vsub.f32 %v8879_v52, %v3657_v63  ;;  %v3661_v38 = vsub.f32 %v8874_v51, %v3654_v53 }
0x10a7   :  { %v9007_v50 = vpop.eup %7241 }
0x10a8   :  { %v3666_v8 = vmul.f32 1.442695, %v3662_v18  ;;  %v3664_v25 = vmul.f32 1.442695, %v3661_v38  ;;  %v3182_v41 = vsel %vm472_vm5, %v9007_v50, 0.0 }
0x10a9   :  { %3183 = vadd.xlane.f32.xlu1 %v3182_v41  ;;  %v3660_v54 = vpop.xlane.xlu0 %3659 }
0x10aa   :  { %7253 = vpow2.f32 %v3666_v8  ;;  %v3663_v59 = vsub.f32 %v8886_v47, %v3660_v54 }
0x10ab   :  { %7255 = vpow2.f32 %v3664_v25  ;;  %v9012_v29 = vpop.eup %7243 }
0x10ac   :  { %v3668_v23 = vmul.f32 1.442695, %v3663_v59  ;;  %v3420_v51 = vsel %vm472_vm5, %v9012_v29, 0.0  ;;  %v9016_v52 = vpop.eup %7245 }
0x10ad   :  { %v3904_v62 = vpop.xlane.xlu1 %3903  ;;  %3421 = vadd.xlane.f32.xlu1 %v3420_v51  ;;  %v3185_v47 = vsel %vm472_vm5, %v9016_v52, 0.0 }
0x10ae   :  { %7257 = vpow2.f32 %v3668_v23  ;;  %v3911_v26 = vsub.f32 %v8891_v36, %v3904_v62 }
0x10af   :  { %v9019_v45 = vpop.eup %7247 }
0x10b0   :  { %v3914_v60 = vmul.f32 1.442695, %v3911_v26  ;;  %v3423_v5 = vsel %vm472_vm5, %v9019_v45, 0.0  ;;  %v9025_v55 = vpop.eup %7249 }
0x10b1   :  { %v3907_v32 = vpop.xlane.xlu0 %3906  ;;  %3186 = vadd.xlane.f32.xlu1 %v3185_v47  ;;  %3424 = vadd.xlane.f32.xlu0 %v3423_v5  ;;  %v3426_v18 = vsel %vm472_vm5, %v9025_v55, 0.0 }
0x10b2   :  { %7259 = vpow2.f32 %v3914_v60  ;;  %v3912_v30 = vsub.f32 %v8896_v11, %v3907_v32 }
0x10b3   :  { %v9028_v39 = vpop.eup %7251 }
0x10b4   :  { %v3916_v36 = vmul.f32 1.442695, %v3912_v30  ;;  %v3188_v63 = vsel %vm472_vm5, %v9028_v39, 0.0 }
0x10b5   :  { %v3910_v53 = vpop.xlane.xlu1 %3909  ;;  %3427 = vadd.xlane.f32.xlu1 %v3426_v18  ;;  %3189 = vadd.xlane.f32.xlu0 %v3188_v63 }
0x10b6   :  { %7261 = vpow2.f32 %v3916_v36  ;;  %v3913_v38 = vsub.f32 %v8901_v27, %v3910_v53 }
0x10b7   :  { %v9035_v8 = vpop.eup %7253 }
0x10b8   :  { %v9037_v25 = vpop.eup %7255  ;;  %v3918_v11 = vmul.f32 1.442695, %v3913_v38  ;;  %v3673_v41 = vsel %vm472_vm5, %v9035_v8, 0.0 }
0x10b9   :  { %v3670_v54 = vsel %vm472_vm5, %v9037_v25, 0.0  ;;  %3674 = vadd.xlane.f32.xlu0 %v3673_v41 }
0x10ba   :  { %7263 = vpow2.f32 %v3918_v11  ;;  %3671 = vadd.xlane.f32.xlu1 %v3670_v54 }
0x10bb   :  { %v9043_v59 = vpop.eup %7257 }
0x10bc   :  { %v3676_v27 = vsel %vm472_vm5, %v9043_v59, 0.0 }
0x10be   :  { %3677 = vadd.xlane.f32.xlu1 %v3676_v27 }
0x10bf   :  { %v9047_v23 = vpop.eup %7259 }
0x10c0   :  { %v3920_v62 = vsel %vm472_vm5, %v9047_v23, 0.0 }
0x10c2   :  { %3921 = vadd.xlane.f32.xlu1 %v3920_v62 }
0x10c3   :  { %v9051_v51 = vpop.eup %7261 }
0x10c4   :  { %v3923_v26 = vsel %vm472_vm5, %v9051_v51, 0.0 }
0x10c5   :  { %3924 = vadd.xlane.f32.xlu0 %v3923_v26  ;;  %v4151_v60 = vpop.xlane.xlu0 %4150 }
0x10c6   :  { %v4158_v47 = vsub.f32 %v8906_v24, %v4151_v60 }
0x10c7   :  { %v9056_v5 = vpop.eup %7263 }
0x10c8   :  { %v4161_v32 = vmul.f32 1.442695, %v4158_v47  ;;  %v3926_v30 = vsel %vm472_vm5, %v9056_v5, 0.0 }
0x10c9   :  { %v4154_v36 = vpop.xlane.xlu1 %4153  ;;  %3927 = vadd.xlane.f32.xlu1 %v3926_v30 }
0x10ca   :  { %7265 = vpow2.f32 %v4161_v32  ;;  %v4159_v63 = vsub.f32 %v8911_v56, %v4154_v36 }
0x10cc   :  { %v4163_v53 = vmul.f32 1.442695, %v4159_v63 }
0x10cd   :  { %v4157_v18 = vpop.xlane.xlu0 %4156 }
0x10ce   :  { %7267 = vpow2.f32 %v4163_v53  ;;  %v4160_v38 = vsub.f32 %v8916_v10, %v4157_v18 }
0x10d0   :  { %v4165_v11 = vmul.f32 1.442695, %v4160_v38 }
0x10d1   :  { %v4389_v41 = vpop.xlane.xlu1 %4388 }
0x10d2   :  { %7269 = vpow2.f32 %v4165_v11  ;;  %v4396_v24 = vsub.f32 %v8921_v34, %v4389_v41 }
0x10d4   :  { %v4399_v54 = vmul.f32 1.442695, %v4396_v24 }
0x10d5   :  { %v4392_v27 = vpop.xlane.xlu0 %4391 }
0x10d6   :  { %7271 = vpow2.f32 %v4399_v54  ;;  %v4397_v62 = vsub.f32 %v8926_v13, %v4392_v27 }
0x10d7   :  { %v9064_v26 = vpop.eup %7265 }
0x10d8   :  { %v4401_v60 = vmul.f32 1.442695, %v4397_v62  ;;  %v4167_v56 = vsel %vm472_vm5, %v9064_v26, 0.0 }
0x10d9   :  { %4168 = vadd.xlane.f32.xlu1 %v4167_v56  ;;  %v4395_v53 = vpop.xlane.xlu1 %4394 }
0x10da   :  { %7273 = vpow2.f32 %v4401_v60  ;;  %v4398_v18 = vsub.f32 %v8931_v43, %v4395_v53 }
0x10db   :  { %v9068_v47 = vpop.eup %7267 }
0x10dc   :  { %v4170_v10 = vsel %vm472_vm5, %v9068_v47, 0.0  ;;  %v4403_v11 = vmul.f32 1.442695, %v4398_v18 }
0x10dd   :  { %4171 = vadd.xlane.f32.xlu0 %v4170_v10  ;;  %v4639_v38 = vpop.xlane.xlu0 %4638  ;;  %v9090_v54 = vpop.permute.xlu1 %4672 }
0x10de   :  { %v4646_v41 = vsub.f32 %v8936_v35, %v4639_v38  ;;  %7275 = vpow2.f32 %v4403_v11 }
0x10df   :  { %v9072_v34 = vpop.eup %7269 }
0x10e0   :  { %v4173_v32 = vsel %vm472_vm5, %v9072_v34, 0.0  ;;  %v4649_v24 = vmul.f32 1.442695, %v4646_v41 }
0x10e1   :  { %4174 = vadd.xlane.f32.xlu1 %v4173_v32  ;;  %v9092_v27 = vpop.permute.xlu0 %4674 }
0x10e2   :  { %7277 = vpow2.f32 %v4649_v24 }
0x10e3   :  { %v9076_v13 = vpop.eup %7271 }
0x10e4   :  { %v4405_v30 = vsel %vm472_vm5, %v9076_v13, 0.0 }
0x10e5   :  { %4406 = vadd.xlane.f32.xlu1 %v4405_v30 }
0x10e7   :  { %v9080_v36 = vpop.eup %7273 }
0x10e8   :  { %v4408_v63 = vsel %vm472_vm5, %v9080_v36, 0.0 }
0x10e9   :  { %4409 = vadd.xlane.f32.xlu0 %v4408_v63 }
0x10eb   :  { %v9097_v35 = vpop.eup %7275 }
0x10ef   :  { %v9102_v11 = vpop.eup %7277 }
0x10f0   :  { %v4655_v24 = vsel %vm472_vm5, %v9102_v11, 0.0 }
0x10f6   :  { %4924 = vrot.lane.b32.xlu1 %v8635_v61, %s7397_s18 }
0x10ff   :  { %4670 = vrot.lane.b32.xlu0 %v8641_v48, %s7396_s17 }
0x110e   :  { %v4642_v62 = vpop.xlane.xlu1 %4641 }
0x110f   :  { %v4647_v61 = vsub.f32 %v8961_v57, %v4642_v62  ;;  %v4411_v57 = vsel %vm472_vm5, %v9097_v35, 0.0 }
0x1111   :  { %v4651_v60 = vmul.f32 1.442695, %v4647_v61 }
0x1112   :  { %v4889_v56 = vpop.xlane.xlu1 %4888  ;;  %v4645_v10 = vpop.xlane.xlu0 %4644 }
0x1113   :  { %7279 = vpow2.f32 %v4651_v60  ;;  %v4896_v43 = vsub.f32 %v8969_v7, %v4889_v56  ;;  %v4648_v32 = vsub.f32 %v8966_v4, %v4645_v10 }
0x1115   :  { %v4653_v30 = vmul.f32 1.442695, %v4648_v32  ;;  %v4899_v63 = vmul.f32 1.442695, %v4896_v43 }
0x1116   :  { %v4892_v53 = vpop.xlane.xlu0 %4891 }
0x1117   :  { %v4897_v18 = vsub.f32 %v8976_v21, %v4892_v53  ;;  %7281 = vpow2.f32 %v4653_v30 }
0x1118   :  { %7283 = vpow2.f32 %v4899_v63 }
0x1119   :  { %v4901_v38 = vmul.f32 1.442695, %v4897_v18 }
0x111a   :  { %4412 = vadd.xlane.f32.xlu1 %v4411_v57  ;;  %v4895_v41 = vpop.xlane.xlu0 %4894 }
0x111b   :  { %7285 = vpow2.f32 %v4901_v38  ;;  %v4898_v4 = vsub.f32 %v8987_v28, %v4895_v41 }
0x111d   :  { %v4903_v7 = vmul.f32 1.442695, %v4898_v4 }
0x111e   :  { %4656 = vadd.xlane.f32.xlu1 %v4655_v24 }
0x111f   :  { %7287 = vpow2.f32 %v4903_v7 }
0x1120   :  { %v9107_v21 = vpop.eup %7279 }
0x1121   :  { %v4658_v62 = vsel %vm472_vm5, %v9107_v21, 0.0 }
0x1122   :  { %4659 = vadd.xlane.f32.xlu0 %v4658_v62 }
0x1124   :  { %v9111_v61 = vpop.eup %7281 }
0x1125   :  { %v4661_v60 = vsel %vm472_vm5, %v9111_v61, 0.0  ;;  %v9115_v56 = vpop.eup %7283 }
0x1126   :  { %4662 = vadd.xlane.f32.xlu1 %v4661_v60  ;;  %v4905_v43 = vsel %vm472_vm5, %v9115_v56, 0.0 }
0x1128   :  { %v9117_v28 = vpop.eup %7285 }
0x1129   :  { %v4908_v10 = vsel %vm472_vm5, %v9117_v28, 0.0 }
0x112a   :  { %4909 = vadd.xlane.f32.xlu0 %v4908_v10  ;;  %4906 = vadd.xlane.f32.xlu1 %v4905_v43 }
0x112c   :  { %v9123_v32 = vpop.eup %7287 }
0x112d   :  { %v4911_v30 = vsel %vm472_vm5, %v9123_v32, 0.0 }
0x112e   :  { %4912 = vadd.xlane.f32.xlu1 %v4911_v30 }
0x1132   :  { %v3184_v63 = vpop.xlane.xlu1 %3183 }
0x1133   :  { %7289 = vrcp.f32 %v3184_v63 }
0x1136   :  { %v3422_v53 = vpop.xlane.xlu1 %3421 }
0x113a   :  { %v3187_v18 = vpop.xlane.xlu1 %3186  ;;  %v3425_v38 = vpop.xlane.xlu0 %3424 }
0x113b   :  { %7291 = vrcp.f32 %v3187_v18 }
0x113e   :  { %v3190_v57 = vpop.xlane.xlu0 %3189  ;;  %v3428_v7 = vpop.xlane.xlu1 %3427 }
0x113f   :  { %4920 = vrot.lane.b32.xlu1 %v8641_v48, %s7397_s18  ;;  %7293 = vrcp.f32 %v3190_v57 }
0x1140   :  { %v7290_v41 = vpop.eup %7289  ;;  %4922 = vrot.lane.b32.xlu0 %v8643_v0, %s7397_s18  ;;  %7295 = vrcp.f32 %v3422_v53 }
0x1141   :  { %v3194_v4 = vmul.f32 %v7290_v41, %v9007_v50  ;;  %7297 = vrcp.f32 %v3425_v38 }
0x1142   :  { %7299 = vrcp.f32 %v3428_v7  ;;  %v3675_v62 = vpop.xlane.xlu0 %3674 }
0x1143   :  { %6764 = vmatmul.mubr.msk.f32.vlgmr.msra.gmra.mxu0 %vm472_vm5, %v3194_v4 }
0x1144   :  { %6788 = vmatpush3.msra.mxu0 %v8940_v22  ;;  %6766 = vmatprep.mubr.msk.f32.mxu0 %vm7387_vm2, %v7385_v42  ;;  %v3672_v22 = vpop.xlane.xlu1 %3671 }
0x1145   :  { %6789 = vmatprep.subr.mxu0 %v7385_v42  ;;  %7301 = vrcp.f32 %v3672_v22 }
0x1146   :  { %6790 = vmatpush3.msra.mxu0 %v8956_v1  ;;  %7303 = vrcp.f32 %v3675_v62 }
0x1147   :  { %6791 = vmatprep.subr.mxu0 %v7385_v42 }
0x1148   :  { %6792 = vmatpush3.msra.mxu0 %v8942_v37  ;;  %v7292_v48 = vpop.eup %7291  ;;  %v3678_v37 = vpop.xlane.xlu1 %3677 }
0x1149   :  { %6817 = vmatprep.subr.mxu0 %v7385_v42  ;;  %v3195_v0 = vmul.f32 %v7292_v48, %v9016_v52  ;;  %7305 = vrcp.f32 %v3678_v37 }
0x114b   :  { %6767 = vmatmul.mubr.msk.f32.gmra.mxu0 %vm472_vm5, %v3195_v0 }
0x114c   :  { %6769 = vmatprep.mubr.msk.f32.mxu0 %vm7387_vm2, %v7385_v42  ;;  %v7294_v50 = vpop.eup %7293  ;;  %v3922_v43 = vpop.xlane.xlu1 %3921 }
0x114d   :  { %v3196_v1 = vmul.f32 %v7294_v50, %v9028_v39  ;;  %v7296_v24 = vpop.eup %7295  ;;  %7307 = vrcp.f32 %v3922_v43 }
0x114e   :  { %v3432_v52 = vmul.f32 %v7296_v24, %v9012_v29  ;;  %v7298_v60 = vpop.eup %7297 }
0x114f   :  { %6770 = vmatmul.mubr.msk.f32.gmra.mxu0 %vm472_vm5, %v3196_v1  ;;  %v3433_v39 = vmul.f32 %v7298_v60, %v9019_v45  ;;  %v7300_v10 = vpop.eup %7299  ;;  %v3925_v45 = vpop.xlane.xlu0 %3924 }
0x1150   :  { %6793 = vmatprep.mubr.msk.f32.mxu0 %vm7387_vm2, %v7385_v42  ;;  %7309 = vrcp.f32 %v3925_v45 }
0x1152   :  { %v7302_v29 = vpop.eup %7301 }
0x1153   :  { %6794 = vmatmul.mubr.msk.f32.vlgmr.msra.gmra.mxu0 %vm472_vm5, %v3432_v52  ;;  %v7304_v30 = vpop.eup %7303 }
0x1154   :  { %6818 = vmatpush3.msra.mxu0 %v8946_v6  ;;  %6796 = vmatprep.mubr.msk.f32.mxu0 %vm7387_vm2, %v7385_v42  ;;  %v3434_v6 = vmul.f32 %v7300_v10, %v9025_v55  ;;  %v3683_v55 = vmul.f32 %v7304_v30, %v9035_v8 }
0x1155   :  { %6819 = vmatprep.subr.mxu0 %v7385_v42 }
0x1156   :  { %6820 = vmatpush3.msra.mxu0 %v8963_v3  ;;  %v3682_v3 = vmul.f32 %v7302_v29, %v9037_v25  ;;  %v7306_v63 = vpop.eup %7305 }
0x1157   :  { %6821 = vmatprep.subr.mxu0 %v7385_v42  ;;  %6797 = vmatmul.mubr.msk.f32.gmra.mxu0 %vm472_vm5, %v3433_v39 }
0x1158   :  { %6822 = vmatpush3.msra.mxu0 %v8950_v58  ;;  %6799 = vmatprep.mubr.msk.f32.mxu0 %vm7387_vm2, %v7385_v42  ;;  %v3928_v58 = vpop.xlane.xlu1 %3927 }
0x1159   :  { %6847 = vmatprep.subr.mxu0 %v7385_v42  ;;  %7311 = vrcp.f32 %v3928_v58 }
0x115a   :  { %v7308_v25 = vpop.eup %7307 }
0x115b   :  { %6800 = vmatmul.mubr.msk.f32.gmra.mxu0 %vm472_vm5, %v3434_v6  ;;  %v3932_v18 = vmul.f32 %v7308_v25, %v9047_v23 }
0x115c   :  { %6823 = vmatprep.mubr.msk.f32.mxu0 %vm7387_vm2, %v7385_v42 }
0x115f   :  { %6824 = vmatmul.mubr.msk.f32.vlgmr.msra.gmra.mxu0 %vm472_vm5, %v3682_v3 }
0x1160   :  { %6848 = vmatpush3.msra.mxu0 %v8952_v44  ;;  %6826 = vmatprep.mubr.msk.f32.mxu0 %vm7387_vm2, %v7385_v42  ;;  %v3684_v44 = vmul.f32 %v7306_v63, %v9043_v59 }
0x1161   :  { %6849 = vmatprep.subr.mxu0 %v7385_v42 }
0x1162   :  { %6850 = vmatpush3.msra.mxu0 %v8982_v49  ;;  %v4169_v53 = vpop.xlane.xlu1 %4168 }
0x1163   :  { %6851 = vmatprep.subr.mxu0 %v7385_v42  ;;  %6827 = vmatmul.mubr.msk.f32.gmra.mxu0 %vm472_vm5, %v3683_v55  ;;  %7313 = vrcp.f32 %v4169_v53 }
0x1164   :  { %6852 = vmatpush3.msra.mxu0 %v8954_v46  ;;  %6829 = vmatprep.mubr.msk.f32.mxu0 %vm7387_vm2, %v7385_v42  ;;  %v7310_v46 = vpop.eup %7309 }
0x1165   :  { %6877 = vmatprep.subr.mxu0 %v7385_v42  ;;  %v3933_v59 = vmul.f32 %v7310_v46, %v9051_v51 }
0x1166   :  { %v4172_v8 = vpop.xlane.xlu0 %4171  ;;  %v7312_v38 = vpop.eup %7311 }
0x1167   :  { %6830 = vmatmul.mubr.msk.f32.gmra.mxu0 %vm472_vm5, %v3684_v44  ;;  %7315 = vrcp.f32 %v4172_v8 }
0x1168   :  { %6853 = vmatprep.mubr.msk.f32.mxu0 %vm7387_vm2, %v7385_v42 }
0x116a   :  { %v4175_v49 = vpop.xlane.xlu1 %4174 }
0x116b   :  { %6854 = vmatmul.mubr.msk.f32.vlgmr.msra.gmra.mxu0 %vm472_vm5, %v3932_v18  ;;  %7317 = vrcp.f32 %v4175_v49  ;;  %v6007_v49 = vld [vmem:[%s9576_s5 + $0xb8] sm:$0xff]  ;;  %v6006_v18 = vld [vmem:[%s9576_s5 + $0xb0] sm:$0xff] }
0x116c   :  { %6878 = vmatpush3.msra.mxu0 %v8958_v31  ;;  %6856 = vmatprep.mubr.msk.f32.mxu0 %vm7387_vm2, %v7385_v42  ;;  %v3934_v31 = vmul.f32 %v7312_v38, %v9056_v5  ;;  %v6005_v38 = vld [vmem:[%s9576_s5 + $0xa8] sm:$0xff] }
0x116d   :  { %6879 = vmatprep.subr.mxu0 %v7385_v42  ;;  %6982 = vmatprep.subr.mxu1 %v6007_v49 }
0x116e   :  { %6880 = vmatpush3.msra.mxu0 %v8991_v33  ;;  %v4407_v57 = vpop.xlane.xlu1 %4406  ;;  %6983 = vmatpush3.msra.mxu1 %v6007_v49 }
0x116f   :  { %6881 = vmatprep.subr.mxu0 %v7385_v42  ;;  %6857 = vmatmul.mubr.msk.f32.gmra.mxu0 %vm472_vm5, %v3933_v59  ;;  %7319 = vrcp.f32 %v4407_v57  ;;  %v6004_v57 = vld [vmem:[%s9576_s5 + $0xa0] sm:$0xff] }
0x1170   :  { %6882 = vmatpush3.msra.mxu0 %v8973_v15  ;;  %6859 = vmatprep.mubr.msk.f32.mxu0 %vm7387_vm2, %v7385_v42  ;;  %v7314_v23 = vpop.eup %7313 }
0x1171   :  { %6907 = vmatprep.subr.mxu0 %v7385_v42  ;;  %v4179_v33 = vmul.f32 %v7314_v23, %v9064_v26  ;;  %6984 = vmatprep.subr.mxu1 %v6006_v18 }
0x1172   :  { %v4410_v51 = vpop.xlane.xlu0 %4409  ;;  %6985 = vmatpush3.msra.mxu1 %v6006_v18 }
0x1173   :  { %6860 = vmatmul.mubr.msk.f32.gmra.mxu0 %vm472_vm5, %v3934_v31  ;;  %7321 = vrcp.f32 %v4410_v51  ;;  %6986 = vmatprep.subr.mxu1 %v6005_v38 }
0x1174   :  { %6883 = vmatprep.mubr.msk.f32.mxu0 %vm7387_vm2, %v7385_v42  ;;  %v7316_v41 = vpop.eup %7315  ;;  %6987 = vmatpush3.msra.mxu1 %v6005_v38 }
0x1175   :  { %v4180_v15 = vmul.f32 %v7316_v41, %v9068_v47  ;;  %6988 = vmatprep.subr.mxu1 %v6004_v57 }
0x1176   :  { %6989 = vmatpush3.msra.mxu1 %v6004_v57 }
0x1177   :  { %6884 = vmatmul.mubr.msk.f32.vlgmr.msra.gmra.mxu0 %vm472_vm5, %v4179_v33 }
0x1178   :  { %6908 = vmatpush3.msra.mxu0 %v8984_v12  ;;  %6886 = vmatprep.mubr.msk.f32.mxu0 %vm7387_vm2, %v7385_v42  ;;  %v7318_v5 = vpop.eup %7317 }
0x1179   :  { %6909 = vmatprep.subr.mxu0 %v7385_v42  ;;  %v4181_v12 = vmul.f32 %v7318_v5, %v9072_v34  ;;  %v4671_v34 = vpop.permute.xlu0 %4670 }
0x117a   :  { %6910 = vmatpush3.msra.mxu0 %v8997_v20 }
0x117b   :  { %6911 = vmatprep.subr.mxu0 %v7385_v42  ;;  %6887 = vmatmul.mubr.msk.f32.gmra.mxu0 %vm472_vm5, %v4180_v15 }
0x117c   :  { %6912 = vmatpush3.msra.mxu0 %v8995_v17  ;;  %6889 = vmatprep.mubr.msk.f32.mxu0 %vm7387_vm2, %v7385_v42  ;;  %v7320_v26 = vpop.eup %7319 }
0x117d   :  { %6937 = vmatprep.subr.mxu0 %v7385_v42  ;;  %v4417_v20 = vmul.f32 %v7320_v26, %v9076_v13  ;;  %v4925_v13 = vpop.permute.xlu1 %4924 }
0x117f   :  { %6890 = vmatmul.mubr.msk.f32.gmra.mxu0 %vm472_vm5, %v4181_v12 }
0x1180   :  { %6913 = vmatprep.mubr.msk.f32.mxu0 %vm7387_vm2, %v7385_v42  ;;  %v7322_v47 = vpop.eup %7321 }
0x1181   :  { %v4418_v17 = vmul.f32 %v7322_v47, %v9080_v36 }
0x1183   :  { %6914 = vmatmul.mubr.msk.f32.vlgmr.msra.gmra.mxu0 %vm472_vm5, %v4417_v20 }
0x1184   :  { %6938 = vmatpush3.msra.mxu0 %v9092_v27  ;;  %6916 = vmatprep.mubr.msk.f32.mxu0 %vm7387_vm2, %v7385_v42 }
0x1185   :  { %6939 = vmatprep.subr.mxu0 %v7385_v42 }
0x1186   :  { %6940 = vmatpush3.msra.mxu0 %v9090_v54 }
0x1187   :  { %6941 = vmatprep.subr.mxu0 %v7385_v42  ;;  %6917 = vmatmul.mubr.msk.f32.gmra.mxu0 %vm472_vm5, %v4418_v17 }
0x1188   :  { %6942 = vmatpush3.msra.mxu0 %v4671_v34  ;;  %6919 = vmatprep.mubr.msk.f32.mxu0 %vm7387_vm2, %v7385_v42 }
0x1189   :  { %6967 = vmatprep.subr.mxu0 %v7385_v42 }
0x11a3   :  { %v4413_v27 = vpop.xlane.xlu1 %4412 }
0x11a4   :  { %7323 = vrcp.f32 %v4413_v27 }
0x11a7   :  { %v4657_v4 = vpop.xlane.xlu1 %4656 }
0x11a8   :  { %7325 = vrcp.f32 %v4657_v4 }
0x11ab   :  { %v4660_v7 = vpop.xlane.xlu0 %4659 }
0x11ac   :  { %7327 = vrcp.f32 %v4660_v7 }
0x11af   :  { %v4663_v36 = vpop.xlane.xlu1 %4662 }
0x11b0   :  { %7329 = vrcp.f32 %v4663_v36 }
0x11b1   :  { %v7324_v54 = vpop.eup %7323 }
0x11b2   :  { %v4419_v48 = vmul.f32 %v7324_v54, %v9097_v35 }
0x11b3   :  { %v4907_v0 = vpop.xlane.xlu1 %4906  ;;  %v4910_v22 = vpop.xlane.xlu0 %4909 }
0x11b4   :  { %6920 = vmatmul.mubr.msk.f32.gmra.mxu0 %vm472_vm5, %v4419_v48  ;;  %7331 = vrcp.f32 %v4907_v0 }
0x11b5   :  { %v7326_v50 = vpop.eup %7325  ;;  %6943 = vmatprep.mubr.msk.f32.mxu0 %vm7387_vm2, %v7385_v42  ;;  %7333 = vrcp.f32 %v4910_v22 }
0x11b6   :  { %v4667_v1 = vmul.f32 %v7326_v50, %v9102_v11 }
0x11b7   :  { %v4913_v24 = vpop.xlane.xlu1 %4912  ;;  %v4923_v35 = vpop.permute.xlu0 %4922 }
0x11b8   :  { %6944 = vmatmul.mubr.msk.f32.vlgmr.msra.gmra.mxu0 %vm472_vm5, %v4667_v1  ;;  %7335 = vrcp.f32 %v4913_v24 }
0x11b9   :  { %v7328_v62 = vpop.eup %7327  ;;  %6968 = vmatpush3.msra.mxu0 %v4925_v13  ;;  %6946 = vmatprep.mubr.msk.f32.mxu0 %vm7387_vm2, %v7385_v42 }
0x11ba   :  { %6969 = vmatprep.subr.mxu0 %v7385_v42  ;;  %v4668_v37 = vmul.f32 %v7328_v62, %v9107_v21 }
0x11bb   :  { %6970 = vmatpush3.msra.mxu0 %v4923_v35  ;;  %v4921_v52 = vpop.permute.xlu1 %4920 }
0x11bc   :  { %6971 = vmatprep.subr.mxu0 %v7385_v42  ;;  %6947 = vmatmul.mubr.msk.f32.gmra.mxu0 %vm472_vm5, %v4668_v37 }
0x11bd   :  { %6972 = vmatpush3.msra.mxu0 %v4921_v52  ;;  %6949 = vmatprep.mubr.msk.f32.mxu0 %vm7387_vm2, %v7385_v42  ;;  %v7330_v11 = vpop.eup %7329 }
0x11be   :  { %v4669_v60 = vmul.f32 %v7330_v11, %v9111_v61 }
0x11c0   :  { %6950 = vmatmul.mubr.msk.f32.gmra.mxu0 %vm472_vm5, %v4669_v60 }
0x11c1   :  { %v7332_v39 = vpop.eup %7331  ;;  %6973 = vmatprep.mubr.msk.f32.mxu0 %vm7387_vm2, %v7385_v42 }
0x11c2   :  { %v4917_v21 = vmul.f32 %v7332_v39, %v9115_v56  ;;  %v7334_v10 = vpop.eup %7333 }
0x11c3   :  { %v4918_v43 = vmul.f32 %v7334_v10, %v9117_v28 }
0x11c4   :  { %6974 = vmatmul.mubr.msk.f32.vlgmr.msra.gmra.mxu0 %vm472_vm5, %v4917_v21 }
0x11c5   :  { %6976 = vmatprep.mubr.msk.f32.mxu0 %vm7387_vm2, %v7385_v42  ;;  %v7336_v6 = vpop.eup %7335 }
0x11c6   :  { %v4919_v61 = vmul.f32 %v7336_v6, %v9123_v32 }
0x11c8   :  { %6977 = vmatmul.mubr.msk.f32.gmra.mxu0 %vm472_vm5, %v4918_v43 }
0x11c9   :  { %6979 = vmatprep.mubr.msk.f32.mxu0 %vm7387_vm2, %v7385_v42 }
0x11cc   :  { %6980 = vmatmul.mubr.msk.f32.gmra.mxu0 %vm472_vm5, %v4919_v61 }
0x1203   :  { %v3281_v29 = vpop.f32.mrf.mxu0 }
0x1204   :  { %3295 = vst.msk [vmem:[#allocation2] sm:$0xff] %vm379_vm3, %v3281_v29 }
0x1205   :  { %v6765_v56 = vpop.f32.mrf.mxu0 }
0x120b   :  { %v3286_v45 = vpop.f32.mrf.mxu0 }
0x120c   :  { %3296 = vst.msk [vmem:[#allocation2 + $0x8] sm:$0xff] %vm379_vm3, %v3286_v45 }
0x120d   :  { %v6768_v3 = vpop.f32.mrf.mxu0 }
0x120f   :  { %v3291_v30 = vpop.f32.mrf.mxu0 }
0x1210   :  { %3297 = vst.msk [vmem:[#allocation2 + $0x10] sm:$0xff] %vm379_vm3, %v3291_v30 }
0x1211   :  { %v6771_v28 = vpop.f32.mrf.mxu0 }
0x1213   :  { %v3519_v58 = vpop.f32.mrf.mxu0 }
0x1214   :  { %3536 = vrot.lane.b32.xlu0 %v3519_v58, %s7399_s19 }
0x1215   :  { %v6795_v42 = vpop.f32.mrf.mxu0 }
0x1217   :  { %v3524_v55 = vpop.f32.mrf.mxu0 }
0x1218   :  { %3538 = vrot.lane.b32.xlu1 %v3524_v55, %s7399_s19 }
0x1219   :  { %v6798_v32 = vpop.f32.mrf.mxu0 }
0x121b   :  { %v3529_v63 = vpop.f32.mrf.mxu0 }
0x121c   :  { %3540 = vrot.lane.b32.xlu0 %v3529_v63, %s7399_s19 }
0x121d   :  { %v6801_v53 = vpop.f32.mrf.mxu0 }
0x121f   :  { %v3769_v44 = vpop.f32.mrf.mxu0 }
0x1220   :  { %3786 = vrot.lane.b32.xlu0 %v3769_v44, %s7400_s20 }
0x1221   :  { %v6825_v25 = vpop.f32.mrf.mxu0 }
0x1223   :  { %v3774_v8 = vpop.f32.mrf.mxu0 }
0x1224   :  { %3788 = vrot.lane.b32.xlu1 %v3774_v8, %s7400_s20 }
0x1225   :  { %v6828_v46 = vpop.f32.mrf.mxu0 }
0x1227   :  { %v3779_v59 = vpop.f32.mrf.mxu0 }
0x1228   :  { %3790 = vrot.lane.b32.xlu1 %v3779_v59, %s7400_s20  ;;  %v6009_v59 = vld [vmem:[%s9577_s6 + $0x2] ss:$0 sm:$0xff] }
0x1229   :  { %v6831_v31 = vpop.f32.mrf.mxu0 }
0x122b   :  { %v4019_v23 = vpop.f32.mrf.mxu0 }
0x122c   :  { %4036 = vrot.lane.b32.xlu0 %v4019_v23, %s7401_s21 }
0x122d   :  { %v6855_v51 = vpop.f32.mrf.mxu0 }
0x122f   :  { %v4024_v33 = vpop.f32.mrf.mxu0 }
0x1230   :  { %4038 = vrot.lane.b32.xlu1 %v4024_v33, %s7401_s21 }
0x1231   :  { %v6858_v41 = vpop.f32.mrf.mxu0 }
0x1233   :  { %v4029_v15 = vpop.f32.mrf.mxu0 }
0x1234   :  { %4040 = vrot.lane.b32.xlu1 %v4029_v15, %s7401_s21 }
0x1235   :  { %v6861_v5 = vpop.f32.mrf.mxu0 }
0x1237   :  { %v4266_v12 = vpop.f32.mrf.mxu0 }
0x1238   :  { %4280 = vst.msk [vmem:[#allocation2 + $0x18] sm:$0xff] %vm379_vm3, %v4266_v12 }
0x1239   :  { %v6885_v26 = vpop.f32.mrf.mxu0 }
0x123b   :  { %v4271_v20 = vpop.f32.mrf.mxu0 }
0x123c   :  { %4281 = vst.msk [vmem:[#allocation2 + $0x20] sm:$0xff] %vm379_vm3, %v4271_v20 }
0x123d   :  { %v6888_v47 = vpop.f32.mrf.mxu0 }
0x123f   :  { %v4276_v17 = vpop.f32.mrf.mxu0 }
0x1240   :  { %4282 = vst.msk [vmem:[#allocation2 + $0x28] sm:$0xff] %vm379_vm3, %v4276_v17 }
0x1241   :  { %v6891_v34 = vpop.f32.mrf.mxu0 }
0x1243   :  { %v4504_v13 = vpop.f32.mrf.mxu0 }
0x1244   :  { %4521 = vrot.lane.b32.xlu0 %v4504_v13, %s7399_s19 }
0x1245   :  { %v6915_v27 = vpop.f32.mrf.mxu0 }
0x1247   :  { %v4509_v4 = vpop.f32.mrf.mxu0 }
0x1248   :  { %4523 = vrot.lane.b32.xlu0 %v4509_v4, %s7399_s19 }
0x1249   :  { %v6918_v7 = vpop.f32.mrf.mxu0 }
0x1274   :  { %v4514_v36 = vpop.f32.mrf.mxu0 }
0x1275   :  { %4525 = vrot.lane.b32.xlu1 %v4514_v36, %s7399_s19 }
0x1276   :  { %v6921_v54 = vpop.f32.mrf.mxu0 }
0x1278   :  { %v4754_v48 = vpop.f32.mrf.mxu0 }
0x1279   :  { %4771 = vrot.lane.b32.xlu0 %v4754_v48, %s7400_s20 }
0x127a   :  { %v6945_v0 = vpop.f32.mrf.mxu0 }
0x127c   :  { %v4759_v22 = vpop.f32.mrf.mxu0 }
0x127d   :  { %4773 = vrot.lane.b32.xlu0 %v4759_v22, %s7400_s20 }
0x127e   :  { %v6948_v50 = vpop.f32.mrf.mxu0 }
0x1280   :  { %v4764_v1 = vpop.f32.mrf.mxu0 }
0x1281   :  { %4775 = vrot.lane.b32.xlu1 %v4764_v1, %s7400_s20 }
0x1282   :  { %v6951_v24 = vpop.f32.mrf.mxu0 }
0x1284   :  { %v5004_v62 = vpop.f32.mrf.mxu0 }
0x1285   :  { %5021 = vrot.lane.b32.xlu1 %v5004_v62, %s7401_s21 }
0x1286   :  { %v6975_v35 = vpop.f32.mrf.mxu0  ;;  %v3537_v37 = vpop.permute.xlu0 %3536 }
0x1287   :  { %3545 = vst.msk [vmem:[#allocation2] sm:$0xff] %vm854_vm6, %v3537_v37  ;;  %v6019_v35 = vld [vmem:[%s9574_s3 + $0x78] sm:$0xff]  ;;  %v6018_v37 = vld [vmem:[%s9574_s3 + $0x70] sm:$0xff] }
0x1288   :  { %v5009_v52 = vpop.f32.mrf.mxu0  ;;  %6999 = vmatprep.subr.mxu0 %v6019_v35 }
0x1289   :  { %5023 = vrot.lane.b32.xlu0 %v5009_v52, %s7401_s21  ;;  %7000 = vmatpush3.msra.mxu0 %v6019_v35  ;;  %v6017_v52 = vld [vmem:[%s9574_s3 + $0x68] sm:$0xff]  ;;  %v6035_v35 = vld [vmem:[%s9576_s5 + $0xf8] sm:$0xff] }
0x128a   :  { %v6978_v11 = vpop.f32.mrf.mxu0  ;;  %v3539_v60 = vpop.permute.xlu1 %3538  ;;  %7001 = vmatprep.subr.mxu0 %v6018_v37 }
0x128b   :  { %3546 = vst.msk [vmem:[#allocation2 + $0x8] sm:$0xff] %vm854_vm6, %v3539_v60  ;;  %7002 = vmatpush3.msra.mxu0 %v6018_v37  ;;  %v6016_v11 = vld [vmem:[%s9574_s3 + $0x60] sm:$0xff]  ;;  %v6034_v37 = vld [vmem:[%s9576_s5 + $0xf0] sm:$0xff] }
0x128c   :  { %v5014_v39 = vpop.f32.mrf.mxu0  ;;  %7003 = vmatprep.subr.mxu0 %v6017_v52 }
0x128d   :  { %5025 = vrot.lane.b32.xlu1 %v5014_v39, %s7401_s21  ;;  %7004 = vmatpush3.msra.mxu0 %v6017_v52 }
0x128e   :  { %v6981_v21 = vpop.f32.mrf.mxu0  ;;  %v3541_v10 = vpop.permute.xlu0 %3540  ;;  %7005 = vmatprep.subr.mxu0 %v6016_v11 }
0x128f   :  { %3547 = vst.msk [vmem:[#allocation2 + $0x10] sm:$0xff] %vm854_vm6, %v3541_v10  ;;  %7006 = vmatpush3.msra.mxu0 %v6016_v11 }
0x1292   :  { %v3787_v43 = vpop.permute.xlu0 %3786 }
0x1293   :  { %3795 = vst.msk [vmem:[#allocation2] sm:$0xff] %vm1105_vm7, %v3787_v43 }
0x1296   :  { %v3789_v6 = vpop.permute.xlu1 %3788 }
0x1297   :  { %3796 = vst.msk [vmem:[#allocation2 + $0x8] sm:$0xff] %vm1105_vm7, %v3789_v6 }
0x129a   :  { %v3791_v61 = vpop.permute.xlu1 %3790 }
0x129b   :  { %3797 = vst.msk [vmem:[#allocation2 + $0x10] sm:$0xff] %vm1105_vm7, %v3791_v61 }
0x129e   :  { %v4037_v29 = vpop.permute.xlu0 %4036 }
0x129f   :  { %4045 = vst.msk [vmem:[#allocation2] sm:$0xff] %vm1356_vm8, %v4037_v29 }
0x12a2   :  { %v4039_v56 = vpop.permute.xlu1 %4038 }
0x12a3   :  { %4046 = vst.msk [vmem:[#allocation2 + $0x8] sm:$0xff] %vm1356_vm8, %v4039_v56 }
0x12a6   :  { %v4041_v45 = vpop.permute.xlu1 %4040  ;;  %v5033_v3 = vld [vmem:[#allocation2] sm:$0xff] }
0x12a7   :  { %4047 = vst.msk [vmem:[#allocation2 + $0x10] sm:$0xff] %vm1356_vm8, %v4041_v45  ;;  %6990 = vmatprep.mubr.msk.f32.mxu1 %vm168_vm1, %v5033_v3 }
0x12aa   :  { %v5034_v30 = vld [vmem:[#allocation2 + $0x8] sm:$0xff] }
0x12ab   :  { %6991 = vmatmul.mubr.msk.f32.vlgmr.msra.gmra.mxu1 %vm168_vm1, %v5034_v30 }
0x12ae   :  { %v5035_v28 = vld [vmem:[#allocation2 + $0x10] sm:$0xff] }
0x12af   :  { %6993 = vmatprep.mubr.msk.f32.mxu1 %vm168_vm1, %v5035_v28 }
0x12b6   :  { %v4522_v58 = vpop.permute.xlu0 %4521 }
0x12b7   :  { %4530 = vst.msk [vmem:[#allocation2 + $0x18] sm:$0xff] %vm854_vm6, %v4522_v58 }
0x12ba   :  { %v4524_v42 = vpop.permute.xlu0 %4523 }
0x12bb   :  { %4531 = vst.msk [vmem:[#allocation2 + $0x20] sm:$0xff] %vm854_vm6, %v4524_v42 }
0x12e7   :  { %v4526_v55 = vpop.permute.xlu1 %4525 }
0x12e8   :  { %4532 = vst.msk [vmem:[#allocation2 + $0x28] sm:$0xff] %vm854_vm6, %v4526_v55 }
0x12eb   :  { %v4772_v32 = vpop.permute.xlu0 %4771 }
0x12ec   :  { %4780 = vst.msk [vmem:[#allocation2 + $0x18] sm:$0xff] %vm1105_vm7, %v4772_v32 }
0x12ef   :  { %v4774_v63 = vpop.permute.xlu0 %4773 }
0x12f0   :  { %4781 = vst.msk [vmem:[#allocation2 + $0x20] sm:$0xff] %vm1105_vm7, %v4774_v63 }
0x12f3   :  { %v4776_v53 = vpop.permute.xlu1 %4775 }
0x12f4   :  { %4782 = vst.msk [vmem:[#allocation2 + $0x28] sm:$0xff] %vm1105_vm7, %v4776_v53 }
0x12f7   :  { %v5022_v44 = vpop.permute.xlu1 %5021 }
0x12f8   :  { %5030 = vst.msk [vmem:[#allocation2 + $0x18] sm:$0xff] %vm1356_vm8, %v5022_v44 }
0x12fb   :  { %v5024_v25 = vpop.permute.xlu0 %5023 }
0x12fc   :  { %5031 = vst.msk [vmem:[#allocation2 + $0x20] sm:$0xff] %vm1356_vm8, %v5024_v25 }
0x12ff   :  { %v5026_v8 = vpop.permute.xlu1 %5025  ;;  %v5036_v49 = vld [vmem:[#allocation2 + $0x18] sm:$0xff] }
0x1300   :  { %5032 = vst.msk [vmem:[#allocation2 + $0x28] sm:$0xff] %vm1356_vm8, %v5026_v8  ;;  %6994 = vmatmul.mubr.msk.f32.gmra.mxu1 %vm168_vm1, %v5036_v49 }
0x1303   :  { %v5037_v18 = vld [vmem:[#allocation2 + $0x20] sm:$0xff] }
0x1304   :  { %6996 = vmatprep.mubr.msk.f32.mxu1 %vm168_vm1, %v5037_v18 }
0x1307   :  { %v5038_v46 = vld [vmem:[#allocation2 + $0x28] sm:$0xff] }
0x1308   :  { %6997 = vmatmul.mubr.msk.f32.gmra.mxu1 %vm168_vm1, %v5038_v46 }
0x136b   :  { %v6992_v38 = vpop.f32.mrf.mxu1 }
0x136c   :  { %v5140_v57 = vadd.f32 %v6992_v38, %v6009_v59 }
0x136d   :  { %v5134_v31 = vpop.f32.mrf.mxu1 }
0x136e   :  { %v9326_v23 = vadd.f32 %v5140_v57, %v8522_v16  ;;  %v5135_v51 = vadd.f32 %v6009_v59, %v5134_v31 }
0x1370   :  { %v9329_v33 = vadd.f32 %v5135_v51, %v8525_v19  ;;  %v5172_v41 = vsel %vm168_vm1, %v9326_v23, 0.0 }
0x1371   :  { %5173 = vadd.xlane.f32.xlu1 %v5172_v41 }
0x1372   :  { %v5169_v15 = vsel %vm168_vm1, %v9329_v33, 0.0 }
0x1373   :  { %5170 = vadd.xlane.f32.xlu0 %v5169_v15 }
0x13c0   :  { %v6995_v5 = vpop.f32.mrf.mxu1 }
0x13c1   :  { %v5150_v12 = vadd.f32 %v6995_v5, %v6009_v59 }
0x13c2   :  { %v5144_v26 = vpop.f32.mrf.mxu1 }
0x13c3   :  { %v9336_v20 = vadd.f32 %v5150_v12, %v8532_v9  ;;  %v5145_v16 = vadd.f32 %v6009_v59, %v5144_v26 }
0x13c5   :  { %v9339_v47 = vadd.f32 %v5145_v16, %v8535_v2  ;;  %v5178_v19 = vsel %vm168_vm1, %v9336_v20, 0.0 }
0x13c6   :  { %5179 = vadd.xlane.f32.xlu0 %v5178_v19 }
0x13c7   :  { %v5175_v13 = vsel %vm168_vm1, %v9339_v47, 0.0 }
0x13c8   :  { %v6998_v17 = vpop.f32.mrf.mxu1 }
0x13c9   :  { %v5160_v34 = vadd.f32 %v6998_v17, %v6009_v59  ;;  %v6043_v17 = vld [vmem:[%s9576_s5 + $0x138] sm:$0xff] }
0x13ca   :  { %5176 = vadd.xlane.f32.xlu0 %v5175_v13  ;;  %v5154_v27 = vpop.f32.mrf.mxu1  ;;  %7016 = vmatprep.subr.mxu1 %v6043_v17 }
0x13cb   :  { %v9346_v4 = vadd.f32 %v5160_v34, %v8542_v14  ;;  %v5155_v9 = vadd.f32 %v6009_v59, %v5154_v27  ;;  %7017 = vmatpush3.msra.mxu1 %v6043_v17  ;;  %v6042_v27 = vld [vmem:[%s9576_s5 + $0x130] sm:$0xff] }
0x13cc   :  { %7018 = vmatprep.subr.mxu1 %v6042_v27 }
0x13cd   :  { %v9349_v7 = vadd.f32 %v5155_v9, %v8546_v40  ;;  %v5184_v2 = vsel %vm168_vm1, %v9346_v4, 0.0  ;;  %7019 = vmatpush3.msra.mxu1 %v6042_v27 }
0x13ce   :  { %5185 = vadd.xlane.f32.xlu1 %v5184_v2 }
0x13cf   :  { %v5181_v36 = vsel %vm168_vm1, %v9349_v7, 0.0 }
0x13d0   :  { %5182 = vadd.xlane.f32.xlu0 %v5181_v36  ;;  %v6041_v36 = vld [vmem:[%s9576_s5 + $0x128] sm:$0xff] }
0x13d1   :  { %7020 = vmatprep.subr.mxu1 %v6041_v36 }
0x13d2   :  { %7021 = vmatpush3.msra.mxu1 %v6041_v36 }
0x13fa   :  { %v5174_v54 = vpop.xlane.xlu1 %5173 }
0x13fb   :  { %v5188_v48 = vmul.f32 0.03125, %v5174_v54 }
0x13fc   :  { %v5171_v0 = vpop.xlane.xlu0 %5170 }
0x13fd   :  { %v5194_v22 = vsub.f32 %v9326_v23, %v5188_v48  ;;  %v5187_v50 = vmul.f32 0.03125, %v5171_v0  ;;  %v6040_v48 = vld [vmem:[%s9576_s5 + $0x120] sm:$0xff]  ;;  %v6039_v0 = vld [vmem:[%s9576_s5 + $0x118] sm:$0xff] }
0x13fe   :  { %7022 = vmatprep.subr.mxu1 %v6040_v48 }
0x13ff   :  { %v5193_v14 = vsub.f32 %v9329_v33, %v5187_v50  ;;  %v5200_v1 = vmul.f32 %v5194_v22, %v5194_v22  ;;  %7023 = vmatpush3.msra.mxu1 %v6040_v48  ;;  %v6037_v50 = vld [vmem:[%s9576_s5 + $0x108] sm:$0xff] }
0x1400   :  { %7024 = vmatprep.subr.mxu1 %v6039_v0 }
0x1401   :  { %v5208_v40 = vsel %vm168_vm1, %v5200_v1, 0.0  ;;  %v5199_v24 = vmul.f32 %v5193_v14, %v5193_v14  ;;  %7025 = vmatpush3.msra.mxu1 %v6039_v0 }
0x1402   :  { %5209 = vadd.xlane.f32.xlu1 %v5208_v40  ;;  %v6036_v40 = vld [vmem:[%s9576_s5 + $0x100] sm:$0xff] }
0x1403   :  { %v5205_v62 = vsel %vm168_vm1, %v5199_v24, 0.0 }
0x1404   :  { %5206 = vadd.xlane.f32.xlu0 %v5205_v62 }
0x144f   :  { %v5180_v60 = vpop.xlane.xlu0 %5179 }
0x1450   :  { %v5190_v39 = vmul.f32 0.03125, %v5180_v60  ;;  %v6033_v60 = vld [vmem:[%s9576_s5 + $0xe8] sm:$0xff] }
0x1452   :  { %v9372_v21 = vsub.f32 %v9336_v20, %v5190_v39 }
0x1453   :  { %v5177_v10 = vpop.xlane.xlu0 %5176 }
0x1454   :  { %v5189_v43 = vmul.f32 0.03125, %v5177_v10  ;;  %v5202_v6 = vmul.f32 %v9372_v21, %v9372_v21  ;;  %v6032_v10 = vld [vmem:[%s9576_s5 + $0xe0] sm:$0xff] }
0x1456   :  { %v9377_v61 = vsub.f32 %v9339_v47, %v5189_v43  ;;  %v5214_v29 = vsel %vm168_vm1, %v5202_v6, 0.0  ;;  %v6031_v43 = vld [vmem:[%s9576_s5 + $0xd8] sm:$0xff]  ;;  %v6030_v6 = vld [vmem:[%s9576_s5 + $0xd0] sm:$0xff] }
0x1457   :  { %v5186_v56 = vpop.xlane.xlu1 %5185  ;;  %5215 = vadd.xlane.f32.xlu1 %v5214_v29  ;;  %v6028_v29 = vld [vmem:[%s9576_s5 + $0xc0] sm:$0xff] }
0x1458   :  { %v5192_v45 = vmul.f32 0.03125, %v5186_v56  ;;  %v5201_v3 = vmul.f32 %v9377_v61, %v9377_v61  ;;  %v6021_v56 = vld [vmem:[%s9575_s4 + $0x3] ss:$0 sm:$0xff] }
0x1459   :  { %v5183_v30 = vpop.xlane.xlu0 %5182 }
0x145a   :  { %v9383_v28 = vsub.f32 %v9346_v4, %v5192_v45  ;;  %v5191_v58 = vmul.f32 0.03125, %v5183_v30  ;;  %v5211_v42 = vsel %vm168_vm1, %v5201_v3, 0.0 }
0x145b   :  { %5212 = vadd.xlane.f32.xlu0 %v5211_v42 }
0x145c   :  { %v9387_v55 = vsub.f32 %v9349_v7, %v5191_v58  ;;  %v5204_v32 = vmul.f32 %v9383_v28, %v9383_v28 }
0x145e   :  { %v5220_v63 = vsel %vm168_vm1, %v5204_v32, 0.0  ;;  %v5203_v53 = vmul.f32 %v9387_v55, %v9387_v55 }
0x145f   :  { %5221 = vadd.xlane.f32.xlu1 %v5220_v63 }
0x1460   :  { %v5217_v44 = vsel %vm168_vm1, %v5203_v53, 0.0 }
0x1461   :  { %5218 = vadd.xlane.f32.xlu0 %v5217_v44 }
0x148b   :  { %v5210_v25 = vpop.xlane.xlu1 %5209 }
0x148c   :  { %v5224_v8 = vmul.f32 0.03125, %v5210_v25 }
0x148d   :  { %v5207_v49 = vpop.xlane.xlu0 %5206 }
0x148e   :  { %v5230_v18 = vadd.f32 1e-06, %v5224_v8  ;;  %v5223_v46 = vmul.f32 0.03125, %v5207_v49 }
0x1490   :  { %v5229_v59 = vadd.f32 1e-06, %v5223_v46  ;;  %7337 = vrsqrt.f32 %v5230_v18 }
0x1492   :  { %7339 = vrsqrt.f32 %v5229_v59 }
0x149d   :  { %v7338_v38 = vpop.eup %7337 }
0x149e   :  { %v5242_v51 = vmul.f32 %v7338_v38, %v5194_v22  ;;  %v6038_v22 = vld [vmem:[%s9576_s5 + $0x110] sm:$0xff] }
0x149f   :  { %v7340_v57 = vpop.eup %7339  ;;  %7026 = vmatprep.subr.mxu1 %v6038_v22 }
0x14a0   :  { %v5241_v31 = vmul.f32 %v7340_v57, %v5193_v14  ;;  %7027 = vmatpush3.msra.mxu1 %v6038_v22 }
0x14a1   :  { %7028 = vmatprep.subr.mxu1 %v6037_v50 }
0x14a2   :  { %7007 = vmatprep.mubr.msk.f32.mxu0 %vm168_vm1, %v5241_v31  ;;  %7029 = vmatpush3.msra.mxu1 %v6037_v50 }
0x14a3   :  { %7008 = vmatmul.mubr.msk.f32.vlgmr.msra.gmra.mxu0 %vm168_vm1, %v5242_v51  ;;  %7030 = vmatprep.subr.mxu1 %v6036_v40 }
0x14a4   :  { %7031 = vmatpush3.msra.mxu1 %v6036_v40 }
0x14a5   :  { %7032 = vmatprep.subr.mxu1 %v6035_v35 }
0x14a6   :  { %7033 = vmatpush3.msra.mxu1 %v6035_v35 }
0x14a7   :  { %7034 = vmatprep.subr.mxu1 %v6034_v37 }
0x14a8   :  { %7035 = vmatpush3.msra.mxu1 %v6034_v37 }
0x14a9   :  { %7036 = vmatprep.subr.mxu1 %v6033_v60 }
0x14aa   :  { %7037 = vmatpush3.msra.mxu1 %v6033_v60 }
0x14ab   :  { %7038 = vmatprep.subr.mxu1 %v6032_v10 }
0x14ac   :  { %7039 = vmatpush3.msra.mxu1 %v6032_v10 }
0x14ad   :  { %7040 = vmatprep.subr.mxu1 %v6031_v43 }
0x14ae   :  { %7041 = vmatpush3.msra.mxu1 %v6031_v43 }
0x14af   :  { %7042 = vmatprep.subr.mxu1 %v6030_v6 }
0x14b0   :  { %7043 = vmatpush3.msra.mxu1 %v6030_v6 }
0x14e0   :  { %v5216_v41 = vpop.xlane.xlu1 %5215 }
0x14e1   :  { %v5226_v15 = vmul.f32 0.03125, %v5216_v41 }
0x14e3   :  { %v5232_v5 = vadd.f32 1e-06, %v5226_v15 }
0x14e4   :  { %v5213_v12 = vpop.xlane.xlu0 %5212 }
0x14e5   :  { %v5225_v26 = vmul.f32 0.03125, %v5213_v12  ;;  %7341 = vrsqrt.f32 %v5232_v5 }
0x14e7   :  { %v5231_v16 = vadd.f32 1e-06, %v5225_v26 }
0x14e8   :  { %v5222_v19 = vpop.xlane.xlu1 %5221 }
0x14e9   :  { %7343 = vrsqrt.f32 %v5231_v16  ;;  %v5228_v34 = vmul.f32 0.03125, %v5222_v19 }
0x14ea   :  { %v5219_v13 = vpop.xlane.xlu0 %5218 }
0x14eb   :  { %v5234_v9 = vadd.f32 1e-06, %v5228_v34  ;;  %v5227_v2 = vmul.f32 0.03125, %v5219_v13 }
0x14ed   :  { %v5233_v54 = vadd.f32 1e-06, %v5227_v2  ;;  %7345 = vrsqrt.f32 %v5234_v9 }
0x14ef   :  { %7347 = vrsqrt.f32 %v5233_v54 }
0x14f2   :  { %v7342_v14 = vpop.eup %7341 }
0x14f3   :  { %v5244_v62 = vmul.f32 %v7342_v14, %v9372_v21 }
0x14f6   :  { %v7344_v1 = vpop.eup %7343 }
0x14f7   :  { %v5243_v24 = vmul.f32 %v7344_v1, %v9377_v61  ;;  %v6029_v61 = vld [vmem:[%s9576_s5 + $0xc8] sm:$0xff] }
0x14f8   :  { %7044 = vmatprep.subr.mxu1 %v6029_v61 }
0x14f9   :  { %7010 = vmatprep.mubr.msk.f32.mxu0 %vm168_vm1, %v5243_v24  ;;  %7045 = vmatpush3.msra.mxu1 %v6029_v61 }
0x14fa   :  { %7011 = vmatmul.mubr.msk.f32.gmra.mxu0 %vm168_vm1, %v5244_v62  ;;  %v7346_v52 = vpop.eup %7345  ;;  %7046 = vmatprep.subr.mxu1 %v6028_v29 }
0x14fb   :  { %v5246_v21 = vmul.f32 %v7346_v52, %v9383_v28  ;;  %7047 = vmatpush3.msra.mxu1 %v6028_v29 }
0x14fc   :  { %v7348_v11 = vpop.eup %7347 }
0x14fd   :  { %v5245_v39 = vmul.f32 %v7348_v11, %v9387_v55 }
0x14ff   :  { %7013 = vmatprep.mubr.msk.f32.mxu0 %vm168_vm1, %v5245_v39 }
0x1500   :  { %7014 = vmatmul.mubr.msk.f32.gmra.mxu0 %vm168_vm1, %v5246_v21 }
0x1563   :  { %v7009_v45 = vpop.f32.mrf.mxu0 }
0x1564   :  { %v5346_v3 = vadd.f32 %v7009_v45, %v6021_v56 }
0x1565   :  { %v5340_v30 = vpop.f32.mrf.mxu0 }
0x1566   :  { %v5370_v28 = vmul.f32 %v5346_v3, %v5346_v3  ;;  %v5341_v58 = vadd.f32 %v6021_v56, %v5340_v30 }
0x1568   :  { %v5376_v42 = vmul.f32 %v5370_v28, %v5346_v3  ;;  %v5369_v55 = vmul.f32 %v5341_v58, %v5341_v58 }
0x156a   :  { %v5382_v32 = vmul.f32 0.044715, %v5376_v42  ;;  %v5375_v63 = vmul.f32 %v5369_v55, %v5341_v58 }
0x156c   :  { %v5388_v53 = vadd.f32 %v5382_v32, %v5346_v3  ;;  %v5381_v44 = vmul.f32 0.044715, %v5375_v63 }
0x156e   :  { %v5394_v25 = vmul.f32 0.7978846, %v5388_v53  ;;  %v5387_v8 = vadd.f32 %v5381_v44, %v5341_v58  ;;  %v6045_v53 = vld [vmem:[%s9577_s6 + $0x3] ss:$0 sm:$0xff] }
0x1570   :  { %7349 = vtanh.f32 %v5394_v25  ;;  %v5393_v49 = vmul.f32 0.7978846, %v5387_v8 }
0x1572   :  { %7351 = vtanh.f32 %v5393_v49 }
0x157d   :  { %v7350_v18 = vpop.eup %7349 }
0x157e   :  { %v5406_v46 = vadd.f32 1.0, %v7350_v18 }
0x157f   :  { %v7352_v59 = vpop.eup %7351 }
0x1580   :  { %v5405_v38 = vadd.f32 1.0, %v7352_v59  ;;  %v5412_v57 = vmul.f32 0.5, %v5406_v46 }
0x1582   :  { %v5411_v31 = vmul.f32 0.5, %v5405_v38  ;;  %v5418_v41 = vmul.f32 %v5412_v57, %v5346_v3 }
0x1584   :  { %v5417_v51 = vmul.f32 %v5411_v31, %v5341_v58 }
0x1586   :  { %7048 = vmatprep.mubr.f32.mxu1 %v5417_v51 }
0x1587   :  { %7049 = vmatmul.mubr.f32.vlgmr.msra.gmra.mxu1 %v5418_v41 }
0x15ba   :  { %v7012_v15 = vpop.f32.mrf.mxu0 }
0x15bb   :  { %v5356_v5 = vadd.f32 %v7012_v15, %v6021_v56 }
0x15bc   :  { %v5350_v12 = vpop.f32.mrf.mxu0 }
0x15bd   :  { %v5372_v26 = vmul.f32 %v5356_v5, %v5356_v5  ;;  %v5351_v16 = vadd.f32 %v6021_v56, %v5350_v12 }
0x15bf   :  { %v5378_v19 = vmul.f32 %v5372_v26, %v5356_v5  ;;  %v5371_v17 = vmul.f32 %v5351_v16, %v5351_v16 }
0x15c0   :  { %v7015_v34 = vpop.f32.mrf.mxu0 }
0x15c1   :  { %v5384_v13 = vmul.f32 0.044715, %v5378_v19  ;;  %v5377_v27 = vmul.f32 %v5371_v17, %v5351_v16  ;;  %v5366_v9 = vadd.f32 %v7015_v34, %v6021_v56 }
0x15c2   :  { %v5360_v2 = vpop.f32.mrf.mxu0 }
0x15c3   :  { %v5390_v36 = vadd.f32 %v5384_v13, %v5356_v5  ;;  %v5383_v54 = vmul.f32 0.044715, %v5377_v27  ;;  %v5374_v48 = vmul.f32 %v5366_v9, %v5366_v9  ;;  %v5361_v0 = vadd.f32 %v6021_v56, %v5360_v2 }
0x15c5   :  { %v5396_v22 = vmul.f32 0.7978846, %v5390_v36  ;;  %v5389_v50 = vadd.f32 %v5383_v54, %v5351_v16  ;;  %v5380_v14 = vmul.f32 %v5374_v48, %v5366_v9  ;;  %v5373_v1 = vmul.f32 %v5361_v0, %v5361_v0 }
0x15c7   :  { %7353 = vtanh.f32 %v5396_v22  ;;  %v5395_v40 = vmul.f32 0.7978846, %v5389_v50  ;;  %v5386_v24 = vmul.f32 0.044715, %v5380_v14  ;;  %v5379_v62 = vmul.f32 %v5373_v1, %v5361_v0 }
0x15c9   :  { %7355 = vtanh.f32 %v5395_v40  ;;  %v5392_v35 = vadd.f32 %v5386_v24, %v5366_v9  ;;  %v5385_v37 = vmul.f32 0.044715, %v5379_v62 }
0x15cb   :  { %v5398_v52 = vmul.f32 0.7978846, %v5392_v35  ;;  %v5391_v11 = vadd.f32 %v5385_v37, %v5361_v0 }
0x15cd   :  { %7357 = vtanh.f32 %v5398_v52  ;;  %v5397_v60 = vmul.f32 0.7978846, %v5391_v11 }
0x15cf   :  { %7359 = vtanh.f32 %v5397_v60 }
0x15d4   :  { %v7354_v39 = vpop.eup %7353 }
0x15d5   :  { %v5408_v21 = vadd.f32 1.0, %v7354_v39 }
0x15d6   :  { %v7356_v10 = vpop.eup %7355 }
0x15d7   :  { %v5407_v43 = vadd.f32 1.0, %v7356_v10  ;;  %v5414_v6 = vmul.f32 0.5, %v5408_v21 }
0x15d9   :  { %v5413_v61 = vmul.f32 0.5, %v5407_v43  ;;  %v5420_v30 = vmul.f32 %v5414_v6, %v5356_v5 }
0x15da   :  { %v7358_v29 = vpop.eup %7357 }
0x15db   :  { %v5419_v56 = vmul.f32 %v5413_v61, %v5351_v16  ;;  %v5410_v45 = vadd.f32 1.0, %v7358_v29 }
0x15dc   :  { %v7360_v3 = vpop.eup %7359 }
0x15dd   :  { %7051 = vmatprep.mubr.f32.mxu1 %v5419_v56  ;;  %v5409_v28 = vadd.f32 1.0, %v7360_v3  ;;  %v5416_v58 = vmul.f32 0.5, %v5410_v45 }
0x15de   :  { %7052 = vmatmul.mubr.f32.gmra.mxu1 %v5420_v30 }
0x15df   :  { %v5415_v42 = vmul.f32 0.5, %v5409_v28  ;;  %v5422_v32 = vmul.f32 %v5416_v58, %v5366_v9 }
0x15e1   :  { %v5421_v55 = vmul.f32 %v5415_v42, %v5361_v0 }
0x15e3   :  { %7054 = vmatprep.mubr.f32.mxu1 %v5421_v55  ;;  %v9496_v55 = vld [vmem:[%s9578_s7] ss:$0 sm:$0xff] }
0x15e4   :  { %7055 = vmatmul.mubr.f32.gmra.mxu1 %v5422_v32 }
0x1647   :  { %v7050_v63 = vpop.f32.mrf.mxu1 }
0x1648   :  { %v5535_v44 = vadd.f32 %v7050_v63, %v9326_v23 }
0x1649   :  { %v5505_v25 = vpop.f32.mrf.mxu1 }
0x164a   :  { %v5546_v8 = vadd.f32 %v6045_v53, %v5535_v44  ;;  %v5534_v49 = vadd.f32 %v5505_v25, %v9329_v33 }
0x164c   :  { %v5545_v18 = vadd.f32 %v6045_v53, %v5534_v49  ;;  %v5554_v46 = vsel %vm168_vm1, %v5546_v8, 0.0 }
0x164d   :  { %5555 = vadd.xlane.f32.xlu1 %v5554_v46 }
0x164e   :  { %v5551_v59 = vsel %vm168_vm1, %v5545_v18, 0.0 }
0x164f   :  { %5552 = vadd.xlane.f32.xlu0 %v5551_v59 }
0x169e   :  { %v7053_v38 = vpop.f32.mrf.mxu1 }
0x169f   :  { %v5537_v57 = vadd.f32 %v7053_v38, %v9336_v20 }
0x16a0   :  { %v5515_v31 = vpop.f32.mrf.mxu1 }
0x16a1   :  { %v5548_v51 = vadd.f32 %v6045_v53, %v5537_v57  ;;  %v5536_v41 = vadd.f32 %v5515_v31, %v9339_v47  ;;  %v5696_v31 = vld [vmem:[%s9579_s8 + $0x18] sm:$0xff] }
0x16a2   :  { %7057 = vmatprep.subr.mxu0 %v5696_v31 }
0x16a3   :  { %v5547_v15 = vadd.f32 %v6045_v53, %v5536_v41  ;;  %v5560_v23 = vsel %vm168_vm1, %v5548_v51, 0.0  ;;  %7058 = vmatpush3.msra.mxu0 %v5696_v31  ;;  %v5694_v41 = vld [vmem:[%s9579_s8 + $0x8] sm:$0xff] }
0x16a4   :  { %5561 = vadd.xlane.f32.xlu1 %v5560_v23  ;;  %v7056_v5 = vpop.f32.mrf.mxu1 }
0x16a5   :  { %v5539_v33 = vadd.f32 %v7056_v5, %v9346_v4  ;;  %v5557_v12 = vsel %vm168_vm1, %v5547_v15, 0.0 }
0x16a6   :  { %5558 = vadd.xlane.f32.xlu0 %v5557_v12  ;;  %v5525_v26 = vpop.f32.mrf.mxu1 }
0x16a7   :  { %v5550_v16 = vadd.f32 %v6045_v53, %v5539_v33  ;;  %v5538_v19 = vadd.f32 %v5525_v26, %v9349_v7 }
0x16a9   :  { %v5549_v17 = vadd.f32 %v6045_v53, %v5538_v19  ;;  %v5566_v20 = vsel %vm168_vm1, %v5550_v16, 0.0  ;;  %v9501_v53 = vld [vmem:[%s9578_s7 + $0x1] ss:$0 sm:$0xff] }
0x16aa   :  { %5567 = vadd.xlane.f32.xlu1 %v5566_v20 }
0x16ab   :  { %v5563_v47 = vsel %vm168_vm1, %v5549_v17, 0.0 }
0x16ac   :  { %5564 = vadd.xlane.f32.xlu0 %v5563_v47 }
0x16d6   :  { %v5556_v34 = vpop.xlane.xlu1 %5555 }
0x16d7   :  { %v5570_v13 = vmul.f32 0.03125, %v5556_v34 }
0x16d8   :  { %v5553_v27 = vpop.xlane.xlu0 %5552 }
0x16d9   :  { %v5576_v9 = vsub.f32 %v5546_v8, %v5570_v13  ;;  %v5569_v2 = vmul.f32 0.03125, %v5553_v27 }
0x16db   :  { %v5575_v4 = vsub.f32 %v5545_v18, %v5569_v2  ;;  %v5582_v36 = vmul.f32 %v5576_v9, %v5576_v9 }
0x16dd   :  { %v5590_v54 = vsel %vm168_vm1, %v5582_v36, 0.0  ;;  %v5581_v48 = vmul.f32 %v5575_v4, %v5575_v4 }
0x16de   :  { %5591 = vadd.xlane.f32.xlu1 %v5590_v54 }
0x16df   :  { %v5587_v7 = vsel %vm168_vm1, %v5581_v48, 0.0 }
0x16e0   :  { %5588 = vadd.xlane.f32.xlu0 %v5587_v7 }
0x172d   :  { %v5562_v0 = vpop.xlane.xlu1 %5561 }
0x172e   :  { %v5572_v22 = vmul.f32 0.03125, %v5562_v0 }
0x172f   :  { %v5559_v50 = vpop.xlane.xlu0 %5558 }
0x1730   :  { %v9473_v14 = vsub.f32 %v5548_v51, %v5572_v22  ;;  %v5571_v1 = vmul.f32 0.03125, %v5559_v50  ;;  %v5695_v51 = vld [vmem:[%s9579_s8 + $0x10] sm:$0xff] }
0x1731   :  { %7059 = vmatprep.subr.mxu0 %v5695_v51 }
0x1732   :  { %v9475_v40 = vsub.f32 %v5547_v15, %v5571_v1  ;;  %v5584_v24 = vmul.f32 %v9473_v14, %v9473_v14  ;;  %7060 = vmatpush3.msra.mxu0 %v5695_v51  ;;  %v5693_v15 = vld [vmem:[%s9579_s8] sm:$0xff] }
0x1733   :  { %v5568_v62 = vpop.xlane.xlu1 %5567  ;;  %7061 = vmatprep.subr.mxu0 %v5694_v41 }
0x1734   :  { %v5574_v35 = vmul.f32 0.03125, %v5568_v62  ;;  %v5596_v37 = vsel %vm168_vm1, %v5584_v24, 0.0  ;;  %v5583_v52 = vmul.f32 %v9475_v40, %v9475_v40  ;;  %7062 = vmatpush3.msra.mxu0 %v5694_v41 }
0x1735   :  { %5597 = vadd.xlane.f32.xlu1 %v5596_v37  ;;  %v5565_v11 = vpop.xlane.xlu0 %5564  ;;  %7063 = vmatprep.subr.mxu0 %v5693_v15 }
0x1736   :  { %v9482_v60 = vsub.f32 %v5550_v16, %v5574_v35  ;;  %v5573_v39 = vmul.f32 0.03125, %v5565_v11  ;;  %v5593_v21 = vsel %vm168_vm1, %v5583_v52, 0.0  ;;  %7064 = vmatpush3.msra.mxu0 %v5693_v15 }
0x1737   :  { %5594 = vadd.xlane.f32.xlu0 %v5593_v21 }
0x1738   :  { %v9485_v10 = vsub.f32 %v5549_v17, %v5573_v39  ;;  %v5586_v43 = vmul.f32 %v9482_v60, %v9482_v60 }
0x173a   :  { %v5602_v6 = vsel %vm168_vm1, %v5586_v43, 0.0  ;;  %v5585_v61 = vmul.f32 %v9485_v10, %v9485_v10 }
0x173b   :  { %5603 = vadd.xlane.f32.xlu1 %v5602_v6 }
0x173c   :  { %v5599_v29 = vsel %vm168_vm1, %v5585_v61, 0.0 }
0x173d   :  { %5600 = vadd.xlane.f32.xlu0 %v5599_v29 }
0x1767   :  { %v5592_v56 = vpop.xlane.xlu1 %5591 }
0x1768   :  { %v5606_v45 = vmul.f32 0.03125, %v5592_v56 }
0x1769   :  { %v5589_v3 = vpop.xlane.xlu0 %5588 }
0x176a   :  { %v5612_v30 = vadd.f32 1e-06, %v5606_v45  ;;  %v5605_v28 = vmul.f32 0.03125, %v5589_v3 }
0x176c   :  { %7361 = vrsqrt.f32 %v5612_v30  ;;  %v5611_v58 = vadd.f32 1e-06, %v5605_v28 }
0x176e   :  { %7363 = vrsqrt.f32 %v5611_v58 }
0x1779   :  { %v7362_v42 = vpop.eup %7361 }
0x177a   :  { %v5624_v32 = vmul.f32 %v7362_v42, %v5576_v9 }
0x177b   :  { %v7364_v63 = vpop.eup %7363 }
0x177c   :  { %v5635_v44 = vmul.f32 %v9496_v55, %v5624_v32  ;;  %v5623_v25 = vmul.f32 %v7364_v63, %v5575_v4 }
0x177e   :  { %v9505_v8 = vadd.f32 %v9501_v53, %v5635_v44  ;;  %v5634_v49 = vmul.f32 %v9496_v55, %v5623_v25 }
0x1780   :  { %v5652_v18 = vmul.f32 %v9505_v8, %v9505_v8  ;;  %v9511_v46 = vadd.f32 %v9501_v53, %v5634_v49 }
0x1782   :  { %v5660_v59 = vsel %vm168_vm1, %v5652_v18, 0.0  ;;  %v5651_v38 = vmul.f32 %v9511_v46, %v9511_v46 }
0x1783   :  { %5661 = vadd.xlane.f32.xlu1 %v5660_v59 }
0x1784   :  { %v5657_v57 = vsel %vm168_vm1, %v5651_v38, 0.0 }
0x1785   :  { %5658 = vadd.xlane.f32.xlu0 %v5657_v57 }
0x17be   :  { %v5598_v23 = vpop.xlane.xlu1 %5597 }
0x17bf   :  { %v5608_v5 = vmul.f32 0.03125, %v5598_v23 }
0x17c0   :  { %v5595_v33 = vpop.xlane.xlu0 %5594 }
0x17c1   :  { %v5614_v12 = vadd.f32 1e-06, %v5608_v5  ;;  %v5607_v26 = vmul.f32 0.03125, %v5595_v33 }
0x17c3   :  { %7365 = vrsqrt.f32 %v5614_v12  ;;  %v5613_v16 = vadd.f32 1e-06, %v5607_v26 }
0x17c4   :  { %v5604_v19 = vpop.xlane.xlu1 %5603 }
0x17c5   :  { %7367 = vrsqrt.f32 %v5613_v16  ;;  %v5610_v17 = vmul.f32 0.03125, %v5604_v19 }
0x17c6   :  { %v5601_v20 = vpop.xlane.xlu0 %5600 }
0x17c7   :  { %v5616_v47 = vadd.f32 1e-06, %v5610_v17  ;;  %v5609_v34 = vmul.f32 0.03125, %v5601_v20 }
0x17c9   :  { %7369 = vrsqrt.f32 %v5616_v47  ;;  %v5615_v13 = vadd.f32 1e-06, %v5609_v34 }
0x17cb   :  { %7371 = vrsqrt.f32 %v5615_v13 }
0x17d0   :  { %v7366_v27 = vpop.eup %7365 }
0x17d1   :  { %v5626_v9 = vmul.f32 %v7366_v27, %v9473_v14 }
0x17d2   :  { %v7368_v2 = vpop.eup %7367 }
0x17d3   :  { %v5637_v4 = vmul.f32 %v9496_v55, %v5626_v9  ;;  %v5625_v36 = vmul.f32 %v7368_v2, %v9475_v40 }
0x17d5   :  { %v5648_v54 = vadd.f32 %v9501_v53, %v5637_v4  ;;  %v5636_v48 = vmul.f32 %v9496_v55, %v5625_v36 }
0x17d6   :  { %v7370_v7 = vpop.eup %7369 }
0x17d7   :  { %v5654_v0 = vmul.f32 %v5648_v54, %v5648_v54  ;;  %v5647_v22 = vadd.f32 %v9501_v53, %v5636_v48  ;;  %v5628_v50 = vmul.f32 %v7370_v7, %v9482_v60 }
0x17d8   :  { %v7372_v1 = vpop.eup %7371 }
0x17d9   :  { %v5666_v24 = vsel %vm168_vm1, %v5654_v0, 0.0  ;;  %v5653_v62 = vmul.f32 %v5647_v22, %v5647_v22  ;;  %v5639_v14 = vmul.f32 %v9496_v55, %v5628_v50  ;;  %v5627_v35 = vmul.f32 %v7372_v1, %v9485_v10 }
0x17da   :  { %5667 = vadd.xlane.f32.xlu1 %v5666_v24 }
0x17db   :  { %v5663_v40 = vsel %vm168_vm1, %v5653_v62, 0.0  ;;  %v5650_v37 = vadd.f32 %v9501_v53, %v5639_v14  ;;  %v5638_v52 = vmul.f32 %v9496_v55, %v5627_v35 }
0x17dc   :  { %5664 = vadd.xlane.f32.xlu0 %v5663_v40 }
0x17dd   :  { %v5656_v11 = vmul.f32 %v5650_v37, %v5650_v37  ;;  %v5649_v39 = vadd.f32 %v9501_v53, %v5638_v52 }
0x17df   :  { %v5672_v60 = vsel %vm168_vm1, %v5656_v11, 0.0  ;;  %v5655_v21 = vmul.f32 %v5649_v39, %v5649_v39 }
0x17e0   :  { %5673 = vadd.xlane.f32.xlu1 %v5672_v60 }
0x17e1   :  { %v5669_v43 = vsel %vm168_vm1, %v5655_v21, 0.0 }
0x17e2   :  { %5670 = vadd.xlane.f32.xlu0 %v5669_v43 }
0x180c   :  { %v5662_v6 = vpop.xlane.xlu1 %5661 }
0x180d   :  { %v5676_v10 = vmax.f32 %v5662_v6, 1e-24 }
0x180e   :  { %v5659_v61 = vpop.xlane.xlu0 %5658 }
0x180f   :  { %v5675_v29 = vmax.f32 %v5659_v61, 1e-24  ;;  %7373 = vrsqrt.f32 %v5676_v10 }
0x1811   :  { %7375 = vrsqrt.f32 %v5675_v29 }
0x181c   :  { %v7374_v56 = vpop.eup %7373 }
0x181d   :  { %v5688_v30 = vmul.f32 %v7374_v56, %v9505_v8 }
0x181e   :  { %v7376_v45 = vpop.eup %7375 }
0x181f   :  { %v5687_v3 = vmul.f32 %v7376_v45, %v9511_v46 }
0x1821   :  { %7065 = vmatprep.mubr.msk.f32.mxu0 %vm168_vm1, %v5687_v3 }
0x1822   :  { %7066 = vmatmul.mubr.msk.f32.vlgmr.msra.gmra.mxu0 %vm168_vm1, %v5688_v30 }
0x1863   :  { %v5668_v28 = vpop.xlane.xlu1 %5667 }
0x1864   :  { %v5678_v58 = vmax.f32 %v5668_v28, 1e-24 }
0x1865   :  { %v5665_v42 = vpop.xlane.xlu0 %5664 }
0x1866   :  { %v5677_v55 = vmax.f32 %v5665_v42, 1e-24  ;;  %7377 = vrsqrt.f32 %v5678_v58 }
0x1868   :  { %7379 = vrsqrt.f32 %v5677_v55 }
0x1869   :  { %v5674_v32 = vpop.xlane.xlu1 %5673 }
0x186a   :  { %v5680_v63 = vmax.f32 %v5674_v32, 1e-24 }
0x186b   :  { %v5671_v53 = vpop.xlane.xlu0 %5670 }
0x186c   :  { %v5679_v44 = vmax.f32 %v5671_v53, 1e-24  ;;  %7381 = vrsqrt.f32 %v5680_v63 }
0x186e   :  { %7383 = vrsqrt.f32 %v5679_v44 }
0x1873   :  { %v7378_v25 = vpop.eup %7377 }
0x1874   :  { %v5690_v8 = vmul.f32 %v7378_v25, %v5648_v54 }
0x1875   :  { %v7380_v49 = vpop.eup %7379 }
0x1876   :  { %v5689_v18 = vmul.f32 %v7380_v49, %v5647_v22 }
0x1878   :  { %7068 = vmatprep.mubr.msk.f32.mxu0 %vm168_vm1, %v5689_v18 }
0x1879   :  { %7069 = vmatmul.mubr.msk.f32.gmra.mxu0 %vm168_vm1, %v5690_v8  ;;  %v7382_v46 = vpop.eup %7381 }
0x187a   :  { %v5692_v57 = vmul.f32 %v7382_v46, %v5650_v37 }
0x187b   :  { %v7384_v59 = vpop.eup %7383 }
0x187c   :  { %v5691_v38 = vmul.f32 %v7384_v59, %v5649_v39 }
0x187e   :  { %7071 = vmatprep.mubr.msk.f32.mxu0 %vm168_vm1, %v5691_v38 }
0x187f   :  { %7072 = vmatmul.mubr.msk.f32.gmra.mxu0 %vm168_vm1, %v5692_v57 }
0x18e2   :  { %v7067_v31 = vpop.f32.mrf.mxu0 }
0x18e3   :  { %5811 = vst [vmem:[%s9580_s9 + $0x8] sm:$0xff] %v7067_v31 }
0x18e4   :  { %v5781_v51 = vpop.f32.mrf.mxu0 }
0x18e5   :  { %5810 = vst [vmem:[%s9580_s9] sm:$0xff] %v5781_v51 }
0x1939   :  { %v7070_v41 = vpop.f32.mrf.mxu0 }
0x193a   :  { %5813 = vst [vmem:[%s9580_s9 + $0x18] sm:$0xff] %v7070_v41 }
0x193b   :  { %v5791_v15 = vpop.f32.mrf.mxu0 }
0x193c   :  { %5812 = vst [vmem:[%s9580_s9 + $0x10] sm:$0xff] %v5791_v15 }
0x193f   :  { %v7073_v23 = vpop.f32.mrf.mxu0 }
0x1940   :  { %5815 = vst [vmem:[%s9580_s9 + $0x28] sm:$0xff] %v7073_v23 }
0x1941   :  { %v5801_v5 = vpop.f32.mrf.mxu0 }
0x1942   :  { %5814 = vst [vmem:[%s9580_s9 + $0x20] sm:$0xff] %v5801_v5 }

</bundles_post_ra>
